<compile_context>
chip_gen: v7x
topology: tpu7x:2x2x1
jax: 0.10.0
libtpu: 0.0.40
codegen_flags: <defaults>
</compile_context>

<pallas_src>
import jax
import jax.numpy as jnp
from jax.experimental import pallas as pl
from jax.experimental.pallas import tpu as pltpu

LOG_SIG_MAX = 2.0
LOG_SIG_MIN = -20.0

_VMEM = pl.BlockSpec(memory_space=pltpu.MemorySpace.VMEM)
_CPARAMS = pltpu.CompilerParams(vmem_limit_bytes=24 << 20)


# ------------------------------ Pallas kernels --------------------------------
def conv_mm_relu_kernel(p_ref, w_ref, b_ref, o_ref):
    """relu(patches @ W + b): one convolution layer expressed as a matmul."""
    acc = jnp.dot(p_ref[...], w_ref[...], preferred_element_type=jnp.float32)
    o_ref[...] = jnp.maximum(acc + b_ref[...], 0.0).astype(o_ref.dtype)


def policy_mlp_kernel(x_ref, dims_ref,
                      w1_ref, b1_ref,
                      w2m_ref, b2m_ref, w3m_ref, b3m_ref,
                      w2s_ref, b2s_ref, w3s_ref, b3s_ref,
                      w4mx_ref, b4m_ref, w4sx_ref, b4s_ref, w4d_ref,
                      mean_ref, std_ref):
    x = x_ref[...]                                                    # [B, 1024] bf16

    # Shared first layer: the PyTorch forward uses fc1_mean for BOTH branches.
    h1 = jnp.dot(x, w1_ref[...], preferred_element_type=jnp.float32) + b1_ref[...]
    h1 = jnp.maximum(h1, 0.0).astype(jnp.bfloat16)                    # [B, 500]

    # mean branch
    m = jnp.dot(h1, w2m_ref[...], preferred_element_type=jnp.float32) + b2m_ref[...]
    m = jnp.maximum(m, 0.0).astype(jnp.bfloat16)                      # [B, 100]
    m = jnp.dot(m, w3m_ref[...], preferred_element_type=jnp.float32) + b3m_ref[...]
    m = jnp.maximum(m, 0.0).astype(jnp.bfloat16)                      # [B, 50]

    # std branch
    s = jnp.dot(h1, w2s_ref[...], preferred_element_type=jnp.float32) + b2s_ref[...]
    s = jnp.maximum(s, 0.0).astype(jnp.bfloat16)
    s = jnp.dot(s, w3s_ref[...], preferred_element_type=jnp.float32) + b3s_ref[...]
    s = jnp.maximum(s, 0.0).astype(jnp.bfloat16)

    # cat([h, dims]) @ W4  ==  h @ W4[:50] + dims @ W4[50:]; the two dims pieces
    # (mean head, std head) are fused into one [12, 4] matmul.
    d4 = jnp.dot(dims_ref[...], w4d_ref[...], preferred_element_type=jnp.float32)   # [B, 4]

    z_mean = (jnp.dot(m, w4mx_ref[...], preferred_element_type=jnp.float32)
              + d4[:, 0:2] + b4m_ref[...])
    z_std = (jnp.dot(s, w4sx_ref[...], preferred_element_type=jnp.float32)
             + d4[:, 2:4] + b4s_ref[...])

    mean_ref[...] = z_mean
    std_ref[...] = jnp.clip(z_std, LOG_SIG_MIN, LOG_SIG_MAX)


# -------------------------------- wrappers -------------------------------------
def _extract_patches_nhwc(x, k, stride):
    """im2col for a VALID, stride-`stride` conv.
    x: [B,H,W,C] -> ([B*OH*OW, C*k*k], OH, OW) with feature order (c, kh, kw),
    matching a PyTorch [Cout, Cin, kh, kw].reshape(Cout, -1) weight flatten."""
    B, H, W, C = x.shape
    OH = (H - k) // stride + 1
    OW = (W - k) // stride + 1
    cols = []
    for kh in range(k):
        for kw in range(k):
            cols.append(x[:, kh:kh + stride * OH:stride, kw:kw + stride * OW:stride, :])
    p = jnp.stack(cols, axis=-1)                 # [B, OH, OW, C, k*k]
    p = p.reshape(B * OH * OW, C * k * k)
    return p, OH, OW


def _conv_pallas(patches, w_flat, b):
    M = patches.shape[0]
    cout = w_flat.shape[1]
    return pl.pallas_call(
        conv_mm_relu_kernel,
        out_shape=jax.ShapeDtypeStruct((M, cout), jnp.bfloat16),
        in_specs=[_VMEM, _VMEM, _VMEM],
        out_specs=_VMEM,
        compiler_params=_CPARAMS,
    )(patches, w_flat, b)


@jax.jit
def policy_forward(params, state, dims):
    """state: [B,4,45,80] f32 (NCHW), dims: [B,12] f32 -> (z_mean, z_std), each [B,2] f32."""
    B = state.shape[0]

    # conv stack: patch gather / layout permutes in XLA, all FLOPs in Pallas
    x = jnp.transpose(state, (0, 2, 3, 1)).astype(jnp.bfloat16)        # NHWC
    p1, oh1, ow1 = _extract_patches_nhwc(x, 5, 2)
    c1 = _conv_pallas(p1, params["wc1"], params["bc1"]).reshape(B, oh1, ow1, -1)
    p2, oh2, ow2 = _extract_patches_nhwc(c1, 3, 2)
    c2 = _conv_pallas(p2, params["wc2"], params["bc2"]).reshape(B, oh2, ow2, -1)
    p3, oh3, ow3 = _extract_patches_nhwc(c2, 3, 2)
    c3 = _conv_pallas(p3, params["wc3"], params["bc3"]).reshape(B, oh3, ow3, -1)

    # PyTorch flattens in NCHW order: x.view(-1, 32*4*8)
    x_flat = jnp.transpose(c3, (0, 3, 1, 2)).reshape(B, -1)            # [B, 1024] bf16

    flat = (params["w1"], params["b1"],
            params["w2m"], params["b2m"], params["w3m"], params["b3m"],
            params["w2s"], params["b2s"], params["w3s"], params["b3s"],
            params["w4mx"], params["b4m"], params["w4sx"], params["b4s"],
            params["w4d"])

    z_mean, z_std = pl.pallas_call(
        policy_mlp_kernel,
        out_shape=(jax.ShapeDtypeStruct((B, 2), jnp.float32),
                   jax.ShapeDtypeStruct((B, 2), jnp.float32)),
        in_specs=[_VMEM] * (2 + len(flat)),
        out_specs=(_VMEM, _VMEM),
        compiler_params=_CPARAMS,
    )(x_flat, dims.astype(jnp.bfloat16), *flat)
    return z_mean, z_std


# ------------------------------ parameter init ----------------------------------
def _xavier(key, fan_in, fan_out):
    limit = (6.0 / (fan_in + fan_out)) ** 0.5
    return jax.random.uniform(key, (fan_in, fan_out), jnp.float32, -limit, limit)


def _conv_w(key, cout, cin, k):
    fan_in = cin * k * k
    bound = 1.0 / (fan_in ** 0.5)
    return jax.random.uniform(key, (cout, cin, k, k), jnp.float32, -bound, bound)


def init_policy_params(key, num_actions=2, out_channels=(32, 32, 32),
                       hidden_arr=(500, 100, 50, 9), num_boxes=4):
    h0, h1, h2 = hidden_arr[0], hidden_arr[1], hidden_arr[2]
    dims_feat = 3 * num_boxes
    ks = jax.random.split(key, 13)

    def flat_conv(w):   # [Cout, Cin, k, k] -> bf16 [Cin*k*k, Cout]
        cout = w.shape[0]
        return jnp.asarray(w.reshape(cout, -1).T, jnp.bfloat16)

    wc1 = _conv_w(ks[0], out_channels[0], 4, 5)
    wc2 = _conv_w(ks[1], out_channels[1], out_channels[0], 3)
    wc3 = _conv_w(ks[2], out_channels[2], out_channels[1], 3)

    def conv_b(key, cin, k, cout):
        bound = 1.0 / ((cin * k * k) ** 0.5)
        return jax.random.uniform(key, (1, cout), jnp.float32, -bound, bound)

    in_fc = out_channels[2] * 4 * 8    # 1024
    w1 = _xavier(ks[3], in_fc, h0)
    w2m = _xavier(ks[4], h0, h1)
    w3m = _xavier(ks[5], h1, h2)
    w4m = _xavier(ks[6], h2 + dims_feat, num_actions)
    w2s = _xavier(ks[7], h0, h1)
    w3s = _xavier(ks[8], h1, h2)
    w4s = _xavier(ks[9], h2 + dims_feat, num_actions)
    # fc1_std exists in the PyTorch module but is never used by forward() (the original
    # code calls fc1_mean for the std branch too), so it is intentionally not created.

    bf = lambda a: jnp.asarray(a, jnp.bfloat16)
    return {
        "wc1": flat_conv(wc1), "bc1": conv_b(ks[10], 4, 5, out_channels[0]),
        "wc2": flat_conv(wc2), "bc2": conv_b(ks[11], out_channels[0], 3, out_channels[1]),
        "wc3": flat_conv(wc3), "bc3": conv_b(ks[12], out_channels[1], 3, out_channels[2]),
        "w1": bf(w1),   "b1": jnp.zeros((1, h0), jnp.float32),
        "w2m": bf(w2m), "b2m": jnp.zeros((1, h1), jnp.float32),
        "w3m": bf(w3m), "b3m": jnp.zeros((1, h2), jnp.float32),
        "w2s": bf(w2s), "b2s": jnp.zeros((1, h1), jnp.float32),
        "w3s": bf(w3s), "b3s": jnp.zeros((1, h2), jnp.float32),
        "w4mx": bf(w4m[:h2]), "b4m": jnp.zeros((1, num_actions), jnp.float32),
        "w4sx": bf(w4s[:h2]), "b4s": jnp.zeros((1, num_actions), jnp.float32),
        # dims contribution of both heads, fused: [12, 2*num_actions]
        "w4d": bf(jnp.concatenate([w4m[h2:], w4s[h2:]], axis=1)),
    }


# ---------------------------- pure-JAX reference --------------------------------
@jax.jit
def policy_ref(params, state, dims):
    num_actions = params["b4m"].shape[1]

    def conv_ref(x_nchw, w_flat, b, cin, k):
        cout = w_flat.shape[1]
        w = jnp.asarray(w_flat, jnp.bfloat16).T.reshape(cout, cin, k, k)
        y = jax.lax.conv_general_dilated(
            x_nchw.astype(jnp.bfloat16), w, window_strides=(2, 2), padding="VALID",
            dimension_numbers=("NCHW", "OIHW", "NCHW"),
            preferred_element_type=jnp.float32)
        return jnp.maximum(y + b.reshape(1, cout, 1, 1), 0.0).astype(jnp.bfloat16)

    y = conv_ref(state, params["wc1"], params["bc1"], 4, 5)
    y = conv_ref(y, params["wc2"], params["bc2"], 32, 3)
    y = conv_ref(y, params["wc3"], params["bc3"], 32, 3)
    B = state.shape[0]
    x = y.reshape(B, -1)                                               # NCHW flatten

    lin = lambda h, w, b: jnp.dot(h, w, preferred_element_type=jnp.float32) + b
    relu_bf16 = lambda a: jnp.maximum(a, 0.0).astype(jnp.bfloat16)

    h1 = relu_bf16(lin(x, params["w1"], params["b1"]))
    m = relu_bf16(lin(h1, params["w2m"], params["b2m"]))
    m = relu_bf16(lin(m, params["w3m"], params["b3m"]))
    s = relu_bf16(lin(h1, params["w2s"], params["b2s"]))
    s = relu_bf16(lin(s, params["w3s"], params["b3s"]))
    d4 = jnp.dot(dims.astype(jnp.bfloat16), params["w4d"], preferred_element_type=jnp.float32)
    z_mean = (jnp.dot(m, params["w4mx"], preferred_element_type=jnp.float32)
              + d4[:, :num_actions] + params["b4m"])
    z_std = (jnp.dot(s, params["w4sx"], preferred_element_type=jnp.float32)
             + d4[:, num_actions:] + params["b4s"])
    return z_mean, jnp.clip(z_std, LOG_SIG_MIN, LOG_SIG_MAX)


# ------------------------------------ main --------------------------------------
if __name__ == "__main__":
    key = jax.random.PRNGKey(0)
    B, NUM_BOXES, NUM_ACTIONS = 2, 4, 2

    k_param, k_state, k_dims = jax.random.split(key, 3)
    params = init_policy_params(k_param, num_actions=NUM_ACTIONS, num_boxes=NUM_BOXES)

    state = jax.random.normal(k_state, (B, 4, 45, 80), jnp.float32)    # [b, 4, 45, 80]
    dims = jax.random.normal(k_dims, (B, 3 * NUM_BOXES), jnp.float32)  # [b, 12]

    z_mean, z_std = jax.block_until_ready(policy_forward(params, state, dims))
    r_mean, r_std = jax.block_until_ready(policy_ref(params, state, dims))

    assert z_mean.shape == (B, NUM_ACTIONS) and z_std.shape == (B, NUM_ACTIONS)
    assert bool(jnp.all(jnp.isfinite(z_mean))) and bool(jnp.all(jnp.isfinite(z_std)))
    assert jnp.allclose(z_mean, r_mean, atol=2e-2, rtol=2e-2)
    assert jnp.allclose(z_std, r_std, atol=2e-2, rtol=2e-2)

    print("KERNEL_OK")
</pallas_src>

<mosaic_0001>
module attributes {stable_mosaic.version = 11 : i64} {
  func.func @conv_mm_relu_kernel(%arg0: memref<1596x100xbf16, #tpu.memory_space<vmem>>, %arg1: memref<100x32xbf16, #tpu.memory_space<vmem>>, %arg2: memref<1x32xf32, #tpu.memory_space<vmem>>, %arg3: memref<1596x32xbf16, #tpu.memory_space<vmem>>) attributes {dimension_semantics = [], scalar_prefetch = 0 : i64, scratch_operands = 0 : i64, tpu.core_type = #tpu.core_type<tc>} {
    %c0 = arith.constant 0 : index
    %c0_0 = arith.constant 0 : index
    %0 = vector.load %arg0[%c0, %c0_0] : memref<1596x100xbf16, #tpu.memory_space<vmem>>, vector<1596x100xbf16>
    %c0_1 = arith.constant 0 : index
    %c0_2 = arith.constant 0 : index
    %1 = vector.load %arg1[%c0_1, %c0_2] : memref<100x32xbf16, #tpu.memory_space<vmem>>, vector<100x32xbf16>
    %cst = arith.constant dense<0.000000e+00> : vector<1596x32xf32>
    %2 = tpu.matmul %0, %1, %cst {dimension_numbers = #tpu.dot_dimension_numbers<[1], [0], [0], [1], [0, 0, 1, 1], [], []>} : vector<1596x100xbf16>, vector<100x32xbf16>, vector<1596x32xf32> -> vector<1596x32xf32>
    %c0_3 = arith.constant 0 : index
    %c0_4 = arith.constant 0 : index
    %3 = vector.load %arg2[%c0_3, %c0_4] : memref<1x32xf32, #tpu.memory_space<vmem>>, vector<1x32xf32>
    %4 = vector.broadcast %3 : vector<1x32xf32> to vector<1596x32xf32>
    %5 = arith.addf %2, %4 : vector<1596x32xf32>
    %cst_5 = arith.constant 0.000000e+00 : f32
    %6 = vector.broadcast %cst_5 : f32 to vector<1596x32xf32>
    %7 = arith.maximumf %5, %6 : vector<1596x32xf32>
    %8 = arith.truncf %7 : vector<1596x32xf32> to vector<1596x32xbf16>
    %c0_6 = arith.constant 0 : index
    %c0_7 = arith.constant 0 : index
    %9 = vector.load %arg3[%c0_6, %c0_7] : memref<1596x32xbf16, #tpu.memory_space<vmem>>, vector<1596x32xbf16>
    tpu.vector_store %arg3[%c0_6, %c0_7], %8 {strides = array<i32>} : memref<1596x32xbf16, #tpu.memory_space<vmem>>, vector<1596x32xbf16>,
    return
  }
}

module attributes {stable_mosaic.version = 11 : i64} {
  func.func @conv_mm_relu_kernel(%arg0: memref<360x288xbf16, #tpu.memory_space<vmem>>, %arg1: memref<288x32xbf16, #tpu.memory_space<vmem>>, %arg2: memref<1x32xf32, #tpu.memory_space<vmem>>, %arg3: memref<360x32xbf16, #tpu.memory_space<vmem>>) attributes {dimension_semantics = [], scalar_prefetch = 0 : i64, scratch_operands = 0 : i64, tpu.core_type = #tpu.core_type<tc>} {
    %c0 = arith.constant 0 : index
    %c0_0 = arith.constant 0 : index
    %0 = vector.load %arg0[%c0, %c0_0] : memref<360x288xbf16, #tpu.memory_space<vmem>>, vector<360x288xbf16>
    %c0_1 = arith.constant 0 : index
    %c0_2 = arith.constant 0 : index
    %1 = vector.load %arg1[%c0_1, %c0_2] : memref<288x32xbf16, #tpu.memory_space<vmem>>, vector<288x32xbf16>
    %cst = arith.constant dense<0.000000e+00> : vector<360x32xf32>
    %2 = tpu.matmul %0, %1, %cst {dimension_numbers = #tpu.dot_dimension_numbers<[1], [0], [0], [1], [0, 0, 1, 1], [], []>} : vector<360x288xbf16>, vector<288x32xbf16>, vector<360x32xf32> -> vector<360x32xf32>
    %c0_3 = arith.constant 0 : index
    %c0_4 = arith.constant 0 : index
    %3 = vector.load %arg2[%c0_3, %c0_4] : memref<1x32xf32, #tpu.memory_space<vmem>>, vector<1x32xf32>
    %4 = vector.broadcast %3 : vector<1x32xf32> to vector<360x32xf32>
    %5 = arith.addf %2, %4 : vector<360x32xf32>
    %cst_5 = arith.constant 0.000000e+00 : f32
    %6 = vector.broadcast %cst_5 : f32 to vector<360x32xf32>
    %7 = arith.maximumf %5, %6 : vector<360x32xf32>
    %8 = arith.truncf %7 : vector<360x32xf32> to vector<360x32xbf16>
    %c0_6 = arith.constant 0 : index
    %c0_7 = arith.constant 0 : index
    %9 = vector.load %arg3[%c0_6, %c0_7] : memref<360x32xbf16, #tpu.memory_space<vmem>>, vector<360x32xbf16>
    tpu.vector_store %arg3[%c0_6, %c0_7], %8 {strides = array<i32>} : memref<360x32xbf16, #tpu.memory_space<vmem>>, vector<360x32xbf16>,
    return
  }
}

module attributes {stable_mosaic.version = 11 : i64} {
  func.func @conv_mm_relu_kernel(%arg0: memref<64x288xbf16, #tpu.memory_space<vmem>>, %arg1: memref<288x32xbf16, #tpu.memory_space<vmem>>, %arg2: memref<1x32xf32, #tpu.memory_space<vmem>>, %arg3: memref<64x32xbf16, #tpu.memory_space<vmem>>) attributes {dimension_semantics = [], scalar_prefetch = 0 : i64, scratch_operands = 0 : i64, tpu.core_type = #tpu.core_type<tc>} {
    %c0 = arith.constant 0 : index
    %c0_0 = arith.constant 0 : index
    %0 = vector.load %arg0[%c0, %c0_0] : memref<64x288xbf16, #tpu.memory_space<vmem>>, vector<64x288xbf16>
    %c0_1 = arith.constant 0 : index
    %c0_2 = arith.constant 0 : index
    %1 = vector.load %arg1[%c0_1, %c0_2] : memref<288x32xbf16, #tpu.memory_space<vmem>>, vector<288x32xbf16>
    %cst = arith.constant dense<0.000000e+00> : vector<64x32xf32>
    %2 = tpu.matmul %0, %1, %cst {dimension_numbers = #tpu.dot_dimension_numbers<[1], [0], [0], [1], [0, 0, 1, 1], [], []>} : vector<64x288xbf16>, vector<288x32xbf16>, vector<64x32xf32> -> vector<64x32xf32>
    %c0_3 = arith.constant 0 : index
    %c0_4 = arith.constant 0 : index
    %3 = vector.load %arg2[%c0_3, %c0_4] : memref<1x32xf32, #tpu.memory_space<vmem>>, vector<1x32xf32>
    %4 = vector.broadcast %3 : vector<1x32xf32> to vector<64x32xf32>
    %5 = arith.addf %2, %4 : vector<64x32xf32>
    %cst_5 = arith.constant 0.000000e+00 : f32
    %6 = vector.broadcast %cst_5 : f32 to vector<64x32xf32>
    %7 = arith.maximumf %5, %6 : vector<64x32xf32>
    %8 = arith.truncf %7 : vector<64x32xf32> to vector<64x32xbf16>
    %c0_6 = arith.constant 0 : index
    %c0_7 = arith.constant 0 : index
    %9 = vector.load %arg3[%c0_6, %c0_7] : memref<64x32xbf16, #tpu.memory_space<vmem>>, vector<64x32xbf16>
    tpu.vector_store %arg3[%c0_6, %c0_7], %8 {strides = array<i32>} : memref<64x32xbf16, #tpu.memory_space<vmem>>, vector<64x32xbf16>,
    return
  }
}

module attributes {stable_mosaic.version = 11 : i64} {
  func.func @policy_mlp_kernel(%arg0: memref<2x1024xbf16, #tpu.memory_space<vmem>>, %arg1: memref<2x12xbf16, #tpu.memory_space<vmem>>, %arg2: memref<1024x500xbf16, #tpu.memory_space<vmem>>, %arg3: memref<1x500xf32, #tpu.memory_space<vmem>>, %arg4: memref<500x100xbf16, #tpu.memory_space<vmem>>, %arg5: memref<1x100xf32, #tpu.memory_space<vmem>>, %arg6: memref<100x50xbf16, #tpu.memory_space<vmem>>, %arg7: memref<1x50xf32, #tpu.memory_space<vmem>>, %arg8: memref<500x100xbf16, #tpu.memory_space<vmem>>, %arg9: memref<1x100xf32, #tpu.memory_space<vmem>>, %arg10: memref<100x50xbf16, #tpu.memory_space<vmem>>, %arg11: memref<1x50xf32, #tpu.memory_space<vmem>>, %arg12: memref<50x2xbf16, #tpu.memory_space<vmem>>, %arg13: memref<1x2xf32, #tpu.memory_space<vmem>>, %arg14: memref<50x2xbf16, #tpu.memory_space<vmem>>, %arg15: memref<1x2xf32, #tpu.memory_space<vmem>>, %arg16: memref<12x4xbf16, #tpu.memory_space<vmem>>, %arg17: memref<2x2xf32, #tpu.memory_space<vmem>>, %arg18: memref<2x2xf32, #tpu.memory_space<vmem>>) attributes {dimension_semantics = [], scalar_prefetch = 0 : i64, scratch_operands = 0 : i64, tpu.core_type = #tpu.core_type<tc>} {
    %c0 = arith.constant 0 : index
    %c0_0 = arith.constant 0 : index
    %0 = vector.load %arg0[%c0, %c0_0] : memref<2x1024xbf16, #tpu.memory_space<vmem>>, vector<2x1024xbf16>
    %c0_1 = arith.constant 0 : index
    %c0_2 = arith.constant 0 : index
    %1 = vector.load %arg2[%c0_1, %c0_2] : memref<1024x500xbf16, #tpu.memory_space<vmem>>, vector<1024x500xbf16>
    %cst = arith.constant dense<0.000000e+00> : vector<2x500xf32>
    %2 = tpu.matmul %0, %1, %cst {dimension_numbers = #tpu.dot_dimension_numbers<[1], [0], [0], [1], [0, 0, 1, 1], [], []>} : vector<2x1024xbf16>, vector<1024x500xbf16>, vector<2x500xf32> -> vector<2x500xf32>
    %c0_3 = arith.constant 0 : index
    %c0_4 = arith.constant 0 : index
    %3 = vector.load %arg3[%c0_3, %c0_4] : memref<1x500xf32, #tpu.memory_space<vmem>>, vector<1x500xf32>
    %4 = vector.broadcast %3 : vector<1x500xf32> to vector<2x500xf32>
    %5 = arith.addf %2, %4 : vector<2x500xf32>
    %cst_5 = arith.constant 0.000000e+00 : f32
    %6 = vector.broadcast %cst_5 : f32 to vector<2x500xf32>
    %7 = arith.maximumf %5, %6 : vector<2x500xf32>
    %8 = arith.truncf %7 : vector<2x500xf32> to vector<2x500xbf16>
    %c0_6 = arith.constant 0 : index
    %c0_7 = arith.constant 0 : index
    %9 = vector.load %arg4[%c0_6, %c0_7] : memref<500x100xbf16, #tpu.memory_space<vmem>>, vector<500x100xbf16>
    %cst_8 = arith.constant dense<0.000000e+00> : vector<2x100xf32>
    %10 = tpu.matmul %8, %9, %cst_8 {dimension_numbers = #tpu.dot_dimension_numbers<[1], [0], [0], [1], [0, 0, 1, 1], [], []>} : vector<2x500xbf16>, vector<500x100xbf16>, vector<2x100xf32> -> vector<2x100xf32>
    %c0_9 = arith.constant 0 : index
    %c0_10 = arith.constant 0 : index
    %11 = vector.load %arg5[%c0_9, %c0_10] : memref<1x100xf32, #tpu.memory_space<vmem>>, vector<1x100xf32>
    %12 = vector.broadcast %11 : vector<1x100xf32> to vector<2x100xf32>
    %13 = arith.addf %10, %12 : vector<2x100xf32>
    %cst_11 = arith.constant 0.000000e+00 : f32
    %14 = vector.broadcast %cst_11 : f32 to vector<2x100xf32>
    %15 = arith.maximumf %13, %14 : vector<2x100xf32>
    %16 = arith.truncf %15 : vector<2x100xf32> to vector<2x100xbf16>
    %c0_12 = arith.constant 0 : index
    %c0_13 = arith.constant 0 : index
    %17 = vector.load %arg6[%c0_12, %c0_13] : memref<100x50xbf16, #tpu.memory_space<vmem>>, vector<100x50xbf16>
    %cst_14 = arith.constant dense<0.000000e+00> : vector<2x50xf32>
    %18 = tpu.matmul %16, %17, %cst_14 {dimension_numbers = #tpu.dot_dimension_numbers<[1], [0], [0], [1], [0, 0, 1, 1], [], []>} : vector<2x100xbf16>, vector<100x50xbf16>, vector<2x50xf32> -> vector<2x50xf32>
    %c0_15 = arith.constant 0 : index
    %c0_16 = arith.constant 0 : index
    %19 = vector.load %arg7[%c0_15, %c0_16] : memref<1x50xf32, #tpu.memory_space<vmem>>, vector<1x50xf32>
    %20 = vector.broadcast %19 : vector<1x50xf32> to vector<2x50xf32>
    %21 = arith.addf %18, %20 : vector<2x50xf32>
    %cst_17 = arith.constant 0.000000e+00 : f32
    %22 = vector.broadcast %cst_17 : f32 to vector<2x50xf32>
    %23 = arith.maximumf %21, %22 : vector<2x50xf32>
    %24 = arith.truncf %23 : vector<2x50xf32> to vector<2x50xbf16>
    %c0_18 = arith.constant 0 : index
    %c0_19 = arith.constant 0 : index
    %25 = vector.load %arg8[%c0_18, %c0_19] : memref<500x100xbf16, #tpu.memory_space<vmem>>, vector<500x100xbf16>
    %cst_20 = arith.constant dense<0.000000e+00> : vector<2x100xf32>
    %26 = tpu.matmul %8, %25, %cst_20 {dimension_numbers = #tpu.dot_dimension_numbers<[1], [0], [0], [1], [0, 0, 1, 1], [], []>} : vector<2x500xbf16>, vector<500x100xbf16>, vector<2x100xf32> -> vector<2x100xf32>
    %c0_21 = arith.constant 0 : index
    %c0_22 = arith.constant 0 : index
    %27 = vector.load %arg9[%c0_21, %c0_22] : memref<1x100xf32, #tpu.memory_space<vmem>>, vector<1x100xf32>
    %28 = vector.broadcast %27 : vector<1x100xf32> to vector<2x100xf32>
    %29 = arith.addf %26, %28 : vector<2x100xf32>
    %cst_23 = arith.constant 0.000000e+00 : f32
    %30 = vector.broadcast %cst_23 : f32 to vector<2x100xf32>
    %31 = arith.maximumf %29, %30 : vector<2x100xf32>
    %32 = arith.truncf %31 : vector<2x100xf32> to vector<2x100xbf16>
    %c0_24 = arith.constant 0 : index
    %c0_25 = arith.constant 0 : index
    %33 = vector.load %arg10[%c0_24, %c0_25] : memref<100x50xbf16, #tpu.memory_space<vmem>>, vector<100x50xbf16>
    %cst_26 = arith.constant dense<0.000000e+00> : vector<2x50xf32>
    %34 = tpu.matmul %32, %33, %cst_26 {dimension_numbers = #tpu.dot_dimension_numbers<[1], [0], [0], [1], [0, 0, 1, 1], [], []>} : vector<2x100xbf16>, vector<100x50xbf16>, vector<2x50xf32> -> vector<2x50xf32>
    %c0_27 = arith.constant 0 : index
    %c0_28 = arith.constant 0 : index
    %35 = vector.load %arg11[%c0_27, %c0_28] : memref<1x50xf32, #tpu.memory_space<vmem>>, vector<1x50xf32>
    %36 = vector.broadcast %35 : vector<1x50xf32> to vector<2x50xf32>
    %37 = arith.addf %34, %36 : vector<2x50xf32>
    %cst_29 = arith.constant 0.000000e+00 : f32
    %38 = vector.broadcast %cst_29 : f32 to vector<2x50xf32>
    %39 = arith.maximumf %37, %38 : vector<2x50xf32>
    %40 = arith.truncf %39 : vector<2x50xf32> to vector<2x50xbf16>
    %c0_30 = arith.constant 0 : index
    %c0_31 = arith.constant 0 : index
    %41 = vector.load %arg1[%c0_30, %c0_31] : memref<2x12xbf16, #tpu.memory_space<vmem>>, vector<2x12xbf16>
    %c0_32 = arith.constant 0 : index
    %c0_33 = arith.constant 0 : index
    %42 = vector.load %arg16[%c0_32, %c0_33] : memref<12x4xbf16, #tpu.memory_space<vmem>>, vector<12x4xbf16>
    %cst_34 = arith.constant dense<0.000000e+00> : vector<2x4xf32>
    %43 = tpu.matmul %41, %42, %cst_34 {dimension_numbers = #tpu.dot_dimension_numbers<[1], [0], [0], [1], [0, 0, 1, 1], [], []>} : vector<2x12xbf16>, vector<12x4xbf16>, vector<2x4xf32> -> vector<2x4xf32>
    %c0_35 = arith.constant 0 : index
    %c0_36 = arith.constant 0 : index
    %44 = vector.load %arg12[%c0_35, %c0_36] : memref<50x2xbf16, #tpu.memory_space<vmem>>, vector<50x2xbf16>
    %cst_37 = arith.constant dense<0.000000e+00> : vector<2x2xf32>
    %45 = tpu.matmul %24, %44, %cst_37 {dimension_numbers = #tpu.dot_dimension_numbers<[1], [0], [0], [1], [0, 0, 1, 1], [], []>} : vector<2x50xbf16>, vector<50x2xbf16>, vector<2x2xf32> -> vector<2x2xf32>
    %46 = vector.extract_strided_slice %43 {offsets = [0, 0], sizes = [2, 2], strides = [1, 1]} : vector<2x4xf32> to vector<2x2xf32>
    %47 = arith.addf %45, %46 : vector<2x2xf32>
    %c0_38 = arith.constant 0 : index
    %c0_39 = arith.constant 0 : index
    %48 = vector.load %arg13[%c0_38, %c0_39] : memref<1x2xf32, #tpu.memory_space<vmem>>, vector<1x2xf32>
    %49 = vector.broadcast %48 : vector<1x2xf32> to vector<2x2xf32>
    %50 = arith.addf %47, %49 : vector<2x2xf32>
    %c0_40 = arith.constant 0 : index
    %c0_41 = arith.constant 0 : index
    %51 = vector.load %arg14[%c0_40, %c0_41] : memref<50x2xbf16, #tpu.memory_space<vmem>>, vector<50x2xbf16>
    %cst_42 = arith.constant dense<0.000000e+00> : vector<2x2xf32>
    %52 = tpu.matmul %40, %51, %cst_42 {dimension_numbers = #tpu.dot_dimension_numbers<[1], [0], [0], [1], [0, 0, 1, 1], [], []>} : vector<2x50xbf16>, vector<50x2xbf16>, vector<2x2xf32> -> vector<2x2xf32>
    %53 = vector.extract_strided_slice %43 {offsets = [0, 2], sizes = [2, 2], strides = [1, 1]} : vector<2x4xf32> to vector<2x2xf32>
    %54 = arith.addf %52, %53 : vector<2x2xf32>
    %c0_43 = arith.constant 0 : index
    %c0_44 = arith.constant 0 : index
    %55 = vector.load %arg15[%c0_43, %c0_44] : memref<1x2xf32, #tpu.memory_space<vmem>>, vector<1x2xf32>
    %56 = vector.broadcast %55 : vector<1x2xf32> to vector<2x2xf32>
    %57 = arith.addf %54, %56 : vector<2x2xf32>
    %c0_45 = arith.constant 0 : index
    %c0_46 = arith.constant 0 : index
    %58 = vector.load %arg17[%c0_45, %c0_46] : memref<2x2xf32, #tpu.memory_space<vmem>>, vector<2x2xf32>
    tpu.vector_store %arg17[%c0_45, %c0_46], %50 {strides = array<i32>} : memref<2x2xf32, #tpu.memory_space<vmem>>, vector<2x2xf32>,
    %cst_47 = arith.constant -2.000000e+01 : f32
    %cst_48 = arith.constant 2.000000e+00 : f32
    %59 = vector.broadcast %cst_47 : f32 to vector<2x2xf32>
    %60 = arith.maximumf %59, %57 : vector<2x2xf32>
    %61 = vector.broadcast %cst_48 : f32 to vector<2x2xf32>
    %62 = arith.minimumf %61, %60 : vector<2x2xf32>
    %c0_49 = arith.constant 0 : index
    %c0_50 = arith.constant 0 : index
    %63 = vector.load %arg18[%c0_49, %c0_50] : memref<2x2xf32, #tpu.memory_space<vmem>>, vector<2x2xf32>
    tpu.vector_store %arg18[%c0_49, %c0_50], %62 {strides = array<i32>} : memref<2x2xf32, #tpu.memory_space<vmem>>, vector<2x2xf32>,
    return
  }
}

</mosaic_0001>

<bundles_post_ra>
// kernel: policy_forward.4
= control target key start
LH: loop header
LB: loop body
LE: loop exit
PB: predicated region body
PF: predicated region fallthrough
CT: control target
= control target key end

     0   :  { %vm774_vm0 = vcmask 818176   ;;  %vm1075_vm1 = vcmask 1041408   ;;  %vm2912_vm2 = vcmask 257024   ;;  %vm3112_vm3 = vcmask 254976   ;;  %s5622_s1 = inlined_call_operand.vmem [shape: bf16[100,32], index: 1, kind: input, shape index: {}]   ;;  %s5623_s0 = inlined_call_operand.vmem [shape: bf16[1596,100], index: 0, kind: input, shape index: {}]   ;;  %s5624_s2 = inlined_call_operand.vmem [shape: f32[1,32], index: 2, kind: input, shape index: {}]   ;;  %s5625_s3 = inlined_call_operand.vmem [shape: bf16[1596,32], index: 3, kind: output, shape index: {}]  }
   0x1   :  { %v4063_v0 = vld [vmem:[%s5622_s1] sm:$0xff]   ;;  %v4064_v1 = vld [vmem:[%s5622_s1 + $0x8] sm:$0xff]   ;;  %v4065_v2 = vld [vmem:[%s5622_s1 + $0x10] sm:$0xff]  }
   0x2   :  { %3833 = vmatprep.subr.bf16.mxu0 %v4063_v0  ;;  %4047 = vmatprep.subr.bf16.mxu1 %v4063_v0  ;;  %v4066_v3 = vld [vmem:[%s5622_s1 + $0x18] sm:$0xff]   ;;  %v4070_v4 = vld [vmem:[%s5623_s0] sm:$0xff]   ;;  %v4071_v5 = vld [vmem:[%s5623_s0 + $0x190] sm:$0xff]  }
   0x3   :  { %3834 = vmatpush3.bf16.msra.mxu0 %v4063_v0  ;;  %4054 = vmatpush3.bf16.msra.mxu1 %v4063_v0  ;;  %v4067_v6 = vld [vmem:[%s5622_s1 + $0x20] sm:$0xff]   ;;  %v4068_v7 = vld [vmem:[%s5622_s1 + $0x28] sm:$0xff]   ;;  %v4069_v8 = vld [vmem:[%s5622_s1 + $0x30] ss:$0 sps:$4 sm:$0x33]  }
   0x4   :  { %3835 = vmatprep.subr.bf16.mxu0 %v4064_v1  ;;  %4048 = vmatprep.subr.bf16.mxu1 %v4064_v1  ;;  %v1077_v9 = vsel %vm1075_vm1, %v4069_v8, 0  ;;  %v4072_v10 = vld [vmem:[%s5623_s0 + $0x8] sm:$0xff]   ;;  %v4073_v11 = vld [vmem:[%s5623_s0 + $0x198] sm:$0xff]   ;;  %v4074_v12 = vld [vmem:[%s5623_s0 + $0x10] sm:$0xff]  }
   0x5   :  { %3847 = vmatprep.mubr.msk.bf16.mxu0 %vm774_vm0, %v4070_v4  ;;  %3947 = vmatprep.mubr.msk.bf16.mxu1 %vm774_vm0, %v4071_v5  ;;  %v4075_v13 = vld [vmem:[%s5623_s0 + $0x1a0] sm:$0xff]   ;;  %v4076_v14 = vld [vmem:[%s5623_s0 + $0x18] sm:$0xff]   ;;  %v4077_v15 = vld [vmem:[%s5623_s0 + $0x1a8] sm:$0xff]  }
   0x6   :  { %v4078_v16 = vld [vmem:[%s5623_s0 + $0x20] sm:$0xff]   ;;  %v4079_v17 = vld [vmem:[%s5623_s0 + $0x1b0] sm:$0xff]   ;;  %v4080_v18 = vld [vmem:[%s5623_s0 + $0x28] sm:$0xff]  }
   0x7   :  { %3836 = vmatpush3.bf16.msra.mxu0 %v4064_v1  ;;  %4055 = vmatpush3.bf16.msra.mxu1 %v4064_v1  ;;  %v4081_v19 = vld [vmem:[%s5623_s0 + $0x1b8] sm:$0xff]   ;;  %v4082_v20 = vld [vmem:[%s5623_s0 + $0x30] sm:$0xff]   ;;  %v4083_v21 = vld [vmem:[%s5623_s0 + $0x1c0] sm:$0xff]  }
   0x8   :  { %3837 = vmatprep.subr.bf16.mxu0 %v4065_v2  ;;  %4049 = vmatprep.subr.bf16.mxu1 %v4065_v2  ;;  %v4084_v22 = vld [vmem:[%s5623_s0 + $0x38] sm:$0xff]   ;;  %v4085_v23 = vld [vmem:[%s5623_s0 + $0x1c8] sm:$0xff]   ;;  %v4086_v24 = vld [vmem:[%s5623_s0 + $0x40] sm:$0xff]  }
   0x9   :  { %v4087_v25 = vld [vmem:[%s5623_s0 + $0x1d0] sm:$0xff]   ;;  %v4088_v26 = vld [vmem:[%s5623_s0 + $0x48] sm:$0xff]   ;;  %v4089_v27 = vld [vmem:[%s5623_s0 + $0x1d8] sm:$0xff]  }
   0xa   :  { %v4090_v28 = vld [vmem:[%s5623_s0 + $0x50] sm:$0xff]   ;;  %v4091_v29 = vld [vmem:[%s5623_s0 + $0x1e0] sm:$0xff]   ;;  %v4092_v30 = vld [vmem:[%s5623_s0 + $0x58] sm:$0xff]  }
   0xb   :  { %3838 = vmatpush3.bf16.msra.mxu0 %v4065_v2  ;;  %4056 = vmatpush3.bf16.msra.mxu1 %v4065_v2  ;;  %v4093_v31 = vld [vmem:[%s5623_s0 + $0x1e8] sm:$0xff]   ;;  %v4094_v32 = vld [vmem:[%s5623_s0 + $0x60] sm:$0xff]   ;;  %v4095_v33 = vld [vmem:[%s5623_s0 + $0x1f0] sm:$0xff]  }
   0xc   :  { %3839 = vmatprep.subr.bf16.mxu0 %v4066_v3  ;;  %4050 = vmatprep.subr.bf16.mxu1 %v4066_v3  ;;  %v4096_v34 = vld [vmem:[%s5623_s0 + $0x68] sm:$0xff]   ;;  %v4097_v35 = vld [vmem:[%s5623_s0 + $0x1f8] sm:$0xff]   ;;  %v4098_v36 = vld [vmem:[%s5623_s0 + $0x70] sm:$0xff]  }
   0xd   :  { %v4099_v37 = vld [vmem:[%s5623_s0 + $0x200] sm:$0xff]   ;;  %v4100_v38 = vld [vmem:[%s5623_s0 + $0x78] sm:$0xff]   ;;  %v4101_v39 = vld [vmem:[%s5623_s0 + $0x208] sm:$0xff]  }
   0xe   :  { %v4102_v40 = vld [vmem:[%s5623_s0 + $0x80] sm:$0xff]   ;;  %v4103_v41 = vld [vmem:[%s5623_s0 + $0x210] sm:$0xff]   ;;  %v4104_v42 = vld [vmem:[%s5623_s0 + $0x88] sm:$0xff]  }
   0xf   :  { %3840 = vmatpush3.bf16.msra.mxu0 %v4066_v3  ;;  %4057 = vmatpush3.bf16.msra.mxu1 %v4066_v3  ;;  %v4105_v43 = vld [vmem:[%s5623_s0 + $0x218] sm:$0xff]   ;;  %v4106_v44 = vld [vmem:[%s5623_s0 + $0x90] sm:$0xff]   ;;  %v4107_v45 = vld [vmem:[%s5623_s0 + $0x220] sm:$0xff]  }
  0x10   :  { %3841 = vmatprep.subr.bf16.mxu0 %v4067_v6  ;;  %4051 = vmatprep.subr.bf16.mxu1 %v4067_v6  ;;  %v4108_v46 = vld [vmem:[%s5623_s0 + $0x98] sm:$0xff]   ;;  %v4109_v47 = vld [vmem:[%s5623_s0 + $0x228] sm:$0xff]   ;;  %v4110_v48 = vld [vmem:[%s5623_s0 + $0xa0] sm:$0xff]  }
  0x11   :  { %v4111_v49 = vld [vmem:[%s5623_s0 + $0x230] sm:$0xff]   ;;  %v4112_v50 = vld [vmem:[%s5623_s0 + $0xa8] sm:$0xff]   ;;  %v4113_v51 = vld [vmem:[%s5623_s0 + $0x238] sm:$0xff]  }
  0x12   :  { %v4114_v52 = vld [vmem:[%s5623_s0 + $0xb0] sm:$0xff]   ;;  %v4115_v53 = vld [vmem:[%s5623_s0 + $0x240] sm:$0xff]   ;;  %v4116_v54 = vld [vmem:[%s5623_s0 + $0xb8] sm:$0xff]  }
  0x13   :  { %3842 = vmatpush3.bf16.msra.mxu0 %v4067_v6  ;;  %4058 = vmatpush3.bf16.msra.mxu1 %v4067_v6  ;;  %v4117_v55 = vld [vmem:[%s5623_s0 + $0x248] sm:$0xff]   ;;  %v4118_v56 = vld [vmem:[%s5623_s0 + $0xc0] sm:$0xff]   ;;  %v4119_v57 = vld [vmem:[%s5623_s0 + $0x250] sm:$0xff]  }
  0x14   :  { %3843 = vmatprep.subr.bf16.mxu0 %v4068_v7  ;;  %4052 = vmatprep.subr.bf16.mxu1 %v4068_v7  ;;  %v4120_v58 = vld [vmem:[%s5623_s0 + $0xc8] sm:$0xff]   ;;  %v4121_v59 = vld [vmem:[%s5623_s0 + $0x258] sm:$0xff]   ;;  %v4122_v60 = vld [vmem:[%s5623_s0 + $0xd0] sm:$0xff]  }
  0x15   :  { %v4123_v61 = vld [vmem:[%s5623_s0 + $0x260] sm:$0xff]   ;;  %v4124_v62 = vld [vmem:[%s5623_s0 + $0xd8] sm:$0xff]   ;;  %v4125_v63 = vld [vmem:[%s5623_s0 + $0x268] sm:$0xff]  }
  0x16   :  { %v4126_v0 = vld [vmem:[%s5623_s0 + $0xe0] sm:$0xff]   ;;  %v4127_v1 = vld [vmem:[%s5623_s0 + $0x270] sm:$0xff]   ;;  %v4128_v2 = vld [vmem:[%s5623_s0 + $0xe8] sm:$0xff]  }
  0x17   :  { %3844 = vmatpush3.bf16.msra.mxu0 %v4068_v7  ;;  %4059 = vmatpush3.bf16.msra.mxu1 %v4068_v7  ;;  %v4129_v3 = vld [vmem:[%s5623_s0 + $0x278] sm:$0xff]   ;;  %v4130_v4 = vld [vmem:[%s5623_s0 + $0xf0] sm:$0xff]   ;;  %v4131_v5 = vld [vmem:[%s5623_s0 + $0x280] sm:$0xff]  }
  0x18   :  { %4061 = vmatprep.subr.msk.bf16.mxu0 %vm1075_vm1, %v4069_v8  ;;  %4062 = vmatprep.subr.msk.bf16.mxu1 %vm1075_vm1, %v4069_v8  ;;  %v4132_v6 = vld [vmem:[%s5623_s0 + $0xf8] sm:$0xff]   ;;  %v4133_v7 = vld [vmem:[%s5623_s0 + $0x288] sm:$0xff]   ;;  %v4134_v8 = vld [vmem:[%s5623_s0 + $0x100] sm:$0xff]  }
  0x1b   :  { %3846 = vmatpush3.bf16.msra.mxu0 %v1077_v9  ;;  %4060 = vmatpush3.bf16.msra.mxu1 %v1077_v9  ;;  %v4135_v9 = vld [vmem:[%s5623_s0 + $0x290] sm:$0xff]  }
  0x1e   :  { %3848 = vmatmul.mubr.msk.bf16.vlgmr.msra.gmra.mrb[0].mxu0 %vm774_vm0, %v4072_v10  ;;  %3948 = vmatmul.mubr.msk.bf16.vlgmr.msra.gmra.mrb[0].mxu1 %vm774_vm0, %v4073_v11  ;;  %v4136_v10 = vld [vmem:[%s5623_s0 + $0x108] sm:$0xff]   ;;  %v4137_v11 = vld [vmem:[%s5623_s0 + $0x298] sm:$0xff]  }
  0x1f   :  { %3851 = vmatprep.mubr.msk.bf16.mxu0 %vm774_vm0, %v4074_v12  ;;  %3951 = vmatprep.mubr.msk.bf16.mxu1 %vm774_vm0, %v4075_v13  ;;  %v4138_v12 = vld [vmem:[%s5623_s0 + $0x110] sm:$0xff]   ;;  %v4139_v13 = vld [vmem:[%s5623_s0 + $0x2a0] sm:$0xff]  }
  0x26   :  { %3852 = vmatmul.mubr.msk.bf16.gmra.mrb[4].mxu0 %vm774_vm0, %v4076_v14  ;;  %3952 = vmatmul.mubr.msk.bf16.gmra.mrb[4].mxu1 %vm774_vm0, %v4077_v15  ;;  %v4140_v14 = vld [vmem:[%s5623_s0 + $0x118] sm:$0xff]   ;;  %v4141_v15 = vld [vmem:[%s5623_s0 + $0x2a8] sm:$0xff]  }
  0x27   :  { %3855 = vmatprep.mubr.msk.bf16.mxu0 %vm774_vm0, %v4078_v16  ;;  %3955 = vmatprep.mubr.msk.bf16.mxu1 %vm774_vm0, %v4079_v17  ;;  %v4142_v16 = vld [vmem:[%s5623_s0 + $0x120] sm:$0xff]   ;;  %v4143_v17 = vld [vmem:[%s5623_s0 + $0x2b0] sm:$0xff]  }
  0x2e   :  { %3856 = vmatmul.mubr.msk.bf16.gmra.mrb[8].mxu0 %vm774_vm0, %v4080_v18  ;;  %3956 = vmatmul.mubr.msk.bf16.gmra.mrb[8].mxu1 %vm774_vm0, %v4081_v19  ;;  %v4144_v18 = vld [vmem:[%s5623_s0 + $0x128] sm:$0xff]   ;;  %v4145_v19 = vld [vmem:[%s5623_s0 + $0x2b8] sm:$0xff]  }
  0x2f   :  { %3859 = vmatprep.mubr.msk.bf16.mxu0 %vm774_vm0, %v4082_v20  ;;  %3959 = vmatprep.mubr.msk.bf16.mxu1 %vm774_vm0, %v4083_v21  ;;  %v4146_v20 = vld [vmem:[%s5623_s0 + $0x130] sm:$0xff]   ;;  %v4147_v21 = vld [vmem:[%s5623_s0 + $0x2c0] sm:$0xff]  }
  0x36   :  { %3860 = vmatmul.mubr.msk.bf16.gmra.mrb[12].mxu0 %vm774_vm0, %v4084_v22  ;;  %3960 = vmatmul.mubr.msk.bf16.gmra.mrb[12].mxu1 %vm774_vm0, %v4085_v23  ;;  %v4148_v22 = vld [vmem:[%s5623_s0 + $0x138] sm:$0xff]   ;;  %v4149_v23 = vld [vmem:[%s5623_s0 + $0x2c8] sm:$0xff]  }
  0x37   :  { %3863 = vmatprep.mubr.msk.bf16.mxu0 %vm774_vm0, %v4086_v24  ;;  %3963 = vmatprep.mubr.msk.bf16.mxu1 %vm774_vm0, %v4087_v25  ;;  %v4150_v24 = vld [vmem:[%s5623_s0 + $0x140] sm:$0xff]   ;;  %v4151_v25 = vld [vmem:[%s5623_s0 + $0x2d0] sm:$0xff]  }
  0x3e   :  { %3864 = vmatmul.mubr.msk.bf16.gmra.mrb[16].mxu0 %vm774_vm0, %v4088_v26  ;;  %3964 = vmatmul.mubr.msk.bf16.gmra.mrb[16].mxu1 %vm774_vm0, %v4089_v27  ;;  %v4152_v26 = vld [vmem:[%s5623_s0 + $0x148] sm:$0xff]   ;;  %v4153_v27 = vld [vmem:[%s5623_s0 + $0x2d8] sm:$0xff]  }
  0x3f   :  { %3867 = vmatprep.mubr.msk.bf16.mxu0 %vm774_vm0, %v4090_v28  ;;  %3967 = vmatprep.mubr.msk.bf16.mxu1 %vm774_vm0, %v4091_v29  ;;  %v4154_v28 = vld [vmem:[%s5623_s0 + $0x150] sm:$0xff]   ;;  %v4155_v29 = vld [vmem:[%s5623_s0 + $0x2e0] sm:$0xff]  }
  0x46   :  { %3868 = vmatmul.mubr.msk.bf16.gmra.mrb[20].mxu0 %vm774_vm0, %v4092_v30  ;;  %3968 = vmatmul.mubr.msk.bf16.gmra.mrb[20].mxu1 %vm774_vm0, %v4093_v31  ;;  %v4156_v30 = vld [vmem:[%s5623_s0 + $0x158] sm:$0xff]   ;;  %v4157_v31 = vld [vmem:[%s5623_s0 + $0x2e8] sm:$0xff]  }
  0x47   :  { %3871 = vmatprep.mubr.msk.bf16.mxu0 %vm774_vm0, %v4094_v32  ;;  %3971 = vmatprep.mubr.msk.bf16.mxu1 %vm774_vm0, %v4095_v33  ;;  %v4158_v32 = vld [vmem:[%s5623_s0 + $0x160] sm:$0xff]   ;;  %v4159_v33 = vld [vmem:[%s5623_s0 + $0x2f0] sm:$0xff]  }
  0x4e   :  { %3872 = vmatmul.mubr.msk.bf16.gmra.mrb[24].mxu0 %vm774_vm0, %v4096_v34  ;;  %3972 = vmatmul.mubr.msk.bf16.gmra.mrb[24].mxu1 %vm774_vm0, %v4097_v35  ;;  %v4160_v34 = vld [vmem:[%s5623_s0 + $0x168] sm:$0xff]   ;;  %v4161_v35 = vld [vmem:[%s5623_s0 + $0x2f8] sm:$0xff]  }
  0x4f   :  { %3875 = vmatprep.mubr.msk.bf16.mxu0 %vm774_vm0, %v4098_v36  ;;  %3975 = vmatprep.mubr.msk.bf16.mxu1 %vm774_vm0, %v4099_v37  ;;  %v4162_v36 = vld [vmem:[%s5623_s0 + $0x170] sm:$0xff]   ;;  %v4163_v37 = vld [vmem:[%s5623_s0 + $0x300] sm:$0xff]  }
  0x56   :  { %3876 = vmatmul.mubr.msk.bf16.gmra.mrb[28].mxu0 %vm774_vm0, %v4100_v38  ;;  %3976 = vmatmul.mubr.msk.bf16.gmra.mrb[28].mxu1 %vm774_vm0, %v4101_v39  ;;  %v4164_v38 = vld [vmem:[%s5623_s0 + $0x178] sm:$0xff]   ;;  %v4165_v39 = vld [vmem:[%s5623_s0 + $0x308] sm:$0xff]  }
  0x57   :  { %3879 = vmatprep.mubr.msk.bf16.mxu0 %vm774_vm0, %v4102_v40  ;;  %3979 = vmatprep.mubr.msk.bf16.mxu1 %vm774_vm0, %v4103_v41  ;;  %v4166_v40 = vld [vmem:[%s5623_s0 + $0x180] sm:$0xff]   ;;  %v4167_v41 = vld [vmem:[%s5623_s0 + $0x310] sm:$0xff]  }
  0x5e   :  { %3880 = vmatmul.mubr.msk.bf16.gmra.mrb[32].mxu0 %vm774_vm0, %v4104_v42  ;;  %3980 = vmatmul.mubr.msk.bf16.gmra.mrb[32].mxu1 %vm774_vm0, %v4105_v43  ;;  %v4168_v42 = vld [vmem:[%s5623_s0 + $0x188] sm:$0xff]   ;;  %v4169_v43 = vld [vmem:[%s5623_s0 + $0x318] sm:$0x3f]  }
  0x5f   :  { %3883 = vmatprep.mubr.msk.bf16.mxu0 %vm774_vm0, %v4106_v44  ;;  %3983 = vmatprep.mubr.msk.bf16.mxu1 %vm774_vm0, %v4107_v45  ;;  %v4615_v44 = vld [vmem:[%s5624_s2] ss:$0 sm:$0xff] }
  0x66   :  { %3884 = vmatmul.mubr.msk.bf16.gmra.mrb[36].mxu0 %vm774_vm0, %v4108_v46  ;;  %3984 = vmatmul.mubr.msk.bf16.gmra.mrb[36].mxu1 %vm774_vm0, %v4109_v47 }
  0x67   :  { %3887 = vmatprep.mubr.msk.bf16.mxu0 %vm774_vm0, %v4110_v48  ;;  %3987 = vmatprep.mubr.msk.bf16.mxu1 %vm774_vm0, %v4111_v49 }
  0x6e   :  { %3888 = vmatmul.mubr.msk.bf16.gmra.mrb[40].mxu0 %vm774_vm0, %v4112_v50  ;;  %3988 = vmatmul.mubr.msk.bf16.gmra.mrb[40].mxu1 %vm774_vm0, %v4113_v51 }
  0x6f   :  { %3891 = vmatprep.mubr.msk.bf16.mxu0 %vm774_vm0, %v4114_v52  ;;  %3991 = vmatprep.mubr.msk.bf16.mxu1 %vm774_vm0, %v4115_v53 }
  0x76   :  { %3892 = vmatmul.mubr.msk.bf16.gmra.mrb[44].mxu0 %vm774_vm0, %v4116_v54  ;;  %3992 = vmatmul.mubr.msk.bf16.gmra.mrb[44].mxu1 %vm774_vm0, %v4117_v55 }
  0x77   :  { %3895 = vmatprep.mubr.msk.bf16.mxu0 %vm774_vm0, %v4118_v56  ;;  %3995 = vmatprep.mubr.msk.bf16.mxu1 %vm774_vm0, %v4119_v57 }
  0x7e   :  { %3896 = vmatmul.mubr.msk.bf16.gmra.mrb[48].mxu0 %vm774_vm0, %v4120_v58  ;;  %3996 = vmatmul.mubr.msk.bf16.gmra.mrb[48].mxu1 %vm774_vm0, %v4121_v59 }
  0x7f   :  { %3899 = vmatprep.mubr.msk.bf16.mxu0 %vm774_vm0, %v4122_v60  ;;  %3999 = vmatprep.mubr.msk.bf16.mxu1 %vm774_vm0, %v4123_v61 }
  0x86   :  { %3900 = vmatmul.mubr.msk.bf16.gmra.mrb[52].mxu0 %vm774_vm0, %v4124_v62  ;;  %4000 = vmatmul.mubr.msk.bf16.gmra.mrb[52].mxu1 %vm774_vm0, %v4125_v63 }
  0x87   :  { %3903 = vmatprep.mubr.msk.bf16.mxu0 %vm774_vm0, %v4126_v0  ;;  %4003 = vmatprep.mubr.msk.bf16.mxu1 %vm774_vm0, %v4127_v1 }
  0x8e   :  { %3904 = vmatmul.mubr.msk.bf16.gmra.mrb[56].mxu0 %vm774_vm0, %v4128_v2  ;;  %4004 = vmatmul.mubr.msk.bf16.gmra.mrb[56].mxu1 %vm774_vm0, %v4129_v3 }
  0x8f   :  { %3907 = vmatprep.mubr.msk.bf16.mxu0 %vm774_vm0, %v4130_v4  ;;  %4007 = vmatprep.mubr.msk.bf16.mxu1 %vm774_vm0, %v4131_v5 }
  0x96   :  { %3908 = vmatmul.mubr.msk.bf16.gmra.mrb[60].mxu0 %vm774_vm0, %v4132_v6  ;;  %4008 = vmatmul.mubr.msk.bf16.gmra.mrb[60].mxu1 %vm774_vm0, %v4133_v7 }
  0x97   :  { %3911 = vmatprep.mubr.msk.bf16.mxu0 %vm774_vm0, %v4134_v8  ;;  %4011 = vmatprep.mubr.msk.bf16.mxu1 %vm774_vm0, %v4135_v9 }
  0x9e   :  { %3912 = vmatmul.mubr.msk.bf16.gmra.mrb[64].mxu0 %vm774_vm0, %v4136_v10  ;;  %4012 = vmatmul.mubr.msk.bf16.gmra.mrb[64].mxu1 %vm774_vm0, %v4137_v11 }
  0x9f   :  { %3915 = vmatprep.mubr.msk.bf16.mxu0 %vm774_vm0, %v4138_v12  ;;  %4015 = vmatprep.mubr.msk.bf16.mxu1 %vm774_vm0, %v4139_v13 }
  0xa6   :  { %3916 = vmatmul.mubr.msk.bf16.gmra.mrb[68].mxu0 %vm774_vm0, %v4140_v14  ;;  %4016 = vmatmul.mubr.msk.bf16.gmra.mrb[68].mxu1 %vm774_vm0, %v4141_v15 }
  0xa7   :  { %3919 = vmatprep.mubr.msk.bf16.mxu0 %vm774_vm0, %v4142_v16  ;;  %4019 = vmatprep.mubr.msk.bf16.mxu1 %vm774_vm0, %v4143_v17 }
  0xae   :  { %3920 = vmatmul.mubr.msk.bf16.gmra.mrb[72].mxu0 %vm774_vm0, %v4144_v18  ;;  %4020 = vmatmul.mubr.msk.bf16.gmra.mrb[72].mxu1 %vm774_vm0, %v4145_v19 }
  0xaf   :  { %3923 = vmatprep.mubr.msk.bf16.mxu0 %vm774_vm0, %v4146_v20  ;;  %4023 = vmatprep.mubr.msk.bf16.mxu1 %vm774_vm0, %v4147_v21 }
  0xb6   :  { %3924 = vmatmul.mubr.msk.bf16.gmra.mrb[76].mxu0 %vm774_vm0, %v4148_v22  ;;  %4024 = vmatmul.mubr.msk.bf16.gmra.mrb[76].mxu1 %vm774_vm0, %v4149_v23 }
  0xb7   :  { %3927 = vmatprep.mubr.msk.bf16.mxu0 %vm774_vm0, %v4150_v24  ;;  %4027 = vmatprep.mubr.msk.bf16.mxu1 %vm774_vm0, %v4151_v25 }
  0xbe   :  { %3928 = vmatmul.mubr.msk.bf16.gmra.mrb[80].mxu0 %vm774_vm0, %v4152_v26  ;;  %4028 = vmatmul.mubr.msk.bf16.gmra.mrb[80].mxu1 %vm774_vm0, %v4153_v27 }
  0xbf   :  { %3931 = vmatprep.mubr.msk.bf16.mxu0 %vm774_vm0, %v4154_v28  ;;  %4031 = vmatprep.mubr.msk.bf16.mxu1 %vm774_vm0, %v4155_v29 }
  0xc6   :  { %3932 = vmatmul.mubr.msk.bf16.gmra.mrb[84].mxu0 %vm774_vm0, %v4156_v30  ;;  %4032 = vmatmul.mubr.msk.bf16.gmra.mrb[84].mxu1 %vm774_vm0, %v4157_v31 }
  0xc7   :  { %3935 = vmatprep.mubr.msk.bf16.mxu0 %vm774_vm0, %v4158_v32  ;;  %4035 = vmatprep.mubr.msk.bf16.mxu1 %vm774_vm0, %v4159_v33 }
  0xce   :  { %3936 = vmatmul.mubr.msk.bf16.gmra.mrb[88].mxu0 %vm774_vm0, %v4160_v34  ;;  %4036 = vmatmul.mubr.msk.bf16.gmra.mrb[88].mxu1 %vm774_vm0, %v4161_v35 }
  0xcf   :  { %3939 = vmatprep.mubr.msk.bf16.mxu0 %vm774_vm0, %v4162_v36  ;;  %4039 = vmatprep.mubr.msk.bf16.mxu1 %vm774_vm0, %v4163_v37 }
  0xd6   :  { %3940 = vmatmul.mubr.msk.bf16.gmra.mrb[92].mxu0 %vm774_vm0, %v4164_v38  ;;  %4040 = vmatmul.mubr.msk.bf16.gmra.mrb[92].mxu1 %vm774_vm0, %v4165_v39 }
  0xd7   :  { %3943 = vmatprep.mubr.msk.bf16.mxu0 %vm774_vm0, %v4166_v40  ;;  %4043 = vmatprep.mubr.msk.bf16.mxu1 %vm774_vm0, %v4167_v41 }
  0xde   :  { %3944 = vmatmul.mubr.msk.bf16.gmra.mrb[96].mxu0 %vm774_vm0, %v4168_v42  ;;  %4044 = vmatmul.mubr.msk.bf16.gmra.mrb[96].mxu1 %vm774_vm0, %v4169_v43 }
  0xf1   :  { %v3849_v45 = vpop.f32.mrb[0].mxu0  ;;  %v3949_v46 = vpop.f32.mrb[0].mxu1 }
  0xf2   :  { %v1122_v47 = vadd.f32 %v3849_v45, %v4615_v44  ;;  %v1522_v48 = vadd.f32 %v3949_v46, %v4615_v44  ;;  %v1113_v49 = vpop.f32.mrb[1].mxu0  ;;  %v1513_v50 = vpop.f32.mrb[1].mxu1 }
  0xf3   :  { %v1114_v51 = vadd.f32 %v4615_v44, %v1113_v49  ;;  %v1514_v52 = vadd.f32 %v4615_v44, %v1513_v50  ;;  %v3850_v53 = vpop.f32.mrb[2].mxu0  ;;  %v3950_v54 = vpop.f32.mrb[2].mxu1 }
  0xf4   :  { %v1914_v55 = vmax.f32 %v1122_v47, 0.0  ;;  %v2014_v56 = vmax.f32 %v1522_v48, 0.0  ;;  %v1125_v57 = vadd.f32 %v3850_v53, %v4615_v44  ;;  %v1525_v58 = vadd.f32 %v3950_v54, %v4615_v44  ;;  %v1116_v59 = vpop.f32.mrb[3].mxu0  ;;  %v1516_v60 = vpop.f32.mrb[3].mxu1 }
  0xf5   :  { %v1912_v61 = vmax.f32 %v1114_v51, 0.0  ;;  %v2012_v62 = vmax.f32 %v1514_v52, 0.0  ;;  %v1117_v63 = vadd.f32 %v4615_v44, %v1116_v59  ;;  %v1517_v0 = vadd.f32 %v4615_v44, %v1516_v60 }
  0xf6   :  { %v3528_v1 = vpack.c.bf16 %v1914_v55, %v1914_v55  ;;  %v3628_v2 = vpack.c.bf16 %v2014_v56, %v2014_v56  ;;  %v1915_v3 = vmax.f32 %v1125_v57, 0.0  ;;  %v2015_v4 = vmax.f32 %v1525_v58, 0.0 }
  0xf7   :  { %v3526_v5 = vpack.c.bf16 %v1912_v61, %v1912_v61  ;;  %v3626_v6 = vpack.c.bf16 %v2012_v62, %v2012_v62  ;;  %v1913_v7 = vmax.f32 %v1117_v63, 0.0  ;;  %v2013_v8 = vmax.f32 %v1517_v0, 0.0 }
  0xf8   :  { %2915 = vst.msk [vmem:[%s5625_s3 + $0x8] sm:$0xf] %vm2912_vm2, %v3528_v1  ;;  %3015 = vst.msk [vmem:[%s5625_s3 + $0x198] sm:$0xf] %vm2912_vm2, %v3628_v2  ;;  %v3529_v9 = vpack.c.bf16 %v1915_v3, %v1915_v3  ;;  %v3629_v10 = vpack.c.bf16 %v2015_v4, %v2015_v4 }
  0xf9   :  { %2913 = vst.msk [vmem:[%s5625_s3] sm:$0xf] %vm2912_vm2, %v3526_v5  ;;  %3013 = vst.msk [vmem:[%s5625_s3 + $0x190] sm:$0xf] %vm2912_vm2, %v3626_v6  ;;  %v3527_v11 = vpack.c.bf16 %v1913_v7, %v1913_v7  ;;  %v3627_v12 = vpack.c.bf16 %v2013_v8, %v2013_v8  ;;  %v3853_v13 = vpop.f32.mrb[4].mxu0  ;;  %v3953_v14 = vpop.f32.mrb[4].mxu1 }
  0xfa   :  { %2916 = vst.msk [vmem:[%s5625_s3 + $0xc] sm:$0xf] %vm2912_vm2, %v3529_v9  ;;  %3016 = vst.msk [vmem:[%s5625_s3 + $0x19c] sm:$0xf] %vm2912_vm2, %v3629_v10  ;;  %v1138_v15 = vadd.f32 %v3853_v13, %v4615_v44  ;;  %v1538_v16 = vadd.f32 %v3953_v14, %v4615_v44  ;;  %v1129_v17 = vpop.f32.mrb[5].mxu0  ;;  %v1529_v18 = vpop.f32.mrb[5].mxu1 }
  0xfb   :  { %2914 = vst.msk [vmem:[%s5625_s3 + $0x4] sm:$0xf] %vm2912_vm2, %v3527_v11  ;;  %3014 = vst.msk [vmem:[%s5625_s3 + $0x194] sm:$0xf] %vm2912_vm2, %v3627_v12  ;;  %v1130_v19 = vadd.f32 %v4615_v44, %v1129_v17  ;;  %v1530_v20 = vadd.f32 %v4615_v44, %v1529_v18  ;;  %v3854_v21 = vpop.f32.mrb[6].mxu0  ;;  %v3954_v22 = vpop.f32.mrb[6].mxu1 }
  0xfc   :  { %v1918_v23 = vmax.f32 %v1138_v15, 0.0  ;;  %v2018_v24 = vmax.f32 %v1538_v16, 0.0  ;;  %v1141_v25 = vadd.f32 %v3854_v21, %v4615_v44  ;;  %v1541_v26 = vadd.f32 %v3954_v22, %v4615_v44  ;;  %v1132_v27 = vpop.f32.mrb[7].mxu0  ;;  %v1532_v28 = vpop.f32.mrb[7].mxu1 }
  0xfd   :  { %v1916_v29 = vmax.f32 %v1130_v19, 0.0  ;;  %v2016_v30 = vmax.f32 %v1530_v20, 0.0  ;;  %v1133_v31 = vadd.f32 %v4615_v44, %v1132_v27  ;;  %v1533_v32 = vadd.f32 %v4615_v44, %v1532_v28 }
  0xfe   :  { %v3532_v33 = vpack.c.bf16 %v1918_v23, %v1918_v23  ;;  %v3632_v34 = vpack.c.bf16 %v2018_v24, %v2018_v24  ;;  %v1919_v35 = vmax.f32 %v1141_v25, 0.0  ;;  %v2019_v36 = vmax.f32 %v1541_v26, 0.0 }
  0xff   :  { %v3530_v37 = vpack.c.bf16 %v1916_v29, %v1916_v29  ;;  %v3630_v38 = vpack.c.bf16 %v2016_v30, %v2016_v30  ;;  %v1917_v39 = vmax.f32 %v1133_v31, 0.0  ;;  %v2017_v40 = vmax.f32 %v1533_v32, 0.0 }
 0x100   :  { %2919 = vst.msk [vmem:[%s5625_s3 + $0x18] sm:$0xf] %vm2912_vm2, %v3532_v33  ;;  %3019 = vst.msk [vmem:[%s5625_s3 + $0x1a8] sm:$0xf] %vm2912_vm2, %v3632_v34  ;;  %v3533_v41 = vpack.c.bf16 %v1919_v35, %v1919_v35  ;;  %v3633_v42 = vpack.c.bf16 %v2019_v36, %v2019_v36 }
 0x101   :  { %2917 = vst.msk [vmem:[%s5625_s3 + $0x10] sm:$0xf] %vm2912_vm2, %v3530_v37  ;;  %3017 = vst.msk [vmem:[%s5625_s3 + $0x1a0] sm:$0xf] %vm2912_vm2, %v3630_v38  ;;  %v3531_v43 = vpack.c.bf16 %v1917_v39, %v1917_v39  ;;  %v3631_v45 = vpack.c.bf16 %v2017_v40, %v2017_v40  ;;  %v3857_v46 = vpop.f32.mrb[8].mxu0  ;;  %v3957_v47 = vpop.f32.mrb[8].mxu1 }
 0x102   :  { %2920 = vst.msk [vmem:[%s5625_s3 + $0x1c] sm:$0xf] %vm2912_vm2, %v3533_v41  ;;  %3020 = vst.msk [vmem:[%s5625_s3 + $0x1ac] sm:$0xf] %vm2912_vm2, %v3633_v42  ;;  %v1154_v48 = vadd.f32 %v3857_v46, %v4615_v44  ;;  %v1554_v49 = vadd.f32 %v3957_v47, %v4615_v44  ;;  %v1145_v50 = vpop.f32.mrb[9].mxu0  ;;  %v1545_v51 = vpop.f32.mrb[9].mxu1 }
 0x103   :  { %2918 = vst.msk [vmem:[%s5625_s3 + $0x14] sm:$0xf] %vm2912_vm2, %v3531_v43  ;;  %3018 = vst.msk [vmem:[%s5625_s3 + $0x1a4] sm:$0xf] %vm2912_vm2, %v3631_v45  ;;  %v1146_v52 = vadd.f32 %v4615_v44, %v1145_v50  ;;  %v1546_v53 = vadd.f32 %v4615_v44, %v1545_v51  ;;  %v3858_v54 = vpop.f32.mrb[10].mxu0  ;;  %v3958_v55 = vpop.f32.mrb[10].mxu1 }
 0x104   :  { %v1922_v56 = vmax.f32 %v1154_v48, 0.0  ;;  %v2022_v57 = vmax.f32 %v1554_v49, 0.0  ;;  %v1157_v58 = vadd.f32 %v3858_v54, %v4615_v44  ;;  %v1557_v59 = vadd.f32 %v3958_v55, %v4615_v44  ;;  %v1148_v60 = vpop.f32.mrb[11].mxu0  ;;  %v1548_v61 = vpop.f32.mrb[11].mxu1 }
 0x105   :  { %v1920_v62 = vmax.f32 %v1146_v52, 0.0  ;;  %v2020_v63 = vmax.f32 %v1546_v53, 0.0  ;;  %v1149_v0 = vadd.f32 %v4615_v44, %v1148_v60  ;;  %v1549_v1 = vadd.f32 %v4615_v44, %v1548_v61 }
 0x106   :  { %v3536_v2 = vpack.c.bf16 %v1922_v56, %v1922_v56  ;;  %v3636_v3 = vpack.c.bf16 %v2022_v57, %v2022_v57  ;;  %v1923_v4 = vmax.f32 %v1157_v58, 0.0  ;;  %v2023_v5 = vmax.f32 %v1557_v59, 0.0 }
 0x107   :  { %v3534_v6 = vpack.c.bf16 %v1920_v62, %v1920_v62  ;;  %v3634_v7 = vpack.c.bf16 %v2020_v63, %v2020_v63  ;;  %v1921_v8 = vmax.f32 %v1149_v0, 0.0  ;;  %v2021_v9 = vmax.f32 %v1549_v1, 0.0 }
 0x108   :  { %2923 = vst.msk [vmem:[%s5625_s3 + $0x28] sm:$0xf] %vm2912_vm2, %v3536_v2  ;;  %3023 = vst.msk [vmem:[%s5625_s3 + $0x1b8] sm:$0xf] %vm2912_vm2, %v3636_v3  ;;  %v3537_v10 = vpack.c.bf16 %v1923_v4, %v1923_v4  ;;  %v3637_v11 = vpack.c.bf16 %v2023_v5, %v2023_v5 }
 0x109   :  { %2921 = vst.msk [vmem:[%s5625_s3 + $0x20] sm:$0xf] %vm2912_vm2, %v3534_v6  ;;  %3021 = vst.msk [vmem:[%s5625_s3 + $0x1b0] sm:$0xf] %vm2912_vm2, %v3634_v7  ;;  %v3535_v12 = vpack.c.bf16 %v1921_v8, %v1921_v8  ;;  %v3635_v13 = vpack.c.bf16 %v2021_v9, %v2021_v9  ;;  %v3861_v14 = vpop.f32.mrb[12].mxu0  ;;  %v3961_v15 = vpop.f32.mrb[12].mxu1 }
 0x10a   :  { %2924 = vst.msk [vmem:[%s5625_s3 + $0x2c] sm:$0xf] %vm2912_vm2, %v3537_v10  ;;  %3024 = vst.msk [vmem:[%s5625_s3 + $0x1bc] sm:$0xf] %vm2912_vm2, %v3637_v11  ;;  %v1170_v16 = vadd.f32 %v3861_v14, %v4615_v44  ;;  %v1570_v17 = vadd.f32 %v3961_v15, %v4615_v44  ;;  %v1161_v18 = vpop.f32.mrb[13].mxu0  ;;  %v1561_v19 = vpop.f32.mrb[13].mxu1 }
 0x10b   :  { %2922 = vst.msk [vmem:[%s5625_s3 + $0x24] sm:$0xf] %vm2912_vm2, %v3535_v12  ;;  %3022 = vst.msk [vmem:[%s5625_s3 + $0x1b4] sm:$0xf] %vm2912_vm2, %v3635_v13  ;;  %v1162_v20 = vadd.f32 %v4615_v44, %v1161_v18  ;;  %v1562_v21 = vadd.f32 %v4615_v44, %v1561_v19  ;;  %v3862_v22 = vpop.f32.mrb[14].mxu0  ;;  %v3962_v23 = vpop.f32.mrb[14].mxu1 }
 0x10c   :  { %v1926_v24 = vmax.f32 %v1170_v16, 0.0  ;;  %v2026_v25 = vmax.f32 %v1570_v17, 0.0  ;;  %v1173_v26 = vadd.f32 %v3862_v22, %v4615_v44  ;;  %v1573_v27 = vadd.f32 %v3962_v23, %v4615_v44  ;;  %v1164_v28 = vpop.f32.mrb[15].mxu0  ;;  %v1564_v29 = vpop.f32.mrb[15].mxu1 }
 0x10d   :  { %v1924_v30 = vmax.f32 %v1162_v20, 0.0  ;;  %v2024_v31 = vmax.f32 %v1562_v21, 0.0  ;;  %v1165_v32 = vadd.f32 %v4615_v44, %v1164_v28  ;;  %v1565_v33 = vadd.f32 %v4615_v44, %v1564_v29 }
 0x10e   :  { %v3540_v34 = vpack.c.bf16 %v1926_v24, %v1926_v24  ;;  %v3640_v35 = vpack.c.bf16 %v2026_v25, %v2026_v25  ;;  %v1927_v36 = vmax.f32 %v1173_v26, 0.0  ;;  %v2027_v37 = vmax.f32 %v1573_v27, 0.0 }
 0x10f   :  { %v3538_v38 = vpack.c.bf16 %v1924_v30, %v1924_v30  ;;  %v3638_v39 = vpack.c.bf16 %v2024_v31, %v2024_v31  ;;  %v1925_v40 = vmax.f32 %v1165_v32, 0.0  ;;  %v2025_v41 = vmax.f32 %v1565_v33, 0.0 }
 0x110   :  { %2927 = vst.msk [vmem:[%s5625_s3 + $0x38] sm:$0xf] %vm2912_vm2, %v3540_v34  ;;  %3027 = vst.msk [vmem:[%s5625_s3 + $0x1c8] sm:$0xf] %vm2912_vm2, %v3640_v35  ;;  %v3541_v42 = vpack.c.bf16 %v1927_v36, %v1927_v36  ;;  %v3641_v43 = vpack.c.bf16 %v2027_v37, %v2027_v37 }
 0x111   :  { %2925 = vst.msk [vmem:[%s5625_s3 + $0x30] sm:$0xf] %vm2912_vm2, %v3538_v38  ;;  %3025 = vst.msk [vmem:[%s5625_s3 + $0x1c0] sm:$0xf] %vm2912_vm2, %v3638_v39  ;;  %v3539_v45 = vpack.c.bf16 %v1925_v40, %v1925_v40  ;;  %v3639_v46 = vpack.c.bf16 %v2025_v41, %v2025_v41  ;;  %v3865_v47 = vpop.f32.mrb[16].mxu0  ;;  %v3965_v48 = vpop.f32.mrb[16].mxu1 }
 0x112   :  { %2928 = vst.msk [vmem:[%s5625_s3 + $0x3c] sm:$0xf] %vm2912_vm2, %v3541_v42  ;;  %3028 = vst.msk [vmem:[%s5625_s3 + $0x1cc] sm:$0xf] %vm2912_vm2, %v3641_v43  ;;  %v1186_v49 = vadd.f32 %v3865_v47, %v4615_v44  ;;  %v1586_v50 = vadd.f32 %v3965_v48, %v4615_v44  ;;  %v1177_v51 = vpop.f32.mrb[17].mxu0  ;;  %v1577_v52 = vpop.f32.mrb[17].mxu1 }
 0x113   :  { %2926 = vst.msk [vmem:[%s5625_s3 + $0x34] sm:$0xf] %vm2912_vm2, %v3539_v45  ;;  %3026 = vst.msk [vmem:[%s5625_s3 + $0x1c4] sm:$0xf] %vm2912_vm2, %v3639_v46  ;;  %v1178_v53 = vadd.f32 %v4615_v44, %v1177_v51  ;;  %v1578_v54 = vadd.f32 %v4615_v44, %v1577_v52  ;;  %v3866_v55 = vpop.f32.mrb[18].mxu0  ;;  %v3966_v56 = vpop.f32.mrb[18].mxu1 }
 0x114   :  { %v1930_v57 = vmax.f32 %v1186_v49, 0.0  ;;  %v2030_v58 = vmax.f32 %v1586_v50, 0.0  ;;  %v1189_v59 = vadd.f32 %v3866_v55, %v4615_v44  ;;  %v1589_v60 = vadd.f32 %v3966_v56, %v4615_v44  ;;  %v1180_v61 = vpop.f32.mrb[19].mxu0  ;;  %v1580_v62 = vpop.f32.mrb[19].mxu1 }
 0x115   :  { %v1928_v63 = vmax.f32 %v1178_v53, 0.0  ;;  %v2028_v0 = vmax.f32 %v1578_v54, 0.0  ;;  %v1181_v1 = vadd.f32 %v4615_v44, %v1180_v61  ;;  %v1581_v2 = vadd.f32 %v4615_v44, %v1580_v62 }
 0x116   :  { %v3544_v3 = vpack.c.bf16 %v1930_v57, %v1930_v57  ;;  %v3644_v4 = vpack.c.bf16 %v2030_v58, %v2030_v58  ;;  %v1931_v5 = vmax.f32 %v1189_v59, 0.0  ;;  %v2031_v6 = vmax.f32 %v1589_v60, 0.0 }
 0x117   :  { %v3542_v7 = vpack.c.bf16 %v1928_v63, %v1928_v63  ;;  %v3642_v8 = vpack.c.bf16 %v2028_v0, %v2028_v0  ;;  %v1929_v9 = vmax.f32 %v1181_v1, 0.0  ;;  %v2029_v10 = vmax.f32 %v1581_v2, 0.0 }
 0x118   :  { %2931 = vst.msk [vmem:[%s5625_s3 + $0x48] sm:$0xf] %vm2912_vm2, %v3544_v3  ;;  %3031 = vst.msk [vmem:[%s5625_s3 + $0x1d8] sm:$0xf] %vm2912_vm2, %v3644_v4  ;;  %v3545_v11 = vpack.c.bf16 %v1931_v5, %v1931_v5  ;;  %v3645_v12 = vpack.c.bf16 %v2031_v6, %v2031_v6 }
 0x119   :  { %2929 = vst.msk [vmem:[%s5625_s3 + $0x40] sm:$0xf] %vm2912_vm2, %v3542_v7  ;;  %3029 = vst.msk [vmem:[%s5625_s3 + $0x1d0] sm:$0xf] %vm2912_vm2, %v3642_v8  ;;  %v3543_v13 = vpack.c.bf16 %v1929_v9, %v1929_v9  ;;  %v3643_v14 = vpack.c.bf16 %v2029_v10, %v2029_v10  ;;  %v3869_v15 = vpop.f32.mrb[20].mxu0  ;;  %v3969_v16 = vpop.f32.mrb[20].mxu1 }
 0x11a   :  { %2932 = vst.msk [vmem:[%s5625_s3 + $0x4c] sm:$0xf] %vm2912_vm2, %v3545_v11  ;;  %3032 = vst.msk [vmem:[%s5625_s3 + $0x1dc] sm:$0xf] %vm2912_vm2, %v3645_v12  ;;  %v1202_v17 = vadd.f32 %v3869_v15, %v4615_v44  ;;  %v1602_v18 = vadd.f32 %v3969_v16, %v4615_v44  ;;  %v1193_v19 = vpop.f32.mrb[21].mxu0  ;;  %v1593_v20 = vpop.f32.mrb[21].mxu1 }
 0x11b   :  { %2930 = vst.msk [vmem:[%s5625_s3 + $0x44] sm:$0xf] %vm2912_vm2, %v3543_v13  ;;  %3030 = vst.msk [vmem:[%s5625_s3 + $0x1d4] sm:$0xf] %vm2912_vm2, %v3643_v14  ;;  %v1194_v21 = vadd.f32 %v4615_v44, %v1193_v19  ;;  %v1594_v22 = vadd.f32 %v4615_v44, %v1593_v20  ;;  %v3870_v23 = vpop.f32.mrb[22].mxu0  ;;  %v3970_v24 = vpop.f32.mrb[22].mxu1 }
 0x11c   :  { %v1934_v25 = vmax.f32 %v1202_v17, 0.0  ;;  %v2034_v26 = vmax.f32 %v1602_v18, 0.0  ;;  %v1205_v27 = vadd.f32 %v3870_v23, %v4615_v44  ;;  %v1605_v28 = vadd.f32 %v3970_v24, %v4615_v44  ;;  %v1196_v29 = vpop.f32.mrb[23].mxu0  ;;  %v1596_v30 = vpop.f32.mrb[23].mxu1 }
 0x11d   :  { %v1932_v31 = vmax.f32 %v1194_v21, 0.0  ;;  %v2032_v32 = vmax.f32 %v1594_v22, 0.0  ;;  %v1197_v33 = vadd.f32 %v4615_v44, %v1196_v29  ;;  %v1597_v34 = vadd.f32 %v4615_v44, %v1596_v30 }
 0x11e   :  { %v3548_v35 = vpack.c.bf16 %v1934_v25, %v1934_v25  ;;  %v3648_v36 = vpack.c.bf16 %v2034_v26, %v2034_v26  ;;  %v1935_v37 = vmax.f32 %v1205_v27, 0.0  ;;  %v2035_v38 = vmax.f32 %v1605_v28, 0.0 }
 0x11f   :  { %v3546_v39 = vpack.c.bf16 %v1932_v31, %v1932_v31  ;;  %v3646_v40 = vpack.c.bf16 %v2032_v32, %v2032_v32  ;;  %v1933_v41 = vmax.f32 %v1197_v33, 0.0  ;;  %v2033_v42 = vmax.f32 %v1597_v34, 0.0 }
 0x120   :  { %2935 = vst.msk [vmem:[%s5625_s3 + $0x58] sm:$0xf] %vm2912_vm2, %v3548_v35  ;;  %3035 = vst.msk [vmem:[%s5625_s3 + $0x1e8] sm:$0xf] %vm2912_vm2, %v3648_v36  ;;  %v3549_v43 = vpack.c.bf16 %v1935_v37, %v1935_v37  ;;  %v3649_v45 = vpack.c.bf16 %v2035_v38, %v2035_v38 }
 0x121   :  { %2933 = vst.msk [vmem:[%s5625_s3 + $0x50] sm:$0xf] %vm2912_vm2, %v3546_v39  ;;  %3033 = vst.msk [vmem:[%s5625_s3 + $0x1e0] sm:$0xf] %vm2912_vm2, %v3646_v40  ;;  %v3547_v46 = vpack.c.bf16 %v1933_v41, %v1933_v41  ;;  %v3647_v47 = vpack.c.bf16 %v2033_v42, %v2033_v42  ;;  %v3873_v48 = vpop.f32.mrb[24].mxu0  ;;  %v3973_v49 = vpop.f32.mrb[24].mxu1 }
 0x122   :  { %2936 = vst.msk [vmem:[%s5625_s3 + $0x5c] sm:$0xf] %vm2912_vm2, %v3549_v43  ;;  %3036 = vst.msk [vmem:[%s5625_s3 + $0x1ec] sm:$0xf] %vm2912_vm2, %v3649_v45  ;;  %v1218_v50 = vadd.f32 %v3873_v48, %v4615_v44  ;;  %v1618_v51 = vadd.f32 %v3973_v49, %v4615_v44  ;;  %v1209_v52 = vpop.f32.mrb[25].mxu0  ;;  %v1609_v53 = vpop.f32.mrb[25].mxu1 }
 0x123   :  { %2934 = vst.msk [vmem:[%s5625_s3 + $0x54] sm:$0xf] %vm2912_vm2, %v3547_v46  ;;  %3034 = vst.msk [vmem:[%s5625_s3 + $0x1e4] sm:$0xf] %vm2912_vm2, %v3647_v47  ;;  %v1210_v54 = vadd.f32 %v4615_v44, %v1209_v52  ;;  %v1610_v55 = vadd.f32 %v4615_v44, %v1609_v53  ;;  %v3874_v56 = vpop.f32.mrb[26].mxu0  ;;  %v3974_v57 = vpop.f32.mrb[26].mxu1 }
 0x124   :  { %v1938_v58 = vmax.f32 %v1218_v50, 0.0  ;;  %v2038_v59 = vmax.f32 %v1618_v51, 0.0  ;;  %v1221_v60 = vadd.f32 %v3874_v56, %v4615_v44  ;;  %v1621_v61 = vadd.f32 %v3974_v57, %v4615_v44  ;;  %v1212_v62 = vpop.f32.mrb[27].mxu0  ;;  %v1612_v63 = vpop.f32.mrb[27].mxu1 }
 0x125   :  { %v1936_v0 = vmax.f32 %v1210_v54, 0.0  ;;  %v2036_v1 = vmax.f32 %v1610_v55, 0.0  ;;  %v1213_v2 = vadd.f32 %v4615_v44, %v1212_v62  ;;  %v1613_v3 = vadd.f32 %v4615_v44, %v1612_v63 }
 0x126   :  { %v3552_v4 = vpack.c.bf16 %v1938_v58, %v1938_v58  ;;  %v3652_v5 = vpack.c.bf16 %v2038_v59, %v2038_v59  ;;  %v1939_v6 = vmax.f32 %v1221_v60, 0.0  ;;  %v2039_v7 = vmax.f32 %v1621_v61, 0.0 }
 0x127   :  { %v3550_v8 = vpack.c.bf16 %v1936_v0, %v1936_v0  ;;  %v3650_v9 = vpack.c.bf16 %v2036_v1, %v2036_v1  ;;  %v1937_v10 = vmax.f32 %v1213_v2, 0.0  ;;  %v2037_v11 = vmax.f32 %v1613_v3, 0.0 }
 0x128   :  { %2939 = vst.msk [vmem:[%s5625_s3 + $0x68] sm:$0xf] %vm2912_vm2, %v3552_v4  ;;  %3039 = vst.msk [vmem:[%s5625_s3 + $0x1f8] sm:$0xf] %vm2912_vm2, %v3652_v5  ;;  %v3553_v12 = vpack.c.bf16 %v1939_v6, %v1939_v6  ;;  %v3653_v13 = vpack.c.bf16 %v2039_v7, %v2039_v7 }
 0x129   :  { %2937 = vst.msk [vmem:[%s5625_s3 + $0x60] sm:$0xf] %vm2912_vm2, %v3550_v8  ;;  %3037 = vst.msk [vmem:[%s5625_s3 + $0x1f0] sm:$0xf] %vm2912_vm2, %v3650_v9  ;;  %v3551_v14 = vpack.c.bf16 %v1937_v10, %v1937_v10  ;;  %v3651_v15 = vpack.c.bf16 %v2037_v11, %v2037_v11  ;;  %v3877_v16 = vpop.f32.mrb[28].mxu0  ;;  %v3977_v17 = vpop.f32.mrb[28].mxu1 }
 0x12a   :  { %2940 = vst.msk [vmem:[%s5625_s3 + $0x6c] sm:$0xf] %vm2912_vm2, %v3553_v12  ;;  %3040 = vst.msk [vmem:[%s5625_s3 + $0x1fc] sm:$0xf] %vm2912_vm2, %v3653_v13  ;;  %v1234_v18 = vadd.f32 %v3877_v16, %v4615_v44  ;;  %v1634_v19 = vadd.f32 %v3977_v17, %v4615_v44  ;;  %v1225_v20 = vpop.f32.mrb[29].mxu0  ;;  %v1625_v21 = vpop.f32.mrb[29].mxu1 }
 0x12b   :  { %2938 = vst.msk [vmem:[%s5625_s3 + $0x64] sm:$0xf] %vm2912_vm2, %v3551_v14  ;;  %3038 = vst.msk [vmem:[%s5625_s3 + $0x1f4] sm:$0xf] %vm2912_vm2, %v3651_v15  ;;  %v1226_v22 = vadd.f32 %v4615_v44, %v1225_v20  ;;  %v1626_v23 = vadd.f32 %v4615_v44, %v1625_v21  ;;  %v3878_v24 = vpop.f32.mrb[30].mxu0  ;;  %v3978_v25 = vpop.f32.mrb[30].mxu1 }
 0x12c   :  { %v1942_v26 = vmax.f32 %v1234_v18, 0.0  ;;  %v2042_v27 = vmax.f32 %v1634_v19, 0.0  ;;  %v1237_v28 = vadd.f32 %v3878_v24, %v4615_v44  ;;  %v1637_v29 = vadd.f32 %v3978_v25, %v4615_v44  ;;  %v1228_v30 = vpop.f32.mrb[31].mxu0  ;;  %v1628_v31 = vpop.f32.mrb[31].mxu1 }
 0x12d   :  { %v1940_v32 = vmax.f32 %v1226_v22, 0.0  ;;  %v2040_v33 = vmax.f32 %v1626_v23, 0.0  ;;  %v1229_v34 = vadd.f32 %v4615_v44, %v1228_v30  ;;  %v1629_v35 = vadd.f32 %v4615_v44, %v1628_v31 }
 0x12e   :  { %v3556_v36 = vpack.c.bf16 %v1942_v26, %v1942_v26  ;;  %v3656_v37 = vpack.c.bf16 %v2042_v27, %v2042_v27  ;;  %v1943_v38 = vmax.f32 %v1237_v28, 0.0  ;;  %v2043_v39 = vmax.f32 %v1637_v29, 0.0 }
 0x12f   :  { %v3554_v40 = vpack.c.bf16 %v1940_v32, %v1940_v32  ;;  %v3654_v41 = vpack.c.bf16 %v2040_v33, %v2040_v33  ;;  %v1941_v42 = vmax.f32 %v1229_v34, 0.0  ;;  %v2041_v43 = vmax.f32 %v1629_v35, 0.0 }
 0x130   :  { %2943 = vst.msk [vmem:[%s5625_s3 + $0x78] sm:$0xf] %vm2912_vm2, %v3556_v36  ;;  %3043 = vst.msk [vmem:[%s5625_s3 + $0x208] sm:$0xf] %vm2912_vm2, %v3656_v37  ;;  %v3557_v45 = vpack.c.bf16 %v1943_v38, %v1943_v38  ;;  %v3657_v46 = vpack.c.bf16 %v2043_v39, %v2043_v39 }
 0x131   :  { %2941 = vst.msk [vmem:[%s5625_s3 + $0x70] sm:$0xf] %vm2912_vm2, %v3554_v40  ;;  %3041 = vst.msk [vmem:[%s5625_s3 + $0x200] sm:$0xf] %vm2912_vm2, %v3654_v41  ;;  %v3555_v47 = vpack.c.bf16 %v1941_v42, %v1941_v42  ;;  %v3655_v48 = vpack.c.bf16 %v2041_v43, %v2041_v43  ;;  %v3881_v49 = vpop.f32.mrb[32].mxu0  ;;  %v3981_v50 = vpop.f32.mrb[32].mxu1 }
 0x132   :  { %2944 = vst.msk [vmem:[%s5625_s3 + $0x7c] sm:$0xf] %vm2912_vm2, %v3557_v45  ;;  %3044 = vst.msk [vmem:[%s5625_s3 + $0x20c] sm:$0xf] %vm2912_vm2, %v3657_v46  ;;  %v1250_v51 = vadd.f32 %v3881_v49, %v4615_v44  ;;  %v1650_v52 = vadd.f32 %v3981_v50, %v4615_v44  ;;  %v1241_v53 = vpop.f32.mrb[33].mxu0  ;;  %v1641_v54 = vpop.f32.mrb[33].mxu1 }
 0x133   :  { %2942 = vst.msk [vmem:[%s5625_s3 + $0x74] sm:$0xf] %vm2912_vm2, %v3555_v47  ;;  %3042 = vst.msk [vmem:[%s5625_s3 + $0x204] sm:$0xf] %vm2912_vm2, %v3655_v48  ;;  %v1242_v55 = vadd.f32 %v4615_v44, %v1241_v53  ;;  %v1642_v56 = vadd.f32 %v4615_v44, %v1641_v54  ;;  %v3882_v57 = vpop.f32.mrb[34].mxu0  ;;  %v3982_v58 = vpop.f32.mrb[34].mxu1 }
 0x134   :  { %v1946_v59 = vmax.f32 %v1250_v51, 0.0  ;;  %v2046_v60 = vmax.f32 %v1650_v52, 0.0  ;;  %v1253_v61 = vadd.f32 %v3882_v57, %v4615_v44  ;;  %v1653_v62 = vadd.f32 %v3982_v58, %v4615_v44  ;;  %v1244_v63 = vpop.f32.mrb[35].mxu0  ;;  %v1644_v0 = vpop.f32.mrb[35].mxu1 }
 0x135   :  { %v1944_v1 = vmax.f32 %v1242_v55, 0.0  ;;  %v2044_v2 = vmax.f32 %v1642_v56, 0.0  ;;  %v1245_v3 = vadd.f32 %v4615_v44, %v1244_v63  ;;  %v1645_v4 = vadd.f32 %v4615_v44, %v1644_v0 }
 0x136   :  { %v3560_v5 = vpack.c.bf16 %v1946_v59, %v1946_v59  ;;  %v3660_v6 = vpack.c.bf16 %v2046_v60, %v2046_v60  ;;  %v1947_v7 = vmax.f32 %v1253_v61, 0.0  ;;  %v2047_v8 = vmax.f32 %v1653_v62, 0.0 }
 0x137   :  { %v3558_v9 = vpack.c.bf16 %v1944_v1, %v1944_v1  ;;  %v3658_v10 = vpack.c.bf16 %v2044_v2, %v2044_v2  ;;  %v1945_v11 = vmax.f32 %v1245_v3, 0.0  ;;  %v2045_v12 = vmax.f32 %v1645_v4, 0.0 }
 0x138   :  { %2947 = vst.msk [vmem:[%s5625_s3 + $0x88] sm:$0xf] %vm2912_vm2, %v3560_v5  ;;  %3047 = vst.msk [vmem:[%s5625_s3 + $0x218] sm:$0xf] %vm2912_vm2, %v3660_v6  ;;  %v3561_v13 = vpack.c.bf16 %v1947_v7, %v1947_v7  ;;  %v3661_v14 = vpack.c.bf16 %v2047_v8, %v2047_v8 }
 0x139   :  { %2945 = vst.msk [vmem:[%s5625_s3 + $0x80] sm:$0xf] %vm2912_vm2, %v3558_v9  ;;  %3045 = vst.msk [vmem:[%s5625_s3 + $0x210] sm:$0xf] %vm2912_vm2, %v3658_v10  ;;  %v3559_v15 = vpack.c.bf16 %v1945_v11, %v1945_v11  ;;  %v3659_v16 = vpack.c.bf16 %v2045_v12, %v2045_v12  ;;  %v3885_v17 = vpop.f32.mrb[36].mxu0  ;;  %v3985_v18 = vpop.f32.mrb[36].mxu1 }
 0x13a   :  { %2948 = vst.msk [vmem:[%s5625_s3 + $0x8c] sm:$0xf] %vm2912_vm2, %v3561_v13  ;;  %3048 = vst.msk [vmem:[%s5625_s3 + $0x21c] sm:$0xf] %vm2912_vm2, %v3661_v14  ;;  %v1266_v19 = vadd.f32 %v3885_v17, %v4615_v44  ;;  %v1666_v20 = vadd.f32 %v3985_v18, %v4615_v44  ;;  %v1257_v21 = vpop.f32.mrb[37].mxu0  ;;  %v1657_v22 = vpop.f32.mrb[37].mxu1 }
 0x13b   :  { %2946 = vst.msk [vmem:[%s5625_s3 + $0x84] sm:$0xf] %vm2912_vm2, %v3559_v15  ;;  %3046 = vst.msk [vmem:[%s5625_s3 + $0x214] sm:$0xf] %vm2912_vm2, %v3659_v16  ;;  %v1258_v23 = vadd.f32 %v4615_v44, %v1257_v21  ;;  %v1658_v24 = vadd.f32 %v4615_v44, %v1657_v22  ;;  %v3886_v25 = vpop.f32.mrb[38].mxu0  ;;  %v3986_v26 = vpop.f32.mrb[38].mxu1 }
 0x13c   :  { %v1950_v27 = vmax.f32 %v1266_v19, 0.0  ;;  %v2050_v28 = vmax.f32 %v1666_v20, 0.0  ;;  %v1269_v29 = vadd.f32 %v3886_v25, %v4615_v44  ;;  %v1669_v30 = vadd.f32 %v3986_v26, %v4615_v44  ;;  %v1260_v31 = vpop.f32.mrb[39].mxu0  ;;  %v1660_v32 = vpop.f32.mrb[39].mxu1 }
 0x13d   :  { %v1948_v33 = vmax.f32 %v1258_v23, 0.0  ;;  %v2048_v34 = vmax.f32 %v1658_v24, 0.0  ;;  %v1261_v35 = vadd.f32 %v4615_v44, %v1260_v31  ;;  %v1661_v36 = vadd.f32 %v4615_v44, %v1660_v32 }
 0x13e   :  { %v3564_v37 = vpack.c.bf16 %v1950_v27, %v1950_v27  ;;  %v3664_v38 = vpack.c.bf16 %v2050_v28, %v2050_v28  ;;  %v1951_v39 = vmax.f32 %v1269_v29, 0.0  ;;  %v2051_v40 = vmax.f32 %v1669_v30, 0.0 }
 0x13f   :  { %v3562_v41 = vpack.c.bf16 %v1948_v33, %v1948_v33  ;;  %v3662_v42 = vpack.c.bf16 %v2048_v34, %v2048_v34  ;;  %v1949_v43 = vmax.f32 %v1261_v35, 0.0  ;;  %v2049_v45 = vmax.f32 %v1661_v36, 0.0 }
 0x140   :  { %2951 = vst.msk [vmem:[%s5625_s3 + $0x98] sm:$0xf] %vm2912_vm2, %v3564_v37  ;;  %3051 = vst.msk [vmem:[%s5625_s3 + $0x228] sm:$0xf] %vm2912_vm2, %v3664_v38  ;;  %v3565_v46 = vpack.c.bf16 %v1951_v39, %v1951_v39  ;;  %v3665_v47 = vpack.c.bf16 %v2051_v40, %v2051_v40 }
 0x141   :  { %2949 = vst.msk [vmem:[%s5625_s3 + $0x90] sm:$0xf] %vm2912_vm2, %v3562_v41  ;;  %3049 = vst.msk [vmem:[%s5625_s3 + $0x220] sm:$0xf] %vm2912_vm2, %v3662_v42  ;;  %v3563_v48 = vpack.c.bf16 %v1949_v43, %v1949_v43  ;;  %v3663_v49 = vpack.c.bf16 %v2049_v45, %v2049_v45  ;;  %v3889_v50 = vpop.f32.mrb[40].mxu0  ;;  %v3989_v51 = vpop.f32.mrb[40].mxu1 }
 0x142   :  { %2952 = vst.msk [vmem:[%s5625_s3 + $0x9c] sm:$0xf] %vm2912_vm2, %v3565_v46  ;;  %3052 = vst.msk [vmem:[%s5625_s3 + $0x22c] sm:$0xf] %vm2912_vm2, %v3665_v47  ;;  %v1282_v52 = vadd.f32 %v3889_v50, %v4615_v44  ;;  %v1682_v53 = vadd.f32 %v3989_v51, %v4615_v44  ;;  %v1273_v54 = vpop.f32.mrb[41].mxu0  ;;  %v1673_v55 = vpop.f32.mrb[41].mxu1 }
 0x143   :  { %2950 = vst.msk [vmem:[%s5625_s3 + $0x94] sm:$0xf] %vm2912_vm2, %v3563_v48  ;;  %3050 = vst.msk [vmem:[%s5625_s3 + $0x224] sm:$0xf] %vm2912_vm2, %v3663_v49  ;;  %v1274_v56 = vadd.f32 %v4615_v44, %v1273_v54  ;;  %v1674_v57 = vadd.f32 %v4615_v44, %v1673_v55  ;;  %v3890_v58 = vpop.f32.mrb[42].mxu0  ;;  %v3990_v59 = vpop.f32.mrb[42].mxu1 }
 0x144   :  { %v1954_v60 = vmax.f32 %v1282_v52, 0.0  ;;  %v2054_v61 = vmax.f32 %v1682_v53, 0.0  ;;  %v1285_v62 = vadd.f32 %v3890_v58, %v4615_v44  ;;  %v1685_v63 = vadd.f32 %v3990_v59, %v4615_v44  ;;  %v1276_v0 = vpop.f32.mrb[43].mxu0  ;;  %v1676_v1 = vpop.f32.mrb[43].mxu1 }
 0x145   :  { %v1952_v2 = vmax.f32 %v1274_v56, 0.0  ;;  %v2052_v3 = vmax.f32 %v1674_v57, 0.0  ;;  %v1277_v4 = vadd.f32 %v4615_v44, %v1276_v0  ;;  %v1677_v5 = vadd.f32 %v4615_v44, %v1676_v1 }
 0x146   :  { %v3568_v6 = vpack.c.bf16 %v1954_v60, %v1954_v60  ;;  %v3668_v7 = vpack.c.bf16 %v2054_v61, %v2054_v61  ;;  %v1955_v8 = vmax.f32 %v1285_v62, 0.0  ;;  %v2055_v9 = vmax.f32 %v1685_v63, 0.0 }
 0x147   :  { %v3566_v10 = vpack.c.bf16 %v1952_v2, %v1952_v2  ;;  %v3666_v11 = vpack.c.bf16 %v2052_v3, %v2052_v3  ;;  %v1953_v12 = vmax.f32 %v1277_v4, 0.0  ;;  %v2053_v13 = vmax.f32 %v1677_v5, 0.0 }
 0x148   :  { %2955 = vst.msk [vmem:[%s5625_s3 + $0xa8] sm:$0xf] %vm2912_vm2, %v3568_v6  ;;  %3055 = vst.msk [vmem:[%s5625_s3 + $0x238] sm:$0xf] %vm2912_vm2, %v3668_v7  ;;  %v3569_v14 = vpack.c.bf16 %v1955_v8, %v1955_v8  ;;  %v3669_v15 = vpack.c.bf16 %v2055_v9, %v2055_v9 }
 0x149   :  { %2953 = vst.msk [vmem:[%s5625_s3 + $0xa0] sm:$0xf] %vm2912_vm2, %v3566_v10  ;;  %3053 = vst.msk [vmem:[%s5625_s3 + $0x230] sm:$0xf] %vm2912_vm2, %v3666_v11  ;;  %v3567_v16 = vpack.c.bf16 %v1953_v12, %v1953_v12  ;;  %v3667_v17 = vpack.c.bf16 %v2053_v13, %v2053_v13  ;;  %v3893_v18 = vpop.f32.mrb[44].mxu0  ;;  %v3993_v19 = vpop.f32.mrb[44].mxu1 }
 0x14a   :  { %2956 = vst.msk [vmem:[%s5625_s3 + $0xac] sm:$0xf] %vm2912_vm2, %v3569_v14  ;;  %3056 = vst.msk [vmem:[%s5625_s3 + $0x23c] sm:$0xf] %vm2912_vm2, %v3669_v15  ;;  %v1298_v20 = vadd.f32 %v3893_v18, %v4615_v44  ;;  %v1698_v21 = vadd.f32 %v3993_v19, %v4615_v44  ;;  %v1289_v22 = vpop.f32.mrb[45].mxu0  ;;  %v1689_v23 = vpop.f32.mrb[45].mxu1 }
 0x14b   :  { %2954 = vst.msk [vmem:[%s5625_s3 + $0xa4] sm:$0xf] %vm2912_vm2, %v3567_v16  ;;  %3054 = vst.msk [vmem:[%s5625_s3 + $0x234] sm:$0xf] %vm2912_vm2, %v3667_v17  ;;  %v1290_v24 = vadd.f32 %v4615_v44, %v1289_v22  ;;  %v1690_v25 = vadd.f32 %v4615_v44, %v1689_v23  ;;  %v3894_v26 = vpop.f32.mrb[46].mxu0  ;;  %v3994_v27 = vpop.f32.mrb[46].mxu1 }
 0x14c   :  { %v1958_v28 = vmax.f32 %v1298_v20, 0.0  ;;  %v2058_v29 = vmax.f32 %v1698_v21, 0.0  ;;  %v1301_v30 = vadd.f32 %v3894_v26, %v4615_v44  ;;  %v1701_v31 = vadd.f32 %v3994_v27, %v4615_v44  ;;  %v1292_v32 = vpop.f32.mrb[47].mxu0  ;;  %v1692_v33 = vpop.f32.mrb[47].mxu1  ;;  %v5132_v20 = vld [vmem:[%s5624_s2] ss:$0 sm:$0xff] }
 0x14d   :  { %v1956_v34 = vmax.f32 %v1290_v24, 0.0  ;;  %v2056_v35 = vmax.f32 %v1690_v25, 0.0  ;;  %v1293_v36 = vadd.f32 %v4615_v44, %v1292_v32  ;;  %v1693_v37 = vadd.f32 %v4615_v44, %v1692_v33 }
 0x14e   :  { %v3572_v38 = vpack.c.bf16 %v1958_v28, %v1958_v28  ;;  %v3672_v39 = vpack.c.bf16 %v2058_v29, %v2058_v29  ;;  %v1959_v40 = vmax.f32 %v1301_v30, 0.0  ;;  %v2059_v41 = vmax.f32 %v1701_v31, 0.0 }
 0x14f   :  { %v3570_v42 = vpack.c.bf16 %v1956_v34, %v1956_v34  ;;  %v3670_v43 = vpack.c.bf16 %v2056_v35, %v2056_v35  ;;  %v1957_v45 = vmax.f32 %v1293_v36, 0.0  ;;  %v2057_v46 = vmax.f32 %v1693_v37, 0.0 }
 0x150   :  { %2959 = vst.msk [vmem:[%s5625_s3 + $0xb8] sm:$0xf] %vm2912_vm2, %v3572_v38  ;;  %3059 = vst.msk [vmem:[%s5625_s3 + $0x248] sm:$0xf] %vm2912_vm2, %v3672_v39  ;;  %v3573_v47 = vpack.c.bf16 %v1959_v40, %v1959_v40  ;;  %v3673_v48 = vpack.c.bf16 %v2059_v41, %v2059_v41 }
 0x151   :  { %2957 = vst.msk [vmem:[%s5625_s3 + $0xb0] sm:$0xf] %vm2912_vm2, %v3570_v42  ;;  %3057 = vst.msk [vmem:[%s5625_s3 + $0x240] sm:$0xf] %vm2912_vm2, %v3670_v43  ;;  %v3571_v49 = vpack.c.bf16 %v1957_v45, %v1957_v45  ;;  %v3671_v50 = vpack.c.bf16 %v2057_v46, %v2057_v46  ;;  %v3897_v51 = vpop.f32.mrb[48].mxu0  ;;  %v3997_v52 = vpop.f32.mrb[48].mxu1 }
 0x152   :  { %2960 = vst.msk [vmem:[%s5625_s3 + $0xbc] sm:$0xf] %vm2912_vm2, %v3573_v47  ;;  %3060 = vst.msk [vmem:[%s5625_s3 + $0x24c] sm:$0xf] %vm2912_vm2, %v3673_v48  ;;  %v1314_v53 = vadd.f32 %v3897_v51, %v4615_v44  ;;  %v1714_v54 = vadd.f32 %v3997_v52, %v4615_v44  ;;  %v1305_v55 = vpop.f32.mrb[49].mxu0  ;;  %v1705_v56 = vpop.f32.mrb[49].mxu1 }
 0x153   :  { %2958 = vst.msk [vmem:[%s5625_s3 + $0xb4] sm:$0xf] %vm2912_vm2, %v3571_v49  ;;  %3058 = vst.msk [vmem:[%s5625_s3 + $0x244] sm:$0xf] %vm2912_vm2, %v3671_v50  ;;  %v1306_v57 = vadd.f32 %v4615_v44, %v1305_v55  ;;  %v1706_v58 = vadd.f32 %v4615_v44, %v1705_v56  ;;  %v3898_v59 = vpop.f32.mrb[50].mxu0  ;;  %v3998_v60 = vpop.f32.mrb[50].mxu1 }
 0x154   :  { %v1962_v61 = vmax.f32 %v1314_v53, 0.0  ;;  %v2062_v62 = vmax.f32 %v1714_v54, 0.0  ;;  %v1317_v63 = vadd.f32 %v3898_v59, %v4615_v44  ;;  %v1717_v0 = vadd.f32 %v3998_v60, %v4615_v44  ;;  %v1308_v1 = vpop.f32.mrb[51].mxu0  ;;  %v1708_v2 = vpop.f32.mrb[51].mxu1 }
 0x155   :  { %v1960_v3 = vmax.f32 %v1306_v57, 0.0  ;;  %v2060_v4 = vmax.f32 %v1706_v58, 0.0  ;;  %v1309_v5 = vadd.f32 %v4615_v44, %v1308_v1  ;;  %v1709_v6 = vadd.f32 %v4615_v44, %v1708_v2 }
 0x156   :  { %v3576_v7 = vpack.c.bf16 %v1962_v61, %v1962_v61  ;;  %v3676_v8 = vpack.c.bf16 %v2062_v62, %v2062_v62  ;;  %v1963_v9 = vmax.f32 %v1317_v63, 0.0  ;;  %v2063_v10 = vmax.f32 %v1717_v0, 0.0 }
 0x157   :  { %v3574_v11 = vpack.c.bf16 %v1960_v3, %v1960_v3  ;;  %v3674_v12 = vpack.c.bf16 %v2060_v4, %v2060_v4  ;;  %v1961_v13 = vmax.f32 %v1309_v5, 0.0  ;;  %v2061_v14 = vmax.f32 %v1709_v6, 0.0 }
 0x158   :  { %2963 = vst.msk [vmem:[%s5625_s3 + $0xc8] sm:$0xf] %vm2912_vm2, %v3576_v7  ;;  %3063 = vst.msk [vmem:[%s5625_s3 + $0x258] sm:$0xf] %vm2912_vm2, %v3676_v8  ;;  %v3577_v15 = vpack.c.bf16 %v1963_v9, %v1963_v9  ;;  %v3677_v44 = vpack.c.bf16 %v2063_v10, %v2063_v10 }
 0x159   :  { %2961 = vst.msk [vmem:[%s5625_s3 + $0xc0] sm:$0xf] %vm2912_vm2, %v3574_v11  ;;  %3061 = vst.msk [vmem:[%s5625_s3 + $0x250] sm:$0xf] %vm2912_vm2, %v3674_v12  ;;  %v3575_v16 = vpack.c.bf16 %v1961_v13, %v1961_v13  ;;  %v3675_v17 = vpack.c.bf16 %v2061_v14, %v2061_v14  ;;  %v3901_v18 = vpop.f32.mrb[52].mxu0  ;;  %v4001_v19 = vpop.f32.mrb[52].mxu1 }
 0x15a   :  { %2964 = vst.msk [vmem:[%s5625_s3 + $0xcc] sm:$0xf] %vm2912_vm2, %v3577_v15  ;;  %3064 = vst.msk [vmem:[%s5625_s3 + $0x25c] sm:$0xf] %vm2912_vm2, %v3677_v44  ;;  %v1330_v21 = vadd.f32 %v5132_v20, %v3901_v18  ;;  %v1730_v22 = vadd.f32 %v5132_v20, %v4001_v19  ;;  %v1321_v23 = vpop.f32.mrb[53].mxu0  ;;  %v1721_v24 = vpop.f32.mrb[53].mxu1 }
 0x15b   :  { %2962 = vst.msk [vmem:[%s5625_s3 + $0xc4] sm:$0xf] %vm2912_vm2, %v3575_v16  ;;  %3062 = vst.msk [vmem:[%s5625_s3 + $0x254] sm:$0xf] %vm2912_vm2, %v3675_v17  ;;  %v1322_v25 = vadd.f32 %v5132_v20, %v1321_v23  ;;  %v1722_v26 = vadd.f32 %v5132_v20, %v1721_v24  ;;  %v3902_v27 = vpop.f32.mrb[54].mxu0  ;;  %v4002_v28 = vpop.f32.mrb[54].mxu1 }
 0x15c   :  { %v1966_v29 = vmax.f32 %v1330_v21, 0.0  ;;  %v2066_v30 = vmax.f32 %v1730_v22, 0.0  ;;  %v1333_v31 = vadd.f32 %v5132_v20, %v3902_v27  ;;  %v1733_v32 = vadd.f32 %v5132_v20, %v4002_v28  ;;  %v1324_v33 = vpop.f32.mrb[55].mxu0  ;;  %v1724_v34 = vpop.f32.mrb[55].mxu1 }
 0x15d   :  { %v1964_v35 = vmax.f32 %v1322_v25, 0.0  ;;  %v2064_v36 = vmax.f32 %v1722_v26, 0.0  ;;  %v1325_v37 = vadd.f32 %v5132_v20, %v1324_v33  ;;  %v1725_v38 = vadd.f32 %v5132_v20, %v1724_v34 }
 0x15e   :  { %v3580_v39 = vpack.c.bf16 %v1966_v29, %v1966_v29  ;;  %v3680_v40 = vpack.c.bf16 %v2066_v30, %v2066_v30  ;;  %v1967_v41 = vmax.f32 %v1333_v31, 0.0  ;;  %v2067_v42 = vmax.f32 %v1733_v32, 0.0 }
 0x15f   :  { %v3578_v43 = vpack.c.bf16 %v1964_v35, %v1964_v35  ;;  %v3678_v45 = vpack.c.bf16 %v2064_v36, %v2064_v36  ;;  %v1965_v46 = vmax.f32 %v1325_v37, 0.0  ;;  %v2065_v47 = vmax.f32 %v1725_v38, 0.0 }
 0x160   :  { %2967 = vst.msk [vmem:[%s5625_s3 + $0xd8] sm:$0xf] %vm2912_vm2, %v3580_v39  ;;  %3067 = vst.msk [vmem:[%s5625_s3 + $0x268] sm:$0xf] %vm2912_vm2, %v3680_v40  ;;  %v3581_v48 = vpack.c.bf16 %v1967_v41, %v1967_v41  ;;  %v3681_v49 = vpack.c.bf16 %v2067_v42, %v2067_v42 }
 0x161   :  { %2965 = vst.msk [vmem:[%s5625_s3 + $0xd0] sm:$0xf] %vm2912_vm2, %v3578_v43  ;;  %3065 = vst.msk [vmem:[%s5625_s3 + $0x260] sm:$0xf] %vm2912_vm2, %v3678_v45  ;;  %v3579_v50 = vpack.c.bf16 %v1965_v46, %v1965_v46  ;;  %v3679_v51 = vpack.c.bf16 %v2065_v47, %v2065_v47  ;;  %v3905_v52 = vpop.f32.mrb[56].mxu0  ;;  %v4005_v53 = vpop.f32.mrb[56].mxu1 }
 0x162   :  { %2968 = vst.msk [vmem:[%s5625_s3 + $0xdc] sm:$0xf] %vm2912_vm2, %v3581_v48  ;;  %3068 = vst.msk [vmem:[%s5625_s3 + $0x26c] sm:$0xf] %vm2912_vm2, %v3681_v49  ;;  %v1346_v54 = vadd.f32 %v5132_v20, %v3905_v52  ;;  %v1746_v55 = vadd.f32 %v5132_v20, %v4005_v53  ;;  %v1337_v56 = vpop.f32.mrb[57].mxu0  ;;  %v1737_v57 = vpop.f32.mrb[57].mxu1 }
 0x163   :  { %2966 = vst.msk [vmem:[%s5625_s3 + $0xd4] sm:$0xf] %vm2912_vm2, %v3579_v50  ;;  %3066 = vst.msk [vmem:[%s5625_s3 + $0x264] sm:$0xf] %vm2912_vm2, %v3679_v51  ;;  %v1338_v58 = vadd.f32 %v5132_v20, %v1337_v56  ;;  %v1738_v59 = vadd.f32 %v5132_v20, %v1737_v57  ;;  %v3906_v60 = vpop.f32.mrb[58].mxu0  ;;  %v4006_v61 = vpop.f32.mrb[58].mxu1 }
 0x164   :  { %v1970_v62 = vmax.f32 %v1346_v54, 0.0  ;;  %v2070_v63 = vmax.f32 %v1746_v55, 0.0  ;;  %v1349_v0 = vadd.f32 %v5132_v20, %v3906_v60  ;;  %v1749_v1 = vadd.f32 %v5132_v20, %v4006_v61  ;;  %v1340_v2 = vpop.f32.mrb[59].mxu0  ;;  %v1740_v3 = vpop.f32.mrb[59].mxu1 }
 0x165   :  { %v1968_v4 = vmax.f32 %v1338_v58, 0.0  ;;  %v2068_v5 = vmax.f32 %v1738_v59, 0.0  ;;  %v1341_v6 = vadd.f32 %v5132_v20, %v1340_v2  ;;  %v1741_v7 = vadd.f32 %v5132_v20, %v1740_v3 }
 0x166   :  { %v3584_v8 = vpack.c.bf16 %v1970_v62, %v1970_v62  ;;  %v3684_v9 = vpack.c.bf16 %v2070_v63, %v2070_v63  ;;  %v1971_v10 = vmax.f32 %v1349_v0, 0.0  ;;  %v2071_v11 = vmax.f32 %v1749_v1, 0.0 }
 0x167   :  { %v3582_v12 = vpack.c.bf16 %v1968_v4, %v1968_v4  ;;  %v3682_v13 = vpack.c.bf16 %v2068_v5, %v2068_v5  ;;  %v1969_v14 = vmax.f32 %v1341_v6, 0.0  ;;  %v2069_v15 = vmax.f32 %v1741_v7, 0.0 }
 0x168   :  { %2971 = vst.msk [vmem:[%s5625_s3 + $0xe8] sm:$0xf] %vm2912_vm2, %v3584_v8  ;;  %3071 = vst.msk [vmem:[%s5625_s3 + $0x278] sm:$0xf] %vm2912_vm2, %v3684_v9  ;;  %v3585_v44 = vpack.c.bf16 %v1971_v10, %v1971_v10  ;;  %v3685_v16 = vpack.c.bf16 %v2071_v11, %v2071_v11 }
 0x169   :  { %2969 = vst.msk [vmem:[%s5625_s3 + $0xe0] sm:$0xf] %vm2912_vm2, %v3582_v12  ;;  %3069 = vst.msk [vmem:[%s5625_s3 + $0x270] sm:$0xf] %vm2912_vm2, %v3682_v13  ;;  %v3583_v17 = vpack.c.bf16 %v1969_v14, %v1969_v14  ;;  %v3683_v18 = vpack.c.bf16 %v2069_v15, %v2069_v15  ;;  %v3909_v19 = vpop.f32.mrb[60].mxu0  ;;  %v4009_v21 = vpop.f32.mrb[60].mxu1 }
 0x16a   :  { %2972 = vst.msk [vmem:[%s5625_s3 + $0xec] sm:$0xf] %vm2912_vm2, %v3585_v44  ;;  %3072 = vst.msk [vmem:[%s5625_s3 + $0x27c] sm:$0xf] %vm2912_vm2, %v3685_v16  ;;  %v1362_v22 = vadd.f32 %v5132_v20, %v3909_v19  ;;  %v1762_v23 = vadd.f32 %v5132_v20, %v4009_v21  ;;  %v1353_v24 = vpop.f32.mrb[61].mxu0  ;;  %v1753_v25 = vpop.f32.mrb[61].mxu1 }
 0x16b   :  { %2970 = vst.msk [vmem:[%s5625_s3 + $0xe4] sm:$0xf] %vm2912_vm2, %v3583_v17  ;;  %3070 = vst.msk [vmem:[%s5625_s3 + $0x274] sm:$0xf] %vm2912_vm2, %v3683_v18  ;;  %v1354_v26 = vadd.f32 %v5132_v20, %v1353_v24  ;;  %v1754_v27 = vadd.f32 %v5132_v20, %v1753_v25  ;;  %v3910_v28 = vpop.f32.mrb[62].mxu0  ;;  %v4010_v29 = vpop.f32.mrb[62].mxu1 }
 0x16c   :  { %v1974_v30 = vmax.f32 %v1362_v22, 0.0  ;;  %v2074_v31 = vmax.f32 %v1762_v23, 0.0  ;;  %v1365_v32 = vadd.f32 %v5132_v20, %v3910_v28  ;;  %v1765_v33 = vadd.f32 %v5132_v20, %v4010_v29  ;;  %v1356_v34 = vpop.f32.mrb[63].mxu0  ;;  %v1756_v35 = vpop.f32.mrb[63].mxu1 }
 0x16d   :  { %v1972_v36 = vmax.f32 %v1354_v26, 0.0  ;;  %v2072_v37 = vmax.f32 %v1754_v27, 0.0  ;;  %v1357_v38 = vadd.f32 %v5132_v20, %v1356_v34  ;;  %v1757_v39 = vadd.f32 %v5132_v20, %v1756_v35 }
 0x16e   :  { %v3588_v40 = vpack.c.bf16 %v1974_v30, %v1974_v30  ;;  %v3688_v41 = vpack.c.bf16 %v2074_v31, %v2074_v31  ;;  %v1975_v42 = vmax.f32 %v1365_v32, 0.0  ;;  %v2075_v43 = vmax.f32 %v1765_v33, 0.0 }
 0x16f   :  { %v3586_v45 = vpack.c.bf16 %v1972_v36, %v1972_v36  ;;  %v3686_v46 = vpack.c.bf16 %v2072_v37, %v2072_v37  ;;  %v1973_v47 = vmax.f32 %v1357_v38, 0.0  ;;  %v2073_v48 = vmax.f32 %v1757_v39, 0.0 }
 0x170   :  { %2975 = vst.msk [vmem:[%s5625_s3 + $0xf8] sm:$0xf] %vm2912_vm2, %v3588_v40  ;;  %3075 = vst.msk [vmem:[%s5625_s3 + $0x288] sm:$0xf] %vm2912_vm2, %v3688_v41  ;;  %v3589_v49 = vpack.c.bf16 %v1975_v42, %v1975_v42  ;;  %v3689_v50 = vpack.c.bf16 %v2075_v43, %v2075_v43 }
 0x171   :  { %2973 = vst.msk [vmem:[%s5625_s3 + $0xf0] sm:$0xf] %vm2912_vm2, %v3586_v45  ;;  %3073 = vst.msk [vmem:[%s5625_s3 + $0x280] sm:$0xf] %vm2912_vm2, %v3686_v46  ;;  %v3587_v51 = vpack.c.bf16 %v1973_v47, %v1973_v47  ;;  %v3687_v52 = vpack.c.bf16 %v2073_v48, %v2073_v48  ;;  %v3913_v53 = vpop.f32.mrb[64].mxu0  ;;  %v4013_v54 = vpop.f32.mrb[64].mxu1 }
 0x172   :  { %2976 = vst.msk [vmem:[%s5625_s3 + $0xfc] sm:$0xf] %vm2912_vm2, %v3589_v49  ;;  %3076 = vst.msk [vmem:[%s5625_s3 + $0x28c] sm:$0xf] %vm2912_vm2, %v3689_v50  ;;  %v1378_v55 = vadd.f32 %v5132_v20, %v3913_v53  ;;  %v1778_v56 = vadd.f32 %v5132_v20, %v4013_v54  ;;  %v1369_v57 = vpop.f32.mrb[65].mxu0  ;;  %v1769_v58 = vpop.f32.mrb[65].mxu1 }
 0x173   :  { %2974 = vst.msk [vmem:[%s5625_s3 + $0xf4] sm:$0xf] %vm2912_vm2, %v3587_v51  ;;  %3074 = vst.msk [vmem:[%s5625_s3 + $0x284] sm:$0xf] %vm2912_vm2, %v3687_v52  ;;  %v1370_v59 = vadd.f32 %v5132_v20, %v1369_v57  ;;  %v1770_v60 = vadd.f32 %v5132_v20, %v1769_v58  ;;  %v3914_v61 = vpop.f32.mrb[66].mxu0  ;;  %v4014_v62 = vpop.f32.mrb[66].mxu1 }
 0x174   :  { %v1978_v63 = vmax.f32 %v1378_v55, 0.0  ;;  %v2078_v0 = vmax.f32 %v1778_v56, 0.0  ;;  %v1381_v1 = vadd.f32 %v5132_v20, %v3914_v61  ;;  %v1781_v2 = vadd.f32 %v5132_v20, %v4014_v62  ;;  %v1372_v3 = vpop.f32.mrb[67].mxu0  ;;  %v1772_v4 = vpop.f32.mrb[67].mxu1 }
 0x175   :  { %v1976_v5 = vmax.f32 %v1370_v59, 0.0  ;;  %v2076_v6 = vmax.f32 %v1770_v60, 0.0  ;;  %v1373_v7 = vadd.f32 %v5132_v20, %v1372_v3  ;;  %v1773_v8 = vadd.f32 %v5132_v20, %v1772_v4 }
 0x176   :  { %v3592_v9 = vpack.c.bf16 %v1978_v63, %v1978_v63  ;;  %v3692_v10 = vpack.c.bf16 %v2078_v0, %v2078_v0  ;;  %v1979_v11 = vmax.f32 %v1381_v1, 0.0  ;;  %v2079_v12 = vmax.f32 %v1781_v2, 0.0 }
 0x177   :  { %v3590_v13 = vpack.c.bf16 %v1976_v5, %v1976_v5  ;;  %v3690_v14 = vpack.c.bf16 %v2076_v6, %v2076_v6  ;;  %v1977_v15 = vmax.f32 %v1373_v7, 0.0  ;;  %v2077_v44 = vmax.f32 %v1773_v8, 0.0 }
 0x178   :  { %2979 = vst.msk [vmem:[%s5625_s3 + $0x108] sm:$0xf] %vm2912_vm2, %v3592_v9  ;;  %3079 = vst.msk [vmem:[%s5625_s3 + $0x298] sm:$0xf] %vm2912_vm2, %v3692_v10  ;;  %v3593_v16 = vpack.c.bf16 %v1979_v11, %v1979_v11  ;;  %v3693_v17 = vpack.c.bf16 %v2079_v12, %v2079_v12 }
 0x179   :  { %2977 = vst.msk [vmem:[%s5625_s3 + $0x100] sm:$0xf] %vm2912_vm2, %v3590_v13  ;;  %3077 = vst.msk [vmem:[%s5625_s3 + $0x290] sm:$0xf] %vm2912_vm2, %v3690_v14  ;;  %v3591_v18 = vpack.c.bf16 %v1977_v15, %v1977_v15  ;;  %v3691_v19 = vpack.c.bf16 %v2077_v44, %v2077_v44  ;;  %v3917_v21 = vpop.f32.mrb[68].mxu0  ;;  %v4017_v22 = vpop.f32.mrb[68].mxu1 }
 0x17a   :  { %2980 = vst.msk [vmem:[%s5625_s3 + $0x10c] sm:$0xf] %vm2912_vm2, %v3593_v16  ;;  %3080 = vst.msk [vmem:[%s5625_s3 + $0x29c] sm:$0xf] %vm2912_vm2, %v3693_v17  ;;  %v1394_v23 = vadd.f32 %v5132_v20, %v3917_v21  ;;  %v1794_v24 = vadd.f32 %v5132_v20, %v4017_v22  ;;  %v1385_v25 = vpop.f32.mrb[69].mxu0  ;;  %v1785_v26 = vpop.f32.mrb[69].mxu1 }
 0x17b   :  { %2978 = vst.msk [vmem:[%s5625_s3 + $0x104] sm:$0xf] %vm2912_vm2, %v3591_v18  ;;  %3078 = vst.msk [vmem:[%s5625_s3 + $0x294] sm:$0xf] %vm2912_vm2, %v3691_v19  ;;  %v1386_v27 = vadd.f32 %v5132_v20, %v1385_v25  ;;  %v1786_v28 = vadd.f32 %v5132_v20, %v1785_v26  ;;  %v3918_v29 = vpop.f32.mrb[70].mxu0  ;;  %v4018_v30 = vpop.f32.mrb[70].mxu1 }
 0x17c   :  { %v1982_v31 = vmax.f32 %v1394_v23, 0.0  ;;  %v2082_v32 = vmax.f32 %v1794_v24, 0.0  ;;  %v1397_v33 = vadd.f32 %v5132_v20, %v3918_v29  ;;  %v1797_v34 = vadd.f32 %v5132_v20, %v4018_v30  ;;  %v1388_v35 = vpop.f32.mrb[71].mxu0  ;;  %v1788_v36 = vpop.f32.mrb[71].mxu1 }
 0x17d   :  { %v1980_v37 = vmax.f32 %v1386_v27, 0.0  ;;  %v2080_v38 = vmax.f32 %v1786_v28, 0.0  ;;  %v1389_v39 = vadd.f32 %v5132_v20, %v1388_v35  ;;  %v1789_v40 = vadd.f32 %v5132_v20, %v1788_v36 }
 0x17e   :  { %v3596_v41 = vpack.c.bf16 %v1982_v31, %v1982_v31  ;;  %v3696_v42 = vpack.c.bf16 %v2082_v32, %v2082_v32  ;;  %v1983_v43 = vmax.f32 %v1397_v33, 0.0  ;;  %v2083_v45 = vmax.f32 %v1797_v34, 0.0 }
 0x17f   :  { %v3594_v46 = vpack.c.bf16 %v1980_v37, %v1980_v37  ;;  %v3694_v47 = vpack.c.bf16 %v2080_v38, %v2080_v38  ;;  %v1981_v48 = vmax.f32 %v1389_v39, 0.0  ;;  %v2081_v49 = vmax.f32 %v1789_v40, 0.0 }
 0x180   :  { %2983 = vst.msk [vmem:[%s5625_s3 + $0x118] sm:$0xf] %vm2912_vm2, %v3596_v41  ;;  %3083 = vst.msk [vmem:[%s5625_s3 + $0x2a8] sm:$0xf] %vm2912_vm2, %v3696_v42  ;;  %v3597_v50 = vpack.c.bf16 %v1983_v43, %v1983_v43  ;;  %v3697_v51 = vpack.c.bf16 %v2083_v45, %v2083_v45 }
 0x181   :  { %2981 = vst.msk [vmem:[%s5625_s3 + $0x110] sm:$0xf] %vm2912_vm2, %v3594_v46  ;;  %3081 = vst.msk [vmem:[%s5625_s3 + $0x2a0] sm:$0xf] %vm2912_vm2, %v3694_v47  ;;  %v3595_v52 = vpack.c.bf16 %v1981_v48, %v1981_v48  ;;  %v3695_v53 = vpack.c.bf16 %v2081_v49, %v2081_v49  ;;  %v3921_v54 = vpop.f32.mrb[72].mxu0  ;;  %v4021_v55 = vpop.f32.mrb[72].mxu1 }
 0x182   :  { %2984 = vst.msk [vmem:[%s5625_s3 + $0x11c] sm:$0xf] %vm2912_vm2, %v3597_v50  ;;  %3084 = vst.msk [vmem:[%s5625_s3 + $0x2ac] sm:$0xf] %vm2912_vm2, %v3697_v51  ;;  %v1410_v56 = vadd.f32 %v5132_v20, %v3921_v54  ;;  %v1810_v57 = vadd.f32 %v5132_v20, %v4021_v55  ;;  %v1401_v58 = vpop.f32.mrb[73].mxu0  ;;  %v1801_v59 = vpop.f32.mrb[73].mxu1 }
 0x183   :  { %2982 = vst.msk [vmem:[%s5625_s3 + $0x114] sm:$0xf] %vm2912_vm2, %v3595_v52  ;;  %3082 = vst.msk [vmem:[%s5625_s3 + $0x2a4] sm:$0xf] %vm2912_vm2, %v3695_v53  ;;  %v1402_v60 = vadd.f32 %v5132_v20, %v1401_v58  ;;  %v1802_v61 = vadd.f32 %v5132_v20, %v1801_v59  ;;  %v3922_v62 = vpop.f32.mrb[74].mxu0  ;;  %v4022_v63 = vpop.f32.mrb[74].mxu1 }
 0x184   :  { %v1986_v0 = vmax.f32 %v1410_v56, 0.0  ;;  %v2086_v1 = vmax.f32 %v1810_v57, 0.0  ;;  %v1413_v2 = vadd.f32 %v5132_v20, %v3922_v62  ;;  %v1813_v3 = vadd.f32 %v5132_v20, %v4022_v63  ;;  %v1404_v4 = vpop.f32.mrb[75].mxu0  ;;  %v1804_v5 = vpop.f32.mrb[75].mxu1 }
 0x185   :  { %v1984_v6 = vmax.f32 %v1402_v60, 0.0  ;;  %v2084_v7 = vmax.f32 %v1802_v61, 0.0  ;;  %v1405_v8 = vadd.f32 %v5132_v20, %v1404_v4  ;;  %v1805_v9 = vadd.f32 %v5132_v20, %v1804_v5 }
 0x186   :  { %v3600_v10 = vpack.c.bf16 %v1986_v0, %v1986_v0  ;;  %v3700_v11 = vpack.c.bf16 %v2086_v1, %v2086_v1  ;;  %v1987_v12 = vmax.f32 %v1413_v2, 0.0  ;;  %v2087_v13 = vmax.f32 %v1813_v3, 0.0 }
 0x187   :  { %v3598_v14 = vpack.c.bf16 %v1984_v6, %v1984_v6  ;;  %v3698_v15 = vpack.c.bf16 %v2084_v7, %v2084_v7  ;;  %v1985_v44 = vmax.f32 %v1405_v8, 0.0  ;;  %v2085_v16 = vmax.f32 %v1805_v9, 0.0 }
 0x188   :  { %2987 = vst.msk [vmem:[%s5625_s3 + $0x128] sm:$0xf] %vm2912_vm2, %v3600_v10  ;;  %3087 = vst.msk [vmem:[%s5625_s3 + $0x2b8] sm:$0xf] %vm2912_vm2, %v3700_v11  ;;  %v3601_v17 = vpack.c.bf16 %v1987_v12, %v1987_v12  ;;  %v3701_v18 = vpack.c.bf16 %v2087_v13, %v2087_v13 }
 0x189   :  { %2985 = vst.msk [vmem:[%s5625_s3 + $0x120] sm:$0xf] %vm2912_vm2, %v3598_v14  ;;  %3085 = vst.msk [vmem:[%s5625_s3 + $0x2b0] sm:$0xf] %vm2912_vm2, %v3698_v15  ;;  %v3599_v19 = vpack.c.bf16 %v1985_v44, %v1985_v44  ;;  %v3699_v21 = vpack.c.bf16 %v2085_v16, %v2085_v16  ;;  %v3925_v22 = vpop.f32.mrb[76].mxu0  ;;  %v4025_v23 = vpop.f32.mrb[76].mxu1 }
 0x18a   :  { %2988 = vst.msk [vmem:[%s5625_s3 + $0x12c] sm:$0xf] %vm2912_vm2, %v3601_v17  ;;  %3088 = vst.msk [vmem:[%s5625_s3 + $0x2bc] sm:$0xf] %vm2912_vm2, %v3701_v18  ;;  %v1426_v24 = vadd.f32 %v5132_v20, %v3925_v22  ;;  %v1826_v25 = vadd.f32 %v5132_v20, %v4025_v23  ;;  %v1417_v26 = vpop.f32.mrb[77].mxu0  ;;  %v1817_v27 = vpop.f32.mrb[77].mxu1 }
 0x18b   :  { %2986 = vst.msk [vmem:[%s5625_s3 + $0x124] sm:$0xf] %vm2912_vm2, %v3599_v19  ;;  %3086 = vst.msk [vmem:[%s5625_s3 + $0x2b4] sm:$0xf] %vm2912_vm2, %v3699_v21  ;;  %v1418_v28 = vadd.f32 %v5132_v20, %v1417_v26  ;;  %v1818_v29 = vadd.f32 %v5132_v20, %v1817_v27  ;;  %v3926_v30 = vpop.f32.mrb[78].mxu0  ;;  %v4026_v31 = vpop.f32.mrb[78].mxu1 }
 0x18c   :  { %v1990_v32 = vmax.f32 %v1426_v24, 0.0  ;;  %v2090_v33 = vmax.f32 %v1826_v25, 0.0  ;;  %v1429_v34 = vadd.f32 %v5132_v20, %v3926_v30  ;;  %v1829_v35 = vadd.f32 %v5132_v20, %v4026_v31  ;;  %v1420_v36 = vpop.f32.mrb[79].mxu0  ;;  %v1820_v37 = vpop.f32.mrb[79].mxu1 }
 0x18d   :  { %v1988_v38 = vmax.f32 %v1418_v28, 0.0  ;;  %v2088_v39 = vmax.f32 %v1818_v29, 0.0  ;;  %v1421_v40 = vadd.f32 %v5132_v20, %v1420_v36  ;;  %v1821_v41 = vadd.f32 %v5132_v20, %v1820_v37 }
 0x18e   :  { %v3604_v42 = vpack.c.bf16 %v1990_v32, %v1990_v32  ;;  %v3704_v43 = vpack.c.bf16 %v2090_v33, %v2090_v33  ;;  %v1991_v45 = vmax.f32 %v1429_v34, 0.0  ;;  %v2091_v46 = vmax.f32 %v1829_v35, 0.0 }
 0x18f   :  { %v3602_v47 = vpack.c.bf16 %v1988_v38, %v1988_v38  ;;  %v3702_v48 = vpack.c.bf16 %v2088_v39, %v2088_v39  ;;  %v1989_v49 = vmax.f32 %v1421_v40, 0.0  ;;  %v2089_v50 = vmax.f32 %v1821_v41, 0.0 }
 0x190   :  { %2991 = vst.msk [vmem:[%s5625_s3 + $0x138] sm:$0xf] %vm2912_vm2, %v3604_v42  ;;  %3091 = vst.msk [vmem:[%s5625_s3 + $0x2c8] sm:$0xf] %vm2912_vm2, %v3704_v43  ;;  %v3605_v51 = vpack.c.bf16 %v1991_v45, %v1991_v45  ;;  %v3705_v52 = vpack.c.bf16 %v2091_v46, %v2091_v46 }
 0x191   :  { %2989 = vst.msk [vmem:[%s5625_s3 + $0x130] sm:$0xf] %vm2912_vm2, %v3602_v47  ;;  %3089 = vst.msk [vmem:[%s5625_s3 + $0x2c0] sm:$0xf] %vm2912_vm2, %v3702_v48  ;;  %v3603_v53 = vpack.c.bf16 %v1989_v49, %v1989_v49  ;;  %v3703_v54 = vpack.c.bf16 %v2089_v50, %v2089_v50  ;;  %v3929_v55 = vpop.f32.mrb[80].mxu0  ;;  %v4029_v56 = vpop.f32.mrb[80].mxu1 }
 0x192   :  { %2992 = vst.msk [vmem:[%s5625_s3 + $0x13c] sm:$0xf] %vm2912_vm2, %v3605_v51  ;;  %3092 = vst.msk [vmem:[%s5625_s3 + $0x2cc] sm:$0xf] %vm2912_vm2, %v3705_v52  ;;  %v1442_v57 = vadd.f32 %v5132_v20, %v3929_v55  ;;  %v1842_v58 = vadd.f32 %v5132_v20, %v4029_v56  ;;  %v1433_v59 = vpop.f32.mrb[81].mxu0  ;;  %v1833_v60 = vpop.f32.mrb[81].mxu1 }
 0x193   :  { %2990 = vst.msk [vmem:[%s5625_s3 + $0x134] sm:$0xf] %vm2912_vm2, %v3603_v53  ;;  %3090 = vst.msk [vmem:[%s5625_s3 + $0x2c4] sm:$0xf] %vm2912_vm2, %v3703_v54  ;;  %v1434_v61 = vadd.f32 %v5132_v20, %v1433_v59  ;;  %v1834_v62 = vadd.f32 %v5132_v20, %v1833_v60  ;;  %v3930_v63 = vpop.f32.mrb[82].mxu0  ;;  %v4030_v0 = vpop.f32.mrb[82].mxu1 }
 0x194   :  { %v1994_v1 = vmax.f32 %v1442_v57, 0.0  ;;  %v2094_v2 = vmax.f32 %v1842_v58, 0.0  ;;  %v1445_v3 = vadd.f32 %v5132_v20, %v3930_v63  ;;  %v1845_v4 = vadd.f32 %v5132_v20, %v4030_v0  ;;  %v1436_v5 = vpop.f32.mrb[83].mxu0  ;;  %v1836_v6 = vpop.f32.mrb[83].mxu1 }
 0x195   :  { %v1992_v7 = vmax.f32 %v1434_v61, 0.0  ;;  %v2092_v8 = vmax.f32 %v1834_v62, 0.0  ;;  %v1437_v9 = vadd.f32 %v5132_v20, %v1436_v5  ;;  %v1837_v10 = vadd.f32 %v5132_v20, %v1836_v6 }
 0x196   :  { %v3608_v11 = vpack.c.bf16 %v1994_v1, %v1994_v1  ;;  %v3708_v12 = vpack.c.bf16 %v2094_v2, %v2094_v2  ;;  %v1995_v13 = vmax.f32 %v1445_v3, 0.0  ;;  %v2095_v14 = vmax.f32 %v1845_v4, 0.0 }
 0x197   :  { %v3606_v15 = vpack.c.bf16 %v1992_v7, %v1992_v7  ;;  %v3706_v44 = vpack.c.bf16 %v2092_v8, %v2092_v8  ;;  %v1993_v16 = vmax.f32 %v1437_v9, 0.0  ;;  %v2093_v17 = vmax.f32 %v1837_v10, 0.0 }
 0x198   :  { %2995 = vst.msk [vmem:[%s5625_s3 + $0x148] sm:$0xf] %vm2912_vm2, %v3608_v11  ;;  %3095 = vst.msk [vmem:[%s5625_s3 + $0x2d8] sm:$0xf] %vm2912_vm2, %v3708_v12  ;;  %v3609_v18 = vpack.c.bf16 %v1995_v13, %v1995_v13  ;;  %v3709_v19 = vpack.c.bf16 %v2095_v14, %v2095_v14 }
 0x199   :  { %2993 = vst.msk [vmem:[%s5625_s3 + $0x140] sm:$0xf] %vm2912_vm2, %v3606_v15  ;;  %3093 = vst.msk [vmem:[%s5625_s3 + $0x2d0] sm:$0xf] %vm2912_vm2, %v3706_v44  ;;  %v3607_v21 = vpack.c.bf16 %v1993_v16, %v1993_v16  ;;  %v3707_v22 = vpack.c.bf16 %v2093_v17, %v2093_v17  ;;  %v3933_v23 = vpop.f32.mrb[84].mxu0  ;;  %v4033_v24 = vpop.f32.mrb[84].mxu1 }
 0x19a   :  { %2996 = vst.msk [vmem:[%s5625_s3 + $0x14c] sm:$0xf] %vm2912_vm2, %v3609_v18  ;;  %3096 = vst.msk [vmem:[%s5625_s3 + $0x2dc] sm:$0xf] %vm2912_vm2, %v3709_v19  ;;  %v1458_v25 = vadd.f32 %v5132_v20, %v3933_v23  ;;  %v1858_v26 = vadd.f32 %v5132_v20, %v4033_v24  ;;  %v1449_v27 = vpop.f32.mrb[85].mxu0  ;;  %v1849_v28 = vpop.f32.mrb[85].mxu1 }
 0x19b   :  { %2994 = vst.msk [vmem:[%s5625_s3 + $0x144] sm:$0xf] %vm2912_vm2, %v3607_v21  ;;  %3094 = vst.msk [vmem:[%s5625_s3 + $0x2d4] sm:$0xf] %vm2912_vm2, %v3707_v22  ;;  %v1450_v29 = vadd.f32 %v5132_v20, %v1449_v27  ;;  %v1850_v30 = vadd.f32 %v5132_v20, %v1849_v28  ;;  %v3934_v31 = vpop.f32.mrb[86].mxu0  ;;  %v4034_v32 = vpop.f32.mrb[86].mxu1 }
 0x19c   :  { %v1998_v33 = vmax.f32 %v1458_v25, 0.0  ;;  %v2098_v34 = vmax.f32 %v1858_v26, 0.0  ;;  %v1461_v35 = vadd.f32 %v5132_v20, %v3934_v31  ;;  %v1861_v36 = vadd.f32 %v5132_v20, %v4034_v32  ;;  %v1452_v37 = vpop.f32.mrb[87].mxu0  ;;  %v1852_v38 = vpop.f32.mrb[87].mxu1 }
 0x19d   :  { %v1996_v39 = vmax.f32 %v1450_v29, 0.0  ;;  %v2096_v40 = vmax.f32 %v1850_v30, 0.0  ;;  %v1453_v41 = vadd.f32 %v5132_v20, %v1452_v37  ;;  %v1853_v42 = vadd.f32 %v5132_v20, %v1852_v38 }
 0x19e   :  { %v3612_v43 = vpack.c.bf16 %v1998_v33, %v1998_v33  ;;  %v3712_v45 = vpack.c.bf16 %v2098_v34, %v2098_v34  ;;  %v1999_v46 = vmax.f32 %v1461_v35, 0.0  ;;  %v2099_v47 = vmax.f32 %v1861_v36, 0.0 }
 0x19f   :  { %v3610_v48 = vpack.c.bf16 %v1996_v39, %v1996_v39  ;;  %v3710_v49 = vpack.c.bf16 %v2096_v40, %v2096_v40  ;;  %v1997_v50 = vmax.f32 %v1453_v41, 0.0  ;;  %v2097_v51 = vmax.f32 %v1853_v42, 0.0 }
 0x1a0   :  { %2999 = vst.msk [vmem:[%s5625_s3 + $0x158] sm:$0xf] %vm2912_vm2, %v3612_v43  ;;  %3099 = vst.msk [vmem:[%s5625_s3 + $0x2e8] sm:$0xf] %vm2912_vm2, %v3712_v45  ;;  %v3613_v52 = vpack.c.bf16 %v1999_v46, %v1999_v46  ;;  %v3713_v53 = vpack.c.bf16 %v2099_v47, %v2099_v47 }
 0x1a1   :  { %2997 = vst.msk [vmem:[%s5625_s3 + $0x150] sm:$0xf] %vm2912_vm2, %v3610_v48  ;;  %3097 = vst.msk [vmem:[%s5625_s3 + $0x2e0] sm:$0xf] %vm2912_vm2, %v3710_v49  ;;  %v3611_v54 = vpack.c.bf16 %v1997_v50, %v1997_v50  ;;  %v3711_v55 = vpack.c.bf16 %v2097_v51, %v2097_v51  ;;  %v3937_v56 = vpop.f32.mrb[88].mxu0  ;;  %v4037_v57 = vpop.f32.mrb[88].mxu1 }
 0x1a2   :  { %3000 = vst.msk [vmem:[%s5625_s3 + $0x15c] sm:$0xf] %vm2912_vm2, %v3613_v52  ;;  %3100 = vst.msk [vmem:[%s5625_s3 + $0x2ec] sm:$0xf] %vm2912_vm2, %v3713_v53  ;;  %v1474_v58 = vadd.f32 %v5132_v20, %v3937_v56  ;;  %v1874_v59 = vadd.f32 %v5132_v20, %v4037_v57  ;;  %v1465_v60 = vpop.f32.mrb[89].mxu0  ;;  %v1865_v61 = vpop.f32.mrb[89].mxu1 }
 0x1a3   :  { %2998 = vst.msk [vmem:[%s5625_s3 + $0x154] sm:$0xf] %vm2912_vm2, %v3611_v54  ;;  %3098 = vst.msk [vmem:[%s5625_s3 + $0x2e4] sm:$0xf] %vm2912_vm2, %v3711_v55  ;;  %v1466_v62 = vadd.f32 %v5132_v20, %v1465_v60  ;;  %v1866_v63 = vadd.f32 %v5132_v20, %v1865_v61  ;;  %v3938_v0 = vpop.f32.mrb[90].mxu0  ;;  %v4038_v1 = vpop.f32.mrb[90].mxu1 }
 0x1a4   :  { %v2002_v2 = vmax.f32 %v1474_v58, 0.0  ;;  %v2102_v3 = vmax.f32 %v1874_v59, 0.0  ;;  %v1477_v4 = vadd.f32 %v5132_v20, %v3938_v0  ;;  %v1877_v5 = vadd.f32 %v5132_v20, %v4038_v1  ;;  %v1468_v6 = vpop.f32.mrb[91].mxu0  ;;  %v1868_v7 = vpop.f32.mrb[91].mxu1 }
 0x1a5   :  { %v2000_v8 = vmax.f32 %v1466_v62, 0.0  ;;  %v2100_v9 = vmax.f32 %v1866_v63, 0.0  ;;  %v1469_v10 = vadd.f32 %v5132_v20, %v1468_v6  ;;  %v1869_v11 = vadd.f32 %v5132_v20, %v1868_v7 }
 0x1a6   :  { %v3616_v12 = vpack.c.bf16 %v2002_v2, %v2002_v2  ;;  %v3716_v13 = vpack.c.bf16 %v2102_v3, %v2102_v3  ;;  %v2003_v14 = vmax.f32 %v1477_v4, 0.0  ;;  %v2103_v15 = vmax.f32 %v1877_v5, 0.0 }
 0x1a7   :  { %v3614_v44 = vpack.c.bf16 %v2000_v8, %v2000_v8  ;;  %v3714_v16 = vpack.c.bf16 %v2100_v9, %v2100_v9  ;;  %v2001_v17 = vmax.f32 %v1469_v10, 0.0  ;;  %v2101_v18 = vmax.f32 %v1869_v11, 0.0 }
 0x1a8   :  { %3003 = vst.msk [vmem:[%s5625_s3 + $0x168] sm:$0xf] %vm2912_vm2, %v3616_v12  ;;  %3103 = vst.msk [vmem:[%s5625_s3 + $0x2f8] sm:$0xf] %vm2912_vm2, %v3716_v13  ;;  %v3617_v19 = vpack.c.bf16 %v2003_v14, %v2003_v14  ;;  %v3717_v21 = vpack.c.bf16 %v2103_v15, %v2103_v15 }
 0x1a9   :  { %3001 = vst.msk [vmem:[%s5625_s3 + $0x160] sm:$0xf] %vm2912_vm2, %v3614_v44  ;;  %3101 = vst.msk [vmem:[%s5625_s3 + $0x2f0] sm:$0xf] %vm2912_vm2, %v3714_v16  ;;  %v3615_v22 = vpack.c.bf16 %v2001_v17, %v2001_v17  ;;  %v3715_v23 = vpack.c.bf16 %v2101_v18, %v2101_v18  ;;  %v3941_v24 = vpop.f32.mrb[92].mxu0  ;;  %v4041_v25 = vpop.f32.mrb[92].mxu1 }
 0x1aa   :  { %3004 = vst.msk [vmem:[%s5625_s3 + $0x16c] sm:$0xf] %vm2912_vm2, %v3617_v19  ;;  %3104 = vst.msk [vmem:[%s5625_s3 + $0x2fc] sm:$0xf] %vm2912_vm2, %v3717_v21  ;;  %v1490_v26 = vadd.f32 %v5132_v20, %v3941_v24  ;;  %v1890_v27 = vadd.f32 %v5132_v20, %v4041_v25  ;;  %v1481_v28 = vpop.f32.mrb[93].mxu0  ;;  %v1881_v29 = vpop.f32.mrb[93].mxu1 }
 0x1ab   :  { %3002 = vst.msk [vmem:[%s5625_s3 + $0x164] sm:$0xf] %vm2912_vm2, %v3615_v22  ;;  %3102 = vst.msk [vmem:[%s5625_s3 + $0x2f4] sm:$0xf] %vm2912_vm2, %v3715_v23  ;;  %v1482_v30 = vadd.f32 %v5132_v20, %v1481_v28  ;;  %v1882_v31 = vadd.f32 %v5132_v20, %v1881_v29  ;;  %v3942_v32 = vpop.f32.mrb[94].mxu0  ;;  %v4042_v33 = vpop.f32.mrb[94].mxu1 }
 0x1ac   :  { %v2006_v34 = vmax.f32 %v1490_v26, 0.0  ;;  %v2106_v35 = vmax.f32 %v1890_v27, 0.0  ;;  %v1493_v36 = vadd.f32 %v5132_v20, %v3942_v32  ;;  %v1893_v37 = vadd.f32 %v5132_v20, %v4042_v33  ;;  %v1484_v38 = vpop.f32.mrb[95].mxu0  ;;  %v1884_v39 = vpop.f32.mrb[95].mxu1 }
 0x1ad   :  { %v2004_v40 = vmax.f32 %v1482_v30, 0.0  ;;  %v2104_v41 = vmax.f32 %v1882_v31, 0.0  ;;  %v1485_v42 = vadd.f32 %v5132_v20, %v1484_v38  ;;  %v1885_v43 = vadd.f32 %v5132_v20, %v1884_v39 }
 0x1ae   :  { %v3620_v45 = vpack.c.bf16 %v2006_v34, %v2006_v34  ;;  %v3720_v46 = vpack.c.bf16 %v2106_v35, %v2106_v35  ;;  %v2007_v47 = vmax.f32 %v1493_v36, 0.0  ;;  %v2107_v48 = vmax.f32 %v1893_v37, 0.0 }
 0x1af   :  { %v3618_v49 = vpack.c.bf16 %v2004_v40, %v2004_v40  ;;  %v3718_v50 = vpack.c.bf16 %v2104_v41, %v2104_v41  ;;  %v2005_v51 = vmax.f32 %v1485_v42, 0.0  ;;  %v2105_v52 = vmax.f32 %v1885_v43, 0.0 }
 0x1b0   :  { %3007 = vst.msk [vmem:[%s5625_s3 + $0x178] sm:$0xf] %vm2912_vm2, %v3620_v45  ;;  %3107 = vst.msk [vmem:[%s5625_s3 + $0x308] sm:$0xf] %vm2912_vm2, %v3720_v46  ;;  %v3621_v53 = vpack.c.bf16 %v2007_v47, %v2007_v47  ;;  %v3721_v54 = vpack.c.bf16 %v2107_v48, %v2107_v48 }
 0x1b1   :  { %3005 = vst.msk [vmem:[%s5625_s3 + $0x170] sm:$0xf] %vm2912_vm2, %v3618_v49  ;;  %3105 = vst.msk [vmem:[%s5625_s3 + $0x300] sm:$0xf] %vm2912_vm2, %v3718_v50  ;;  %v3619_v55 = vpack.c.bf16 %v2005_v51, %v2005_v51  ;;  %v3719_v56 = vpack.c.bf16 %v2105_v52, %v2105_v52  ;;  %v3945_v57 = vpop.f32.mrb[96].mxu0  ;;  %v4045_v58 = vpop.f32.mrb[96].mxu1 }
 0x1b2   :  { %3008 = vst.msk [vmem:[%s5625_s3 + $0x17c] sm:$0xf] %vm2912_vm2, %v3621_v53  ;;  %3108 = vst.msk [vmem:[%s5625_s3 + $0x30c] sm:$0xf] %vm2912_vm2, %v3721_v54  ;;  %v1506_v59 = vadd.f32 %v5132_v20, %v3945_v57  ;;  %v1906_v60 = vadd.f32 %v5132_v20, %v4045_v58  ;;  %v1497_v61 = vpop.f32.mrb[97].mxu0  ;;  %v1897_v62 = vpop.f32.mrb[97].mxu1 }
 0x1b3   :  { %3006 = vst.msk [vmem:[%s5625_s3 + $0x174] sm:$0xf] %vm2912_vm2, %v3619_v55  ;;  %3106 = vst.msk [vmem:[%s5625_s3 + $0x304] sm:$0xf] %vm2912_vm2, %v3719_v56  ;;  %v1498_v63 = vadd.f32 %v5132_v20, %v1497_v61  ;;  %v1898_v0 = vadd.f32 %v5132_v20, %v1897_v62  ;;  %v3946_v1 = vpop.f32.mrb[98].mxu0  ;;  %v4046_v2 = vpop.f32.mrb[98].mxu1 }
 0x1b4   :  { %v2010_v3 = vmax.f32 %v1506_v59, 0.0  ;;  %v2110_v4 = vmax.f32 %v1906_v60, 0.0  ;;  %v1509_v5 = vadd.f32 %v5132_v20, %v3946_v1  ;;  %v1909_v6 = vadd.f32 %v5132_v20, %v4046_v2  ;;  %v1500_v7 = vpop.f32.mrb[99].mxu0  ;;  %v1900_v8 = vpop.f32.mrb[99].mxu1 }
 0x1b5   :  { %v2008_v9 = vmax.f32 %v1498_v63, 0.0  ;;  %v2108_v10 = vmax.f32 %v1898_v0, 0.0  ;;  %v1501_v11 = vadd.f32 %v5132_v20, %v1500_v7  ;;  %v1901_v12 = vadd.f32 %v5132_v20, %v1900_v8 }
 0x1b6   :  { %v3624_v13 = vpack.c.bf16 %v2010_v3, %v2010_v3  ;;  %v3724_v14 = vpack.c.bf16 %v2110_v4, %v2110_v4  ;;  %v2011_v15 = vmax.f32 %v1509_v5, 0.0  ;;  %v2111_v44 = vmax.f32 %v1909_v6, 0.0 }
 0x1b7   :  { %v3622_v16 = vpack.c.bf16 %v2008_v9, %v2008_v9  ;;  %v3722_v17 = vpack.c.bf16 %v2108_v10, %v2108_v10  ;;  %v2009_v18 = vmax.f32 %v1501_v11, 0.0  ;;  %v2109_v19 = vmax.f32 %v1901_v12, 0.0 }
 0x1b8   :  { %3011 = vst.msk [vmem:[%s5625_s3 + $0x188] sm:$0xf] %vm2912_vm2, %v3624_v13  ;;  %3111 = vst.msk [vmem:[%s5625_s3 + $0x318] sm:$0xf] %vm2912_vm2, %v3724_v14  ;;  %v3625_v21 = vpack.c.bf16 %v2011_v15, %v2011_v15  ;;  %v3725_v20 = vpack.c.bf16 %v2111_v44, %v2111_v44 }
 0x1b9   :  { %3009 = vst.msk [vmem:[%s5625_s3 + $0x180] sm:$0xf] %vm2912_vm2, %v3622_v16  ;;  %3109 = vst.msk [vmem:[%s5625_s3 + $0x310] sm:$0xf] %vm2912_vm2, %v3722_v17  ;;  %v3623_v22 = vpack.c.bf16 %v2009_v18, %v2009_v18  ;;  %v3723_v23 = vpack.c.bf16 %v2109_v19, %v2109_v19 }
 0x1ba   :  { %3012 = vst.msk [vmem:[%s5625_s3 + $0x18c] sm:$0xf] %vm2912_vm2, %v3625_v21 }
 0x1bb   :  { %3113 = vst.msk [vmem:[%s5625_s3 + $0x31c] sm:$0x3] %vm3112_vm3, %v3725_v20 }
 0x1bc   :  { %3010 = vst.msk [vmem:[%s5625_s3 + $0x184] sm:$0xf] %vm2912_vm2, %v3623_v22  ;;  %3110 = vst.msk [vmem:[%s5625_s3 + $0x314] sm:$0xf] %vm2912_vm2, %v3723_v23 }

// kernel: policy_forward.5
= control target key start
LH: loop header
LB: loop body
LE: loop exit
PB: predicated region body
PF: predicated region fallthrough
CT: control target
= control target key end

     0   :  { %v1898_v0 = vmov 0   ;;  %v1899_v2 = vmov 0.0   ;;  %vm1900_vm0 = vmmov 0   ;;  %vm596_vm1 = vcmask 261120   ;;  %s2613_s1 = inlined_call_operand.vmem [shape: bf16[288,32], index: 1, kind: input, shape index: {}]   ;;  %s2614_s0 = inlined_call_operand.vmem [shape: bf16[360,288], index: 0, kind: input, shape index: {}]   ;;  %s2615_s2 = inlined_call_operand.vmem [shape: f32[1,32], index: 2, kind: input, shape index: {}]   ;;  %s2616_s3 = inlined_call_operand.vmem [shape: bf16[360,32], index: 3, kind: output, shape index: {}]  }
   0x1   :  { %666 = vmatprep.subr.bf16.mxu1 %v1898_v0  ;;  %v1789_v1 = vld [vmem:[%s2613_s1] sm:$0xff]   ;;  %1600 = vmatprep.subr.bf16.mxu0 %v1899_v2  ;;  %v1790_v3 = vld [vmem:[%s2613_s1 + $0x8] sm:$0xff]   ;;  %v1791_v4 = vld [vmem:[%s2613_s1 + $0x10] sm:$0xff]   ;;  %vm1324_vm2 = vcmask 257024  }
   0x2   :  { %1604 = vmatprep.mubr.msk.bf16.mxu0 %vm1900_vm0, %v1899_v2  ;;  %667 = vmatpush1.bf16.msra.mxu1 %v1789_v1  ;;  %v1792_v5 = vld [vmem:[%s2613_s1 + $0x18] sm:$0xff]   ;;  %v1793_v6 = vld [vmem:[%s2613_s1 + $0x20] sm:$0xff]   ;;  %v1805_v8 = vld [vmem:[%s2613_s1 + $0x88] sm:$0xff]  }
   0x3   :  { %668 = vmatprep.subr.bf16.mxu1 %v1898_v0  ;;  %v1803_v7 = vld [vmem:[%s2613_s1 + $0x80] sm:$0xff]   ;;  %v1794_v9 = vld [vmem:[%s2613_s1 + $0x28] sm:$0xff]   ;;  %v1795_v12 = vld [vmem:[%s2613_s1 + $0x30] sm:$0xff]  }
   0x4   :  { %1601 = vmatpush3.bf16.msra.mxu0 %v1803_v7  ;;  %v1809_v10 = vld [vmem:[%s2614_s0 + $0x4] ss:$12 sps:$4 sm:$0xff]   ;;  %v1810_v11 = vld [vmem:[%s2614_s0 + $0x8] ss:$12 sps:$4 sm:$0xff]   ;;  %v1796_v13 = vld [vmem:[%s2613_s1 + $0x38] sm:$0xff]  }
   0x5   :  { %1602 = vmatprep.subr.bf16.mxu0 %v1899_v2  ;;  %698 = vmatprep.mubr.bf16.mxu1 %v1809_v10  ;;  %v1813_v14 = vld [vmem:[%s2614_s0 + $0x20] ss:$12 sps:$4 sm:$0xff]   ;;  %v1817_v17 = vld [vmem:[%s2614_s0 + $0x38] ss:$12 sps:$4 sm:$0xff]   ;;  %v1799_v18 = vld [vmem:[%s2613_s1 + $0x50] sm:$0xff]  }
   0x6   :  { %669 = vmatpush1.bf16.msra.mxu1 %v1790_v3  ;;  %v1797_v15 = vld [vmem:[%s2613_s1 + $0x40] sm:$0xff]   ;;  %v1798_v16 = vld [vmem:[%s2613_s1 + $0x48] sm:$0xff]   ;;  %v1800_v19 = vld [vmem:[%s2613_s1 + $0x58] sm:$0xff]  }
   0x7   :  { %670 = vmatprep.subr.bf16.mxu1 %v1898_v0  ;;  %v1821_v20 = vld [vmem:[%s2614_s0 + $0x50] ss:$12 sps:$4 sm:$0xff]   ;;  %v1801_v21 = vld [vmem:[%s2613_s1 + $0x60] sm:$0xff]   ;;  %v1802_v22 = vld [vmem:[%s2613_s1 + $0x68] sm:$0xff]  }
   0x8   :  { %1603 = vmatpush3.bf16.msra.mxu0 %v1805_v8  ;;  %v1825_v23 = vld [vmem:[%s2614_s0 + $0x68] ss:$12 sps:$4 sm:$0xff]   ;;  %v1806_v25 = vld [vmem:[%s2613_s1 + $0x78] sm:$0xff]   ;;  %v1829_v26 = vld [vmem:[%s2614_s0 + $0x80] ss:$12 sps:$4 sm:$0xff]  }
   0x9   :  { %v1804_v24 = vld [vmem:[%s2613_s1 + $0x70] sm:$0xff]   ;;  %v1807_v27 = vld [vmem:[%s2614_s0] ss:$12 sps:$4 sm:$0xff]   ;;  %v1811_v28 = vld [vmem:[%s2614_s0 + $0x1c] ss:$12 sps:$4 sm:$0xff]  }
   0xa   :  { %671 = vmatpush1.bf16.msra.mxu1 %v1791_v4  ;;  %v1833_v29 = vld [vmem:[%s2614_s0 + $0x98] ss:$12 sps:$4 sm:$0xff]   ;;  %v1815_v31 = vld [vmem:[%s2614_s0 + $0x34] ss:$12 sps:$4 sm:$0xff]   ;;  %v1837_v32 = vld [vmem:[%s2614_s0 + $0xb0] ss:$12 sps:$4 sm:$0xff]  }
   0xb   :  { %672 = vmatprep.subr.bf16.mxu1 %v1898_v0  ;;  %1605 = vmatmul.mubr.msk.bf16.vlgmr.msra.gmra.mrb[0].mxu0 %vm596_vm1, %v1810_v11  ;;  %v1814_v30 = vld [vmem:[%s2614_s0 + $0x18] ss:$12 sps:$4 sm:$0xff]   ;;  %v1818_v33 = vld [vmem:[%s2614_s0 + $0x30] ss:$12 sps:$4 sm:$0xff]   ;;  %v1841_v35 = vld [vmem:[%s2614_s0 + $0xc8] ss:$12 sps:$4 sm:$0xff]  }
   0xc   :  { %1608 = vmatprep.mubr.msk.bf16.mxu0 %vm1900_vm0, %v1899_v2  ;;  %v1819_v34 = vld [vmem:[%s2614_s0 + $0x4c] ss:$12 sps:$4 sm:$0xff]   ;;  %v1822_v36 = vld [vmem:[%s2614_s0 + $0x48] ss:$12 sps:$4 sm:$0xff]   ;;  %v1823_v37 = vld [vmem:[%s2614_s0 + $0x64] ss:$12 sps:$4 sm:$0xff]  }
   0xd   :  { %v1845_v38 = vld [vmem:[%s2614_s0 + $0xe0] ss:$12 sps:$4 sm:$0xff]   ;;  %v1827_v40 = vld [vmem:[%s2614_s0 + $0x7c] ss:$12 sps:$4 sm:$0xff]   ;;  %v1849_v41 = vld [vmem:[%s2614_s0 + $0xf8] ss:$12 sps:$4 sm:$0xff]  }
   0xe   :  { %673 = vmatpush1.bf16.msra.mxu1 %v1792_v5  ;;  %v1826_v39 = vld [vmem:[%s2614_s0 + $0x60] ss:$12 sps:$4 sm:$0xff]   ;;  %v1830_v42 = vld [vmem:[%s2614_s0 + $0x78] ss:$12 sps:$4 sm:$0xff]   ;;  %v1853_v44 = vld [vmem:[%s2614_s0 + $0x110] ss:$12 sps:$4 sm:$0xff]  }
   0xf   :  { %674 = vmatprep.subr.bf16.mxu1 %v1898_v0  ;;  %v1831_v43 = vld [vmem:[%s2614_s0 + $0x94] ss:$12 sps:$4 sm:$0xff]   ;;  %v1834_v45 = vld [vmem:[%s2614_s0 + $0x90] ss:$12 sps:$4 sm:$0xff]   ;;  %v1835_v46 = vld [vmem:[%s2614_s0 + $0xac] ss:$12 sps:$4 sm:$0xff]  }
  0x10   :  { %v1857_v47 = vld [vmem:[%s2614_s0 + $0x128] ss:$12 sps:$4 sm:$0xff]   ;;  %v1839_v49 = vld [vmem:[%s2614_s0 + $0xc4] ss:$12 sps:$4 sm:$0xff]   ;;  %v1861_v50 = vld [vmem:[%s2614_s0 + $0x140] ss:$12 sps:$4 sm:$0xff]  }
  0x11   :  { %v1838_v48 = vld [vmem:[%s2614_s0 + $0xa8] ss:$12 sps:$4 sm:$0xff]   ;;  %v1842_v51 = vld [vmem:[%s2614_s0 + $0xc0] ss:$12 sps:$4 sm:$0xff]   ;;  %v1865_v53 = vld [vmem:[%s2614_s0 + $0x158] ss:$12 sps:$4 sm:$0xff]  }
  0x12   :  { %675 = vmatpush1.bf16.msra.mxu1 %v1793_v6  ;;  %v1843_v52 = vld [vmem:[%s2614_s0 + $0xdc] ss:$12 sps:$4 sm:$0xff]   ;;  %v1846_v54 = vld [vmem:[%s2614_s0 + $0xd8] ss:$12 sps:$4 sm:$0xff]   ;;  %v1847_v55 = vld [vmem:[%s2614_s0 + $0xf4] ss:$12 sps:$4 sm:$0xff]  }
  0x13   :  { %676 = vmatprep.subr.bf16.mxu1 %v1898_v0  ;;  %1609 = vmatmul.mubr.msk.bf16.gmra.mrb[4].mxu0 %vm596_vm1, %v1813_v14  ;;  %v1869_v56 = vld [vmem:[%s2614_s0 + $0x170] ss:$12 sps:$4 sm:$0xff]   ;;  %v1851_v58 = vld [vmem:[%s2614_s0 + $0x10c] ss:$12 sps:$4 sm:$0xff]   ;;  %v1873_v59 = vld [vmem:[%s2614_s0 + $0x188] ss:$12 sps:$4 sm:$0xff]  }
  0x14   :  { %1612 = vmatprep.mubr.msk.bf16.mxu0 %vm1900_vm0, %v1899_v2  ;;  %v1850_v57 = vld [vmem:[%s2614_s0 + $0xf0] ss:$12 sps:$4 sm:$0xff]   ;;  %v1854_v60 = vld [vmem:[%s2614_s0 + $0x108] ss:$12 sps:$4 sm:$0xff]   ;;  %v1877_v62 = vld [vmem:[%s2614_s0 + $0x1a0] ss:$12 sps:$4 sm:$0xff]  }
  0x15   :  { %v1855_v61 = vld [vmem:[%s2614_s0 + $0x124] ss:$12 sps:$4 sm:$0xff]   ;;  %v1858_v63 = vld [vmem:[%s2614_s0 + $0x120] ss:$12 sps:$4 sm:$0xff]   ;;  %v1889_v8 = vld [vmem:[%s2614_s0 + $0x1e8] ss:$12 sps:$4 sm:$0xff]  }
  0x16   :  { %677 = vmatpush1.bf16.msra.mxu1 %v1794_v9  ;;  %v1881_v1 = vld [vmem:[%s2614_s0 + $0x1b8] ss:$12 sps:$4 sm:$0xff]   ;;  %v1863_v4 = vld [vmem:[%s2614_s0 + $0x154] ss:$12 sps:$4 sm:$0xff]   ;;  %v1885_v5 = vld [vmem:[%s2614_s0 + $0x1d0] ss:$12 sps:$4 sm:$0xff]  }
  0x17   :  { %678 = vmatprep.subr.bf16.mxu1 %v1898_v0  ;;  %v1862_v3 = vld [vmem:[%s2614_s0 + $0x138] ss:$12 sps:$4 sm:$0xff]   ;;  %v1866_v6 = vld [vmem:[%s2614_s0 + $0x150] ss:$12 sps:$4 sm:$0xff]   ;;  %v1870_v9 = vld [vmem:[%s2614_s0 + $0x168] ss:$12 sps:$4 sm:$0xff]  }
  0x18   :  { %v1867_v7 = vld [vmem:[%s2614_s0 + $0x16c] ss:$12 sps:$4 sm:$0xff]   ;;  %v1871_v10 = vld [vmem:[%s2614_s0 + $0x184] ss:$12 sps:$4 sm:$0xff]  }
  0x19   :  { %v1893_v11 = vld [vmem:[%s2614_s0 + $0x200] ss:$12 sps:$4 sm:$0xff]   ;;  %v1896_v14 = vld [vmem:[%s2614_s0 + $0x218] ss:$0 sps:$4 sm:$0xff]  }
  0x1a   :  { %679 = vmatpush1.bf16.msra.mxu1 %v1795_v12  ;;  %v1874_v12 = vld [vmem:[%s2614_s0 + $0x180] ss:$12 sps:$4 sm:$0xff]  }
  0x1b   :  { %680 = vmatprep.subr.bf16.mxu1 %v1898_v0  ;;  %1613 = vmatmul.mubr.msk.bf16.gmra.mrb[8].mxu0 %vm596_vm1, %v1817_v17  ;;  %v1883_v17 = vld [vmem:[%s2614_s0 + $0x1cc] ss:$12 sps:$4 sm:$0xff]  }
  0x1c   :  { %1616 = vmatprep.mubr.msk.bf16.mxu0 %vm1900_vm0, %v1899_v2 }
  0x1e   :  { %681 = vmatpush1.bf16.msra.mxu1 %v1796_v13  ;;  %v1875_v13 = vld [vmem:[%s2614_s0 + $0x19c] ss:$12 sps:$4 sm:$0xff]  }
  0x1f   :  { %682 = vmatprep.subr.bf16.mxu1 %v1898_v0 }
  0x22   :  { %683 = vmatpush1.bf16.msra.mxu1 %v1797_v15  ;;  %v1878_v15 = vld [vmem:[%s2614_s0 + $0x198] ss:$12 sps:$4 sm:$0xff]  }
  0x23   :  { %684 = vmatprep.subr.bf16.mxu1 %v1898_v0  ;;  %1617 = vmatmul.mubr.msk.bf16.gmra.mrb[12].mxu0 %vm596_vm1, %v1821_v20  ;;  %v1890_v20 = vld [vmem:[%s2614_s0 + $0x1e0] ss:$12 sps:$4 sm:$0xff]  }
  0x24   :  { %1620 = vmatprep.mubr.msk.bf16.mxu0 %vm1900_vm0, %v1899_v2 }
  0x26   :  { %685 = vmatpush1.bf16.msra.mxu1 %v1798_v16  ;;  %v1879_v16 = vld [vmem:[%s2614_s0 + $0x1b4] ss:$12 sps:$4 sm:$0xff]  }
  0x27   :  { %686 = vmatprep.subr.bf16.mxu1 %v1898_v0 }
  0x2a   :  { %687 = vmatpush1.bf16.msra.mxu1 %v1799_v18  ;;  %v1886_v18 = vld [vmem:[%s2614_s0 + $0x1c8] ss:$12 sps:$4 sm:$0xff]  }
  0x2b   :  { %688 = vmatprep.subr.bf16.mxu1 %v1898_v0  ;;  %1621 = vmatmul.mubr.msk.bf16.gmra.mrb[16].mxu0 %vm596_vm1, %v1825_v23  ;;  %v1894_v23 = vld [vmem:[%s2614_s0 + $0x1f8] ss:$12 sps:$4 sm:$0xff]  }
  0x2c   :  { %1624 = vmatprep.mubr.msk.bf16.mxu0 %vm1900_vm0, %v1899_v2 }
  0x2e   :  { %689 = vmatpush1.bf16.msra.mxu1 %v1800_v19  ;;  %v1887_v19 = vld [vmem:[%s2614_s0 + $0x1e4] ss:$12 sps:$4 sm:$0xff]  }
  0x2f   :  { %690 = vmatprep.subr.bf16.mxu1 %v1898_v0 }
  0x32   :  { %691 = vmatpush1.bf16.msra.mxu1 %v1801_v21  ;;  %v1891_v21 = vld [vmem:[%s2614_s0 + $0x1fc] ss:$12 sps:$4 sm:$0xff]  }
  0x33   :  { %692 = vmatprep.subr.bf16.mxu1 %v1898_v0  ;;  %1625 = vmatmul.mubr.msk.bf16.gmra.mrb[20].mxu0 %vm596_vm1, %v1829_v26 }
  0x34   :  { %1628 = vmatprep.mubr.msk.bf16.mxu0 %vm1900_vm0, %v1899_v2 }
  0x36   :  { %693 = vmatpush1.bf16.msra.mxu1 %v1802_v22  ;;  %v103_v22 = vld [vmem:[%s2614_s0 + $0x210] sm:$0xff] }
  0x37   :  { %694 = vmatprep.subr.bf16.mxu1 %v1898_v0 }
  0x3a   :  { %695 = vmatpush1.bf16.msra.mxu1 %v1804_v24  ;;  %v1442_v24 = vcombine.high %v103_v22, %v103_v22 }
  0x3b   :  { %696 = vmatprep.subr.bf16.mxu1 %v1898_v0  ;;  %1629 = vmatmul.mubr.msk.bf16.gmra.mrb[24].mxu0 %vm596_vm1, %v1833_v29  ;;  %v1859_v0 = vld [vmem:[%s2614_s0 + $0x13c] ss:$12 sps:$4 sm:$0xff]  }
  0x3c   :  { %1632 = vmatprep.mubr.msk.bf16.mxu0 %vm1900_vm0, %v1899_v2 }
  0x3e   :  { %697 = vmatpush1.bf16.msra.mxu1 %v1806_v25 }
  0x41   :  { %699 = vmatmul.mubr.bf16.vlgmr.msra.gmra.mrb[0].mxu1 %v1807_v27 }
  0x42   :  { %706 = vmatprep.mubr.bf16.mxu1 %v1811_v28  ;;  %v1441_v28 = vcombine.low %v103_v22, %v103_v22 }
  0x43   :  { %1633 = vmatmul.mubr.msk.bf16.gmra.mrb[28].mxu0 %vm596_vm1, %v1837_v32 }
  0x44   :  { %1636 = vmatprep.mubr.msk.bf16.mxu0 %vm1900_vm0, %v1899_v2 }
  0x49   :  { %707 = vmatmul.mubr.bf16.gmra.mrb[4].mxu1 %v1814_v30 }
  0x4a   :  { %714 = vmatprep.mubr.bf16.mxu1 %v1815_v31 }
  0x4b   :  { %1637 = vmatmul.mubr.msk.bf16.gmra.mrb[32].mxu0 %vm596_vm1, %v1841_v35 }
  0x4c   :  { %1640 = vmatprep.mubr.msk.bf16.mxu0 %vm1900_vm0, %v1899_v2 }
  0x51   :  { %715 = vmatmul.mubr.bf16.gmra.mrb[8].mxu1 %v1818_v33 }
  0x52   :  { %722 = vmatprep.mubr.bf16.mxu1 %v1819_v34 }
  0x53   :  { %1641 = vmatmul.mubr.msk.bf16.gmra.mrb[36].mxu0 %vm596_vm1, %v1845_v38 }
  0x54   :  { %1644 = vmatprep.mubr.msk.bf16.mxu0 %vm1900_vm0, %v1899_v2 }
  0x59   :  { %723 = vmatmul.mubr.bf16.gmra.mrb[12].mxu1 %v1822_v36 }
  0x5a   :  { %730 = vmatprep.mubr.bf16.mxu1 %v1823_v37 }
  0x5b   :  { %1645 = vmatmul.mubr.msk.bf16.gmra.mrb[40].mxu0 %vm596_vm1, %v1849_v41 }
  0x5c   :  { %1648 = vmatprep.mubr.msk.bf16.mxu0 %vm1900_vm0, %v1899_v2 }
  0x61   :  { %731 = vmatmul.mubr.bf16.gmra.mrb[16].mxu1 %v1826_v39 }
  0x62   :  { %738 = vmatprep.mubr.bf16.mxu1 %v1827_v40 }
  0x63   :  { %1649 = vmatmul.mubr.msk.bf16.gmra.mrb[44].mxu0 %vm596_vm1, %v1853_v44 }
  0x64   :  { %1652 = vmatprep.mubr.msk.bf16.mxu0 %vm1900_vm0, %v1899_v2 }
  0x69   :  { %739 = vmatmul.mubr.bf16.gmra.mrb[20].mxu1 %v1830_v42 }
  0x6a   :  { %746 = vmatprep.mubr.bf16.mxu1 %v1831_v43 }
  0x6b   :  { %1653 = vmatmul.mubr.msk.bf16.gmra.mrb[48].mxu0 %vm596_vm1, %v1857_v47 }
  0x6c   :  { %1656 = vmatprep.mubr.msk.bf16.mxu0 %vm1900_vm0, %v1899_v2 }
  0x71   :  { %747 = vmatmul.mubr.bf16.gmra.mrb[24].mxu1 %v1834_v45 }
  0x72   :  { %754 = vmatprep.mubr.bf16.mxu1 %v1835_v46  ;;  %v2277_v46 = vld [vmem:[%s2615_s2] ss:$0 sm:$0xff] }
  0x73   :  { %1657 = vmatmul.mubr.msk.bf16.gmra.mrb[52].mxu0 %vm596_vm1, %v1861_v50 }
  0x74   :  { %1660 = vmatprep.mubr.msk.bf16.mxu0 %vm1900_vm0, %v1899_v2 }
  0x79   :  { %755 = vmatmul.mubr.bf16.gmra.mrb[28].mxu1 %v1838_v48 }
  0x7a   :  { %762 = vmatprep.mubr.bf16.mxu1 %v1839_v49 }
  0x7b   :  { %1661 = vmatmul.mubr.msk.bf16.gmra.mrb[56].mxu0 %vm596_vm1, %v1865_v53 }
  0x7c   :  { %1664 = vmatprep.mubr.msk.bf16.mxu0 %vm1900_vm0, %v1899_v2 }
  0x81   :  { %763 = vmatmul.mubr.bf16.gmra.mrb[32].mxu1 %v1842_v51 }
  0x82   :  { %770 = vmatprep.mubr.bf16.mxu1 %v1843_v52 }
  0x83   :  { %1665 = vmatmul.mubr.msk.bf16.gmra.mrb[60].mxu0 %vm596_vm1, %v1869_v56 }
  0x84   :  { %1668 = vmatprep.mubr.msk.bf16.mxu0 %vm1900_vm0, %v1899_v2 }
  0x89   :  { %771 = vmatmul.mubr.bf16.gmra.mrb[36].mxu1 %v1846_v54 }
  0x8a   :  { %778 = vmatprep.mubr.bf16.mxu1 %v1847_v55 }
  0x8b   :  { %1669 = vmatmul.mubr.msk.bf16.gmra.mrb[64].mxu0 %vm596_vm1, %v1873_v59 }
  0x8c   :  { %1672 = vmatprep.mubr.msk.bf16.mxu0 %vm1900_vm0, %v1899_v2 }
  0x91   :  { %779 = vmatmul.mubr.bf16.gmra.mrb[40].mxu1 %v1850_v57 }
  0x92   :  { %786 = vmatprep.mubr.bf16.mxu1 %v1851_v58 }
  0x93   :  { %1673 = vmatmul.mubr.msk.bf16.gmra.mrb[68].mxu0 %vm596_vm1, %v1877_v62 }
  0x94   :  { %1676 = vmatprep.mubr.msk.bf16.mxu0 %vm1900_vm0, %v1899_v2 }
  0x99   :  { %787 = vmatmul.mubr.bf16.gmra.mrb[44].mxu1 %v1854_v60 }
  0x9a   :  { %794 = vmatprep.mubr.bf16.mxu1 %v1855_v61 }
  0x9b   :  { %1677 = vmatmul.mubr.msk.bf16.gmra.mrb[72].mxu0 %vm596_vm1, %v1881_v1 }
  0x9c   :  { %1680 = vmatprep.mubr.msk.bf16.mxu0 %vm1900_vm0, %v1899_v2 }
  0xa1   :  { %795 = vmatmul.mubr.bf16.gmra.mrb[48].mxu1 %v1858_v63 }
  0xa2   :  { %802 = vmatprep.mubr.bf16.mxu1 %v1859_v0 }
  0xa3   :  { %1681 = vmatmul.mubr.msk.bf16.gmra.mrb[76].mxu0 %vm596_vm1, %v1885_v5 }
  0xa4   :  { %1684 = vmatprep.mubr.msk.bf16.mxu0 %vm1900_vm0, %v1899_v2 }
  0xa9   :  { %803 = vmatmul.mubr.bf16.gmra.mrb[52].mxu1 %v1862_v3 }
  0xaa   :  { %810 = vmatprep.mubr.bf16.mxu1 %v1863_v4 }
  0xab   :  { %1685 = vmatmul.mubr.msk.bf16.gmra.mrb[80].mxu0 %vm596_vm1, %v1889_v8 }
  0xac   :  { %1688 = vmatprep.mubr.msk.bf16.mxu0 %vm1900_vm0, %v1899_v2 }
  0xb1   :  { %811 = vmatmul.mubr.bf16.gmra.mrb[56].mxu1 %v1866_v6 }
  0xb2   :  { %818 = vmatprep.mubr.bf16.mxu1 %v1867_v7 }
  0xb3   :  { %1689 = vmatmul.mubr.msk.bf16.gmra.mrb[84].mxu0 %vm596_vm1, %v1893_v11 }
  0xb4   :  { %1692 = vmatprep.mubr.msk.bf16.mxu0 %vm1900_vm0, %v1899_v2  ;;  %v1882_v2 = vld [vmem:[%s2614_s0 + $0x1b0] ss:$12 sps:$4 sm:$0xff]  }
  0xb9   :  { %819 = vmatmul.mubr.bf16.gmra.mrb[60].mxu1 %v1870_v9 }
  0xba   :  { %826 = vmatprep.mubr.bf16.mxu1 %v1871_v10 }
  0xbb   :  { %1693 = vmatmul.mubr.msk.bf16.gmra.mrb[88].mxu0 %vm596_vm1, %v1896_v14 }
  0xc1   :  { %827 = vmatmul.mubr.bf16.gmra.mrb[64].mxu1 %v1874_v12 }
  0xc2   :  { %834 = vmatprep.mubr.bf16.mxu1 %v1875_v13 }
  0xc9   :  { %835 = vmatmul.mubr.bf16.gmra.mrb[68].mxu1 %v1878_v15 }
  0xca   :  { %842 = vmatprep.mubr.bf16.mxu1 %v1879_v16 }
  0xd1   :  { %843 = vmatmul.mubr.bf16.gmra.mrb[72].mxu1 %v1882_v2 }
  0xd2   :  { %850 = vmatprep.mubr.bf16.mxu1 %v1883_v17 }
  0xd9   :  { %851 = vmatmul.mubr.bf16.gmra.mrb[76].mxu1 %v1886_v18 }
  0xda   :  { %858 = vmatprep.mubr.bf16.mxu1 %v1887_v19 }
  0xde   :  { %v916_v25 = vpop.f32.mrb[0].mxu0 }
  0xdf   :  { %v1606_v26 = vpop.f32.mrb[1].mxu0 }
  0xe0   :  { %v919_v27 = vpop.f32.mrb[2].mxu0 }
  0xe1   :  { %859 = vmatmul.mubr.bf16.gmra.mrb[80].mxu1 %v1890_v20  ;;  %v1607_v29 = vpop.f32.mrb[3].mxu0 }
  0xe2   :  { %866 = vmatprep.mubr.bf16.mxu1 %v1891_v21 }
  0xe6   :  { %v924_v30 = vpop.f32.mrb[4].mxu0 }
  0xe7   :  { %v1610_v31 = vpop.f32.mrb[5].mxu0 }
  0xe8   :  { %v927_v32 = vpop.f32.mrb[6].mxu0 }
  0xe9   :  { %867 = vmatmul.mubr.bf16.gmra.mrb[84].mxu1 %v1894_v23  ;;  %v1611_v33 = vpop.f32.mrb[7].mxu0 }
  0xea   :  { %874 = vmatprep.mubr.bf16.mxu1 %v1442_v24 }
  0xee   :  { %v932_v34 = vpop.f32.mrb[8].mxu0 }
  0xef   :  { %v1614_v35 = vpop.f32.mrb[9].mxu0 }
  0xf0   :  { %v935_v36 = vpop.f32.mrb[10].mxu0 }
  0xf1   :  { %875 = vmatmul.mubr.bf16.gmra.mrb[88].mxu1 %v1441_v28  ;;  %v1615_v37 = vpop.f32.mrb[11].mxu0 }
  0xf6   :  { %v2266_v38 = vpop.f32.mrb[12].mxu0 }
  0xf7   :  { %v1618_v39 = vpop.f32.mrb[13].mxu0 }
  0xf8   :  { %v2268_v40 = vpop.f32.mrb[14].mxu0 }
  0xf9   :  { %v1619_v41 = vpop.f32.mrb[15].mxu0 }
  0xfe   :  { %v2270_v42 = vpop.f32.mrb[16].mxu0 }
  0xff   :  { %v1622_v43 = vpop.f32.mrb[17].mxu0 }
 0x100   :  { %v2272_v44 = vpop.f32.mrb[18].mxu0 }
 0x101   :  { %v1623_v45 = vpop.f32.mrb[19].mxu0 }
 0x106   :  { %v2279_v47 = vpop.f32.mrb[20].mxu0 }
 0x107   :  { %v1626_v48 = vpop.f32.mrb[21].mxu0 }
 0x108   :  { %v2281_v50 = vpop.f32.mrb[22].mxu0 }
 0x109   :  { %v1627_v53 = vpop.f32.mrb[23].mxu0 }
 0x10e   :  { %v2285_v60 = vpop.f32.mrb[24].mxu0 }
 0x10f   :  { %v1630_v63 = vpop.f32.mrb[25].mxu0 }
 0x110   :  { %v2287_v1 = vpop.f32.mrb[26].mxu0 }
 0x111   :  { %v1631_v6 = vpop.f32.mrb[27].mxu0 }
 0x114   :  { %v700_v49 = vpop.f32.mrb[0].mxu1 }
 0x115   :  { %v701_v51 = vadd.f32 %v2277_v46, %v700_v49  ;;  %v702_v52 = vpop.f32.mrb[1].mxu1 }
 0x116   :  { %v703_v54 = vpop.f32.mrb[2].mxu1  ;;  %v2299_v13 = vpop.f32.mrb[28].mxu0 }
 0x117   :  { %v917_v55 = vadd.f32 %v916_v25, %v701_v51  ;;  %v704_v56 = vadd.f32 %v2277_v46, %v703_v54  ;;  %v705_v57 = vpop.f32.mrb[3].mxu1  ;;  %v1634_v16 = vpop.f32.mrb[29].mxu0 }
 0x118   :  { %v2301_v17 = vpop.f32.mrb[30].mxu0 }
 0x119   :  { %v1098_v58 = vmax.f32 %v917_v55, 0.0  ;;  %v920_v59 = vadd.f32 %v919_v27, %v704_v56  ;;  %v1635_v21 = vpop.f32.mrb[31].mxu0 }
 0x11b   :  { %v1530_v61 = vpack.c.bf16 %v1098_v58, %v1098_v58  ;;  %v1099_v62 = vmax.f32 %v920_v59, 0.0 }
 0x11c   :  { %v708_v0 = vpop.f32.mrb[4].mxu1 }
 0x11d   :  { %1325 = vst.msk [vmem:[%s2616_s3] sm:$0xf] %vm1324_vm2, %v1530_v61  ;;  %v1531_v3 = vpack.c.bf16 %v1099_v62, %v1099_v62  ;;  %v709_v4 = vadd.f32 %v2277_v46, %v708_v0  ;;  %v710_v5 = vpop.f32.mrb[5].mxu1 }
 0x11e   :  { %v711_v7 = vpop.f32.mrb[6].mxu1  ;;  %v2313_v28 = vpop.f32.mrb[32].mxu0 }
 0x11f   :  { %1326 = vst.msk [vmem:[%s2616_s3 + $0x4] sm:$0xf] %vm1324_vm2, %v1531_v3  ;;  %v925_v8 = vadd.f32 %v924_v30, %v709_v4  ;;  %v712_v9 = vadd.f32 %v2277_v46, %v711_v7  ;;  %v713_v10 = vpop.f32.mrb[7].mxu1  ;;  %v1638_v31 = vpop.f32.mrb[33].mxu0 }
 0x120   :  { %v2315_v33 = vpop.f32.mrb[34].mxu0 }
 0x121   :  { %v1100_v11 = vmax.f32 %v925_v8, 0.0  ;;  %v928_v12 = vadd.f32 %v927_v32, %v712_v9  ;;  %v1639_v39 = vpop.f32.mrb[35].mxu0 }
 0x123   :  { %v1532_v14 = vpack.c.bf16 %v1100_v11, %v1100_v11  ;;  %v1101_v15 = vmax.f32 %v928_v12, 0.0 }
 0x124   :  { %v716_v2 = vpop.f32.mrb[8].mxu1 }
 0x125   :  { %1327 = vst.msk [vmem:[%s2616_s3 + $0x8] sm:$0xf] %vm1324_vm2, %v1532_v14  ;;  %v1533_v18 = vpack.c.bf16 %v1101_v15, %v1101_v15  ;;  %v717_v19 = vadd.f32 %v2277_v46, %v716_v2  ;;  %v718_v20 = vpop.f32.mrb[9].mxu1 }
 0x126   :  { %v719_v22 = vpop.f32.mrb[10].mxu1  ;;  %v2329_v51 = vpop.f32.mrb[36].mxu0 }
 0x127   :  { %1328 = vst.msk [vmem:[%s2616_s3 + $0xc] sm:$0xf] %vm1324_vm2, %v1533_v18  ;;  %v933_v23 = vadd.f32 %v932_v34, %v717_v19  ;;  %v720_v24 = vadd.f32 %v2277_v46, %v719_v22  ;;  %v721_v25 = vpop.f32.mrb[11].mxu1  ;;  %v1642_v54 = vpop.f32.mrb[37].mxu0 }
 0x128   :  { %v2331_v56 = vpop.f32.mrb[38].mxu0 }
 0x129   :  { %v1102_v26 = vmax.f32 %v933_v23, 0.0  ;;  %v936_v27 = vadd.f32 %v935_v36, %v720_v24  ;;  %v1643_v59 = vpop.f32.mrb[39].mxu0 }
 0x12b   :  { %v1534_v29 = vpack.c.bf16 %v1102_v26, %v1102_v26  ;;  %v1103_v30 = vmax.f32 %v936_v27, 0.0 }
 0x12c   :  { %v724_v32 = vpop.f32.mrb[12].mxu1 }
 0x12d   :  { %1329 = vst.msk [vmem:[%s2616_s3 + $0x10] sm:$0xf] %vm1324_vm2, %v1534_v29  ;;  %v1535_v35 = vpack.c.bf16 %v1103_v30, %v1103_v30  ;;  %v725_v34 = vadd.f32 %v2277_v46, %v724_v32  ;;  %v726_v37 = vpop.f32.mrb[13].mxu1 }
 0x12e   :  { %v727_v41 = vpop.f32.mrb[14].mxu1  ;;  %v2345_v4 = vpop.f32.mrb[40].mxu0 }
 0x12f   :  { %1330 = vst.msk [vmem:[%s2616_s3 + $0x14] sm:$0xf] %vm1324_vm2, %v1535_v35  ;;  %v941_v36 = vadd.f32 %v2266_v38, %v725_v34  ;;  %v728_v43 = vadd.f32 %v2277_v46, %v727_v41  ;;  %v729_v45 = vpop.f32.mrb[15].mxu1  ;;  %v1646_v7 = vpop.f32.mrb[41].mxu0 }
 0x130   :  { %v2347_v9 = vpop.f32.mrb[42].mxu0 }
 0x131   :  { %v1104_v48 = vmax.f32 %v941_v36, 0.0  ;;  %v944_v49 = vadd.f32 %v2268_v40, %v728_v43  ;;  %v1647_v12 = vpop.f32.mrb[43].mxu0 }
 0x133   :  { %v1536_v52 = vpack.c.bf16 %v1104_v48, %v1104_v48  ;;  %v1105_v53 = vmax.f32 %v944_v49, 0.0 }
 0x134   :  { %v732_v55 = vpop.f32.mrb[16].mxu1 }
 0x135   :  { %1331 = vst.msk [vmem:[%s2616_s3 + $0x18] sm:$0xf] %vm1324_vm2, %v1536_v52  ;;  %v1537_v38 = vpack.c.bf16 %v1105_v53, %v1105_v53  ;;  %v733_v57 = vadd.f32 %v2277_v46, %v732_v55  ;;  %v734_v58 = vpop.f32.mrb[17].mxu1 }
 0x136   :  { %v735_v61 = vpop.f32.mrb[18].mxu1  ;;  %v2361_v19 = vpop.f32.mrb[44].mxu0 }
 0x137   :  { %1332 = vst.msk [vmem:[%s2616_s3 + $0x1c] sm:$0xf] %vm1324_vm2, %v1537_v38  ;;  %v949_v40 = vadd.f32 %v2270_v42, %v733_v57  ;;  %v736_v62 = vadd.f32 %v2277_v46, %v735_v61  ;;  %v737_v63 = vpop.f32.mrb[19].mxu1  ;;  %v1650_v22 = vpop.f32.mrb[45].mxu0 }
 0x138   :  { %v2363_v24 = vpop.f32.mrb[46].mxu0 }
 0x139   :  { %v1106_v0 = vmax.f32 %v949_v40, 0.0  ;;  %v952_v3 = vadd.f32 %v2272_v44, %v736_v62  ;;  %v1651_v27 = vpop.f32.mrb[47].mxu0 }
 0x13b   :  { %v1538_v5 = vpack.c.bf16 %v1106_v0, %v1106_v0  ;;  %v1107_v6 = vmax.f32 %v952_v3, 0.0 }
 0x13c   :  { %v740_v8 = vpop.f32.mrb[20].mxu1 }
 0x13d   :  { %1333 = vst.msk [vmem:[%s2616_s3 + $0x20] sm:$0xf] %vm1324_vm2, %v1538_v5  ;;  %v1539_v42 = vpack.c.bf16 %v1107_v6, %v1107_v6  ;;  %v741_v10 = vadd.f32 %v2277_v46, %v740_v8  ;;  %v742_v11 = vpop.f32.mrb[21].mxu1 }
 0x13e   :  { %v743_v14 = vpop.f32.mrb[22].mxu1  ;;  %v2377_v34 = vpop.f32.mrb[48].mxu0 }
 0x13f   :  { %1334 = vst.msk [vmem:[%s2616_s3 + $0x24] sm:$0xf] %vm1324_vm2, %v1539_v42  ;;  %v957_v44 = vadd.f32 %v2279_v47, %v741_v10  ;;  %v744_v15 = vadd.f32 %v2277_v46, %v743_v14  ;;  %v745_v16 = vpop.f32.mrb[23].mxu1  ;;  %v1654_v41 = vpop.f32.mrb[49].mxu0 }
 0x140   :  { %v2379_v43 = vpop.f32.mrb[50].mxu0 }
 0x141   :  { %v1108_v2 = vmax.f32 %v957_v44, 0.0  ;;  %v960_v18 = vadd.f32 %v2281_v50, %v744_v15  ;;  %v1655_v49 = vpop.f32.mrb[51].mxu0 }
 0x143   :  { %v1540_v20 = vpack.c.bf16 %v1108_v2, %v1108_v2  ;;  %v1109_v21 = vmax.f32 %v960_v18, 0.0 }
 0x144   :  { %v748_v23 = vpop.f32.mrb[24].mxu1 }
 0x145   :  { %1335 = vst.msk [vmem:[%s2616_s3 + $0x28] sm:$0xf] %vm1324_vm2, %v1540_v20  ;;  %v1541_v47 = vpack.c.bf16 %v1109_v21, %v1109_v21  ;;  %v749_v25 = vadd.f32 %v2277_v46, %v748_v23  ;;  %v750_v26 = vpop.f32.mrb[25].mxu1 }
 0x146   :  { %v751_v29 = vpop.f32.mrb[26].mxu1  ;;  %v2393_v57 = vpop.f32.mrb[52].mxu0 }
 0x147   :  { %1336 = vst.msk [vmem:[%s2616_s3 + $0x2c] sm:$0xf] %vm1324_vm2, %v1541_v47  ;;  %v965_v50 = vadd.f32 %v2285_v60, %v749_v25  ;;  %v752_v30 = vadd.f32 %v2277_v46, %v751_v29  ;;  %v753_v31 = vpop.f32.mrb[27].mxu1  ;;  %v1658_v61 = vpop.f32.mrb[53].mxu0 }
 0x148   :  { %v2395_v62 = vpop.f32.mrb[54].mxu0 }
 0x149   :  { %v1110_v32 = vmax.f32 %v965_v50, 0.0  ;;  %v968_v35 = vadd.f32 %v2287_v1, %v752_v30  ;;  %v1659_v3 = vpop.f32.mrb[55].mxu0 }
 0x14b   :  { %v1542_v37 = vpack.c.bf16 %v1110_v32, %v1110_v32  ;;  %v1111_v39 = vmax.f32 %v968_v35, 0.0 }
 0x14c   :  { %v756_v36 = vpop.f32.mrb[28].mxu1 }
 0x14d   :  { %1337 = vst.msk [vmem:[%s2616_s3 + $0x30] sm:$0xf] %vm1324_vm2, %v1542_v37  ;;  %v1543_v60 = vpack.c.bf16 %v1111_v39, %v1111_v39  ;;  %v757_v45 = vadd.f32 %v2277_v46, %v756_v36  ;;  %v758_v48 = vpop.f32.mrb[29].mxu1 }
 0x14e   :  { %v759_v52 = vpop.f32.mrb[30].mxu1  ;;  %v2409_v10 = vpop.f32.mrb[56].mxu0 }
 0x14f   :  { %1338 = vst.msk [vmem:[%s2616_s3 + $0x34] sm:$0xf] %vm1324_vm2, %v1543_v60  ;;  %v973_v1 = vadd.f32 %v2299_v13, %v757_v45  ;;  %v760_v53 = vadd.f32 %v2277_v46, %v759_v52  ;;  %v761_v54 = vpop.f32.mrb[31].mxu1  ;;  %v1662_v14 = vpop.f32.mrb[57].mxu0 }
 0x150   :  { %v2411_v15 = vpop.f32.mrb[58].mxu0 }
 0x151   :  { %v1112_v55 = vmax.f32 %v973_v1, 0.0  ;;  %v976_v38 = vadd.f32 %v2301_v17, %v760_v53  ;;  %v1663_v18 = vpop.f32.mrb[59].mxu0 }
 0x153   :  { %v1544_v58 = vpack.c.bf16 %v1112_v55, %v1112_v55  ;;  %v1113_v59 = vmax.f32 %v976_v38, 0.0 }
 0x154   :  { %v764_v40 = vpop.f32.mrb[32].mxu1 }
 0x155   :  { %1339 = vst.msk [vmem:[%s2616_s3 + $0x38] sm:$0xf] %vm1324_vm2, %v1544_v58  ;;  %v1545_v13 = vpack.c.bf16 %v1113_v59, %v1113_v59  ;;  %v765_v63 = vadd.f32 %v2277_v46, %v764_v40  ;;  %v766_v0 = vpop.f32.mrb[33].mxu1 }
 0x156   :  { %v767_v5 = vpop.f32.mrb[34].mxu1  ;;  %v2425_v25 = vpop.f32.mrb[60].mxu0 }
 0x157   :  { %1340 = vst.msk [vmem:[%s2616_s3 + $0x3c] sm:$0xf] %vm1324_vm2, %v1545_v13  ;;  %v981_v17 = vadd.f32 %v2313_v28, %v765_v63  ;;  %v768_v6 = vadd.f32 %v2277_v46, %v767_v5  ;;  %v769_v7 = vpop.f32.mrb[35].mxu1  ;;  %v1666_v29 = vpop.f32.mrb[61].mxu0 }
 0x158   :  { %v2427_v30 = vpop.f32.mrb[62].mxu0 }
 0x159   :  { %v1114_v8 = vmax.f32 %v981_v17, 0.0  ;;  %v984_v42 = vadd.f32 %v2315_v33, %v768_v6  ;;  %v1667_v35 = vpop.f32.mrb[63].mxu0 }
 0x15b   :  { %v1546_v11 = vpack.c.bf16 %v1114_v8, %v1114_v8  ;;  %v1115_v12 = vmax.f32 %v984_v42, 0.0 }
 0x15c   :  { %v772_v44 = vpop.f32.mrb[36].mxu1 }
 0x15d   :  { %1341 = vst.msk [vmem:[%s2616_s3 + $0x40] sm:$0xf] %vm1324_vm2, %v1546_v11  ;;  %v1547_v28 = vpack.c.bf16 %v1115_v12, %v1115_v12  ;;  %v773_v16 = vadd.f32 %v2277_v46, %v772_v44  ;;  %v774_v2 = vpop.f32.mrb[37].mxu1 }
 0x15e   :  { %v775_v20 = vpop.f32.mrb[38].mxu1  ;;  %v2441_v45 = vpop.f32.mrb[64].mxu0 }
 0x15f   :  { %1342 = vst.msk [vmem:[%s2616_s3 + $0x44] sm:$0xf] %vm1324_vm2, %v1547_v28  ;;  %v989_v33 = vadd.f32 %v2329_v51, %v773_v16  ;;  %v776_v21 = vadd.f32 %v2277_v46, %v775_v20  ;;  %v777_v22 = vpop.f32.mrb[39].mxu1  ;;  %v1670_v52 = vpop.f32.mrb[65].mxu0 }
 0x160   :  { %v2443_v53 = vpop.f32.mrb[66].mxu0 }
 0x161   :  { %v1116_v23 = vmax.f32 %v989_v33, 0.0  ;;  %v992_v47 = vadd.f32 %v2331_v56, %v776_v21  ;;  %v1671_v38 = vpop.f32.mrb[67].mxu0 }
 0x163   :  { %v1548_v26 = vpack.c.bf16 %v1116_v23, %v1116_v23  ;;  %v1117_v27 = vmax.f32 %v992_v47, 0.0 }
 0x164   :  { %v780_v50 = vpop.f32.mrb[40].mxu1 }
 0x165   :  { %1343 = vst.msk [vmem:[%s2616_s3 + $0x48] sm:$0xf] %vm1324_vm2, %v1548_v26  ;;  %v1549_v51 = vpack.c.bf16 %v1117_v27, %v1117_v27  ;;  %v781_v31 = vadd.f32 %v2277_v46, %v780_v50  ;;  %v782_v32 = vpop.f32.mrb[41].mxu1 }
 0x166   :  { %v783_v37 = vpop.f32.mrb[42].mxu1  ;;  %v2457_v63 = vpop.f32.mrb[68].mxu0 }
 0x167   :  { %1344 = vst.msk [vmem:[%s2616_s3 + $0x4c] sm:$0xf] %vm1324_vm2, %v1549_v51  ;;  %v997_v56 = vadd.f32 %v2345_v4, %v781_v31  ;;  %v784_v39 = vadd.f32 %v2277_v46, %v783_v37  ;;  %v785_v41 = vpop.f32.mrb[43].mxu1  ;;  %v1674_v5 = vpop.f32.mrb[69].mxu0 }
 0x168   :  { %v2459_v6 = vpop.f32.mrb[70].mxu0 }
 0x169   :  { %v1118_v36 = vmax.f32 %v997_v56, 0.0  ;;  %v1000_v60 = vadd.f32 %v2347_v9, %v784_v39  ;;  %v1675_v42 = vpop.f32.mrb[71].mxu0 }
 0x16b   :  { %v1550_v48 = vpack.c.bf16 %v1118_v36, %v1118_v36  ;;  %v1119_v49 = vmax.f32 %v1000_v60, 0.0 }
 0x16c   :  { %v788_v1 = vpop.f32.mrb[44].mxu1 }
 0x16d   :  { %1345 = vst.msk [vmem:[%s2616_s3 + $0x50] sm:$0xf] %vm1324_vm2, %v1550_v48  ;;  %v1551_v4 = vpack.c.bf16 %v1119_v49, %v1119_v49  ;;  %v789_v54 = vadd.f32 %v2277_v46, %v788_v1  ;;  %v790_v55 = vpop.f32.mrb[45].mxu1 }
 0x16e   :  { %v791_v58 = vpop.f32.mrb[46].mxu1  ;;  %v2473_v16 = vpop.f32.mrb[72].mxu0 }
 0x16f   :  { %1346 = vst.msk [vmem:[%s2616_s3 + $0x54] sm:$0xf] %vm1324_vm2, %v1551_v4  ;;  %v1005_v9 = vadd.f32 %v2361_v19, %v789_v54  ;;  %v792_v59 = vadd.f32 %v2277_v46, %v791_v58  ;;  %v793_v61 = vpop.f32.mrb[47].mxu1  ;;  %v1678_v20 = vpop.f32.mrb[73].mxu0 }
 0x170   :  { %v2475_v21 = vpop.f32.mrb[74].mxu0 }
 0x171   :  { %v1120_v40 = vmax.f32 %v1005_v9, 0.0  ;;  %v1008_v13 = vadd.f32 %v2363_v24, %v792_v59  ;;  %v1679_v47 = vpop.f32.mrb[75].mxu0 }
 0x173   :  { %v1552_v0 = vpack.c.bf16 %v1120_v40, %v1120_v40  ;;  %v1121_v3 = vmax.f32 %v1008_v13, 0.0 }
 0x174   :  { %v796_v17 = vpop.f32.mrb[48].mxu1 }
 0x175   :  { %1347 = vst.msk [vmem:[%s2616_s3 + $0x58] sm:$0xf] %vm1324_vm2, %v1552_v0  ;;  %v1553_v19 = vpack.c.bf16 %v1121_v3, %v1121_v3  ;;  %v797_v7 = vadd.f32 %v2277_v46, %v796_v17  ;;  %v798_v8 = vpop.f32.mrb[49].mxu1 }
 0x176   :  { %v799_v11 = vpop.f32.mrb[50].mxu1  ;;  %v2489_v31 = vpop.f32.mrb[76].mxu0 }
 0x177   :  { %1348 = vst.msk [vmem:[%s2616_s3 + $0x5c] sm:$0xf] %vm1324_vm2, %v1553_v19  ;;  %v1013_v24 = vadd.f32 %v2377_v34, %v797_v7  ;;  %v800_v12 = vadd.f32 %v2277_v46, %v799_v11  ;;  %v801_v14 = vpop.f32.mrb[51].mxu1  ;;  %v1682_v37 = vpop.f32.mrb[77].mxu0 }
 0x178   :  { %v2491_v39 = vpop.f32.mrb[78].mxu0 }
 0x179   :  { %v1122_v44 = vmax.f32 %v1013_v24, 0.0  ;;  %v1016_v28 = vadd.f32 %v2379_v43, %v800_v12  ;;  %v1683_v60 = vpop.f32.mrb[79].mxu0 }
 0x17b   :  { %v1554_v2 = vpack.c.bf16 %v1122_v44, %v1122_v44  ;;  %v1123_v18 = vmax.f32 %v1016_v28, 0.0 }
 0x17c   :  { %v804_v33 = vpop.f32.mrb[52].mxu1 }
 0x17d   :  { %1349 = vst.msk [vmem:[%s2616_s3 + $0x60] sm:$0xf] %vm1324_vm2, %v1554_v2  ;;  %v1555_v34 = vpack.c.bf16 %v1123_v18, %v1123_v18  ;;  %v805_v22 = vadd.f32 %v2277_v46, %v804_v33  ;;  %v806_v23 = vpop.f32.mrb[53].mxu1 }
 0x17e   :  { %v807_v26 = vpop.f32.mrb[54].mxu1  ;;  %v2505_v54 = vpop.f32.mrb[80].mxu0 }
 0x17f   :  { %1350 = vst.msk [vmem:[%s2616_s3 + $0x64] sm:$0xf] %vm1324_vm2, %v1555_v34  ;;  %v1021_v43 = vadd.f32 %v2393_v57, %v805_v22  ;;  %v808_v27 = vadd.f32 %v2277_v46, %v807_v26  ;;  %v809_v29 = vpop.f32.mrb[55].mxu1  ;;  %v1686_v58 = vpop.f32.mrb[81].mxu0 }
 0x180   :  { %v2507_v59 = vpop.f32.mrb[82].mxu0 }
 0x181   :  { %v1124_v50 = vmax.f32 %v1021_v43, 0.0  ;;  %v1024_v51 = vadd.f32 %v2395_v62, %v808_v27  ;;  %v1687_v13 = vpop.f32.mrb[83].mxu0 }
 0x183   :  { %v1556_v32 = vpack.c.bf16 %v1124_v50, %v1124_v50  ;;  %v1125_v35 = vmax.f32 %v1024_v51, 0.0 }
 0x184   :  { %v812_v56 = vpop.f32.mrb[56].mxu1 }
 0x185   :  { %1351 = vst.msk [vmem:[%s2616_s3 + $0x68] sm:$0xf] %vm1324_vm2, %v1556_v32  ;;  %v1557_v57 = vpack.c.bf16 %v1125_v35, %v1125_v35  ;;  %v813_v41 = vadd.f32 %v2277_v46, %v812_v56  ;;  %v814_v36 = vpop.f32.mrb[57].mxu1 }
 0x186   :  { %v815_v48 = vpop.f32.mrb[58].mxu1  ;;  %v2521_v7 = vpop.f32.mrb[84].mxu0 }
 0x187   :  { %1352 = vst.msk [vmem:[%s2616_s3 + $0x6c] sm:$0xf] %vm1324_vm2, %v1557_v57  ;;  %v1029_v62 = vadd.f32 %v2409_v10, %v813_v41  ;;  %v816_v49 = vadd.f32 %v2277_v46, %v815_v48  ;;  %v817_v52 = vpop.f32.mrb[59].mxu1  ;;  %v1690_v11 = vpop.f32.mrb[85].mxu0 }
 0x188   :  { %v2523_v12 = vpop.f32.mrb[86].mxu0 }
 0x189   :  { %v1126_v1 = vmax.f32 %v1029_v62, 0.0  ;;  %v1032_v4 = vadd.f32 %v2411_v15, %v816_v49  ;;  %v1691_v28 = vpop.f32.mrb[87].mxu0 }
 0x18b   :  { %v1558_v55 = vpack.c.bf16 %v1126_v1, %v1126_v1  ;;  %v1127_v38 = vmax.f32 %v1032_v4, 0.0 }
 0x18c   :  { %v820_v9 = vpop.f32.mrb[60].mxu1 }
 0x18d   :  { %1353 = vst.msk [vmem:[%s2616_s3 + $0x70] sm:$0xf] %vm1324_vm2, %v1558_v55  ;;  %v1559_v10 = vpack.c.bf16 %v1127_v38, %v1127_v38  ;;  %v821_v61 = vadd.f32 %v2277_v46, %v820_v9  ;;  %v822_v40 = vpop.f32.mrb[61].mxu1 }
 0x18e   :  { %v823_v0 = vpop.f32.mrb[62].mxu1  ;;  %v2537_v22 = vpop.f32.mrb[88].mxu0 }
 0x18f   :  { %1354 = vst.msk [vmem:[%s2616_s3 + $0x74] sm:$0xf] %vm1324_vm2, %v1559_v10  ;;  %v1037_v15 = vadd.f32 %v2425_v25, %v821_v61  ;;  %v824_v3 = vadd.f32 %v2277_v46, %v823_v0  ;;  %v825_v5 = vpop.f32.mrb[63].mxu1  ;;  %v1694_v26 = vpop.f32.mrb[89].mxu0 }
 0x190   :  { %v1095_v27 = vpop.f32.mrb[90].mxu0 }
 0x191   :  { %v1128_v17 = vmax.f32 %v1037_v15, 0.0  ;;  %v1040_v19 = vadd.f32 %v2427_v30, %v824_v3  ;;  %v1695_v51 = vpop.f32.mrb[91].mxu0 }
 0x193   :  { %v1560_v8 = vpack.c.bf16 %v1128_v17, %v1128_v17  ;;  %v1129_v42 = vmax.f32 %v1040_v19, 0.0 }
 0x194   :  { %v828_v24 = vpop.f32.mrb[64].mxu1 }
 0x195   :  { %1355 = vst.msk [vmem:[%s2616_s3 + $0x78] sm:$0xf] %vm1324_vm2, %v1560_v8  ;;  %v1561_v25 = vpack.c.bf16 %v1129_v42, %v1129_v42  ;;  %v829_v14 = vadd.f32 %v2277_v46, %v828_v24  ;;  %v830_v44 = vpop.f32.mrb[65].mxu1 }
 0x196   :  { %v831_v2 = vpop.f32.mrb[66].mxu1 }
 0x197   :  { %1356 = vst.msk [vmem:[%s2616_s3 + $0x7c] sm:$0xf] %vm1324_vm2, %v1561_v25  ;;  %v1045_v30 = vadd.f32 %v2441_v45, %v829_v14  ;;  %v832_v18 = vadd.f32 %v2277_v46, %v831_v2  ;;  %v833_v20 = vpop.f32.mrb[67].mxu1 }
 0x199   :  { %v1130_v33 = vmax.f32 %v1045_v30, 0.0  ;;  %v1048_v34 = vadd.f32 %v2443_v53, %v832_v18 }
 0x19b   :  { %v1562_v23 = vpack.c.bf16 %v1130_v33, %v1130_v33  ;;  %v1131_v47 = vmax.f32 %v1048_v34, 0.0 }
 0x19c   :  { %v836_v43 = vpop.f32.mrb[68].mxu1 }
 0x19d   :  { %1357 = vst.msk [vmem:[%s2616_s3 + $0x80] sm:$0xf] %vm1324_vm2, %v1562_v23  ;;  %v1563_v29 = vpack.c.bf16 %v1131_v47, %v1131_v47  ;;  %v837_v45 = vadd.f32 %v2277_v46, %v836_v43  ;;  %v838_v50 = vpop.f32.mrb[69].mxu1 }
 0x19e   :  { %v839_v32 = vpop.f32.mrb[70].mxu1 }
 0x19f   :  { %1358 = vst.msk [vmem:[%s2616_s3 + $0x84] sm:$0xf] %vm1324_vm2, %v1563_v29  ;;  %v1053_v53 = vadd.f32 %v2457_v63, %v837_v45  ;;  %v840_v35 = vadd.f32 %v2277_v46, %v839_v32  ;;  %v841_v37 = vpop.f32.mrb[71].mxu1 }
 0x1a1   :  { %v1132_v56 = vmax.f32 %v1053_v53, 0.0  ;;  %v1056_v57 = vadd.f32 %v2459_v6, %v840_v35 }
 0x1a3   :  { %v1564_v41 = vpack.c.bf16 %v1132_v56, %v1132_v56  ;;  %v1133_v36 = vmax.f32 %v1056_v57, 0.0 }
 0x1a4   :  { %v844_v60 = vpop.f32.mrb[72].mxu1 }
 0x1a5   :  { %1359 = vst.msk [vmem:[%s2616_s3 + $0x88] sm:$0xf] %vm1324_vm2, %v1564_v41  ;;  %v1565_v48 = vpack.c.bf16 %v1133_v36, %v1133_v36  ;;  %v845_v62 = vadd.f32 %v2277_v46, %v844_v60  ;;  %v846_v49 = vpop.f32.mrb[73].mxu1 }
 0x1a6   :  { %v847_v52 = vpop.f32.mrb[74].mxu1 }
 0x1a7   :  { %1360 = vst.msk [vmem:[%s2616_s3 + $0x8c] sm:$0xf] %vm1324_vm2, %v1565_v48  ;;  %v1061_v63 = vadd.f32 %v2473_v16, %v845_v62  ;;  %v848_v6 = vadd.f32 %v2277_v46, %v847_v52  ;;  %v849_v1 = vpop.f32.mrb[75].mxu1 }
 0x1a9   :  { %v1134_v4 = vmax.f32 %v1061_v63, 0.0  ;;  %v1064_v55 = vadd.f32 %v2475_v21, %v848_v6 }
 0x1ab   :  { %v1566_v38 = vpack.c.bf16 %v1134_v4, %v1134_v4  ;;  %v1135_v58 = vmax.f32 %v1064_v55, 0.0 }
 0x1ac   :  { %v852_v9 = vpop.f32.mrb[76].mxu1 }
 0x1ad   :  { %1361 = vst.msk [vmem:[%s2616_s3 + $0x90] sm:$0xf] %vm1324_vm2, %v1566_v38  ;;  %v1567_v10 = vpack.c.bf16 %v1135_v58, %v1135_v58  ;;  %v853_v61 = vadd.f32 %v2277_v46, %v852_v9  ;;  %v854_v40 = vpop.f32.mrb[77].mxu1 }
 0x1ae   :  { %v855_v13 = vpop.f32.mrb[78].mxu1 }
 0x1af   :  { %1362 = vst.msk [vmem:[%s2616_s3 + $0x94] sm:$0xf] %vm1324_vm2, %v1567_v10  ;;  %v1069_v16 = vadd.f32 %v2489_v31, %v853_v61  ;;  %v856_v21 = vadd.f32 %v2277_v46, %v855_v13  ;;  %v857_v0 = vpop.f32.mrb[79].mxu1 }
 0x1b1   :  { %v1136_v15 = vmax.f32 %v1069_v16, 0.0  ;;  %v1072_v3 = vadd.f32 %v2491_v39, %v856_v21 }
 0x1b3   :  { %v1568_v5 = vpack.c.bf16 %v1136_v15, %v1136_v15  ;;  %v1137_v17 = vmax.f32 %v1072_v3, 0.0 }
 0x1b4   :  { %v860_v19 = vpop.f32.mrb[80].mxu1 }
 0x1b5   :  { %1363 = vst.msk [vmem:[%s2616_s3 + $0x98] sm:$0xf] %vm1324_vm2, %v1568_v5  ;;  %v1569_v8 = vpack.c.bf16 %v1137_v17, %v1137_v17  ;;  %v861_v42 = vadd.f32 %v2277_v46, %v860_v19  ;;  %v862_v11 = vpop.f32.mrb[81].mxu1 }
 0x1b6   :  { %v863_v24 = vpop.f32.mrb[82].mxu1 }
 0x1b7   :  { %1364 = vst.msk [vmem:[%s2616_s3 + $0x9c] sm:$0xf] %vm1324_vm2, %v1569_v8  ;;  %v1077_v31 = vadd.f32 %v2505_v54, %v861_v42  ;;  %v864_v39 = vadd.f32 %v2277_v46, %v863_v24  ;;  %v865_v25 = vpop.f32.mrb[83].mxu1 }
 0x1b9   :  { %v1138_v14 = vmax.f32 %v1077_v31, 0.0  ;;  %v1080_v44 = vadd.f32 %v2507_v59, %v864_v39 }
 0x1bb   :  { %v1570_v28 = vpack.c.bf16 %v1138_v14, %v1138_v14  ;;  %v1139_v2 = vmax.f32 %v1080_v44, 0.0 }
 0x1bc   :  { %v868_v30 = vpop.f32.mrb[84].mxu1 }
 0x1bd   :  { %1365 = vst.msk [vmem:[%s2616_s3 + $0xa0] sm:$0xf] %vm1324_vm2, %v1570_v28  ;;  %v1571_v18 = vpack.c.bf16 %v1139_v2, %v1139_v2  ;;  %v869_v20 = vadd.f32 %v2277_v46, %v868_v30  ;;  %v870_v33 = vpop.f32.mrb[85].mxu1 }
 0x1be   :  { %v871_v34 = vpop.f32.mrb[86].mxu1 }
 0x1bf   :  { %1366 = vst.msk [vmem:[%s2616_s3 + $0xa4] sm:$0xf] %vm1324_vm2, %v1571_v18  ;;  %v1085_v54 = vadd.f32 %v2521_v7, %v869_v20  ;;  %v872_v59 = vadd.f32 %v2277_v46, %v871_v34  ;;  %v873_v23 = vpop.f32.mrb[87].mxu1 }
 0x1c1   :  { %v1140_v47 = vmax.f32 %v1085_v54, 0.0  ;;  %v1088_v26 = vadd.f32 %v2523_v12, %v872_v59 }
 0x1c3   :  { %v1572_v43 = vpack.c.bf16 %v1140_v47, %v1140_v47  ;;  %v1141_v27 = vmax.f32 %v1088_v26, 0.0 }
 0x1c4   :  { %v876_v29 = vpop.f32.mrb[88].mxu1 }
 0x1c5   :  { %1367 = vst.msk [vmem:[%s2616_s3 + $0xa8] sm:$0xf] %vm1324_vm2, %v1572_v43  ;;  %v1573_v45 = vpack.c.bf16 %v1141_v27, %v1141_v27  ;;  %v877_v50 = vadd.f32 %v2277_v46, %v876_v29  ;;  %v878_v51 = vpop.f32.mrb[89].mxu1 }
 0x1c6   :  { %v879_v32 = vpop.f32.mrb[90].mxu1 }
 0x1c7   :  { %1368 = vst.msk [vmem:[%s2616_s3 + $0xac] sm:$0xf] %vm1324_vm2, %v1573_v45  ;;  %v1093_v7 = vadd.f32 %v2537_v22, %v877_v50  ;;  %v880_v12 = vpop.f32.mrb[91].mxu1 }
 0x1c9   :  { %v1142_v53 = vmax.f32 %v1093_v7, 0.0 }
 0x1cb   :  { %v1574_v35 = vpack.c.bf16 %v1142_v53, %v1142_v53 }
 0x1cd   :  { %1369 = vst.msk [vmem:[%s2616_s3 + $0xb0] sm:$0xf] %vm1324_vm2, %v1574_v35 }

// kernel: policy_forward.6
= control target key start
LH: loop header
LB: loop body
LE: loop exit
PB: predicated region body
PF: predicated region fallthrough
CT: control target
= control target key end

     0   :  { %vm242_vm0 = vcmask 261120   ;;  %vm425_vm1 = vcmask 257024   ;;  %s746_s1 = inlined_call_operand.vmem [shape: bf16[288,32], index: 1, kind: input, shape index: {}]   ;;  %s747_s0 = inlined_call_operand.vmem [shape: bf16[64,288], index: 0, kind: input, shape index: {}]   ;;  %s748_s2 = inlined_call_operand.vmem [shape: f32[1,32], index: 2, kind: input, shape index: {}]   ;;  %s749_s3 = inlined_call_operand.vmem [shape: bf16[64,32], index: 3, kind: output, shape index: {}]  }
   0x1   :  { %v563_v0 = vld [vmem:[%s746_s1 + $0x40] sm:$0xff]   ;;  %v565_v2 = vld [vmem:[%s746_s1 + $0x48] sm:$0xff]   ;;  %v567_v4 = vld [vmem:[%s746_s1 + $0x50] sm:$0xff]  }
   0x2   :  { %v564_v1 = vld [vmem:[%s746_s1] sm:$0xff]   ;;  %489 = vmatprep.subr.bf16.mxu0 %v563_v0  ;;  %547 = vmatprep.subr.bf16.mxu1 %v563_v0  ;;  %v566_v3 = vld [vmem:[%s746_s1 + $0x8] sm:$0xff]   ;;  %v568_v5 = vld [vmem:[%s746_s1 + $0x10] sm:$0xff]  }
   0x3   :  { %490 = vmatpush3.bf16.msra.mxu0 %v564_v1  ;;  %555 = vmatpush3.bf16.msra.mxu1 %v564_v1  ;;  %v569_v6 = vld [vmem:[%s746_s1 + $0x58] sm:$0xff]   ;;  %v571_v8 = vld [vmem:[%s746_s1 + $0x60] sm:$0xff]   ;;  %v573_v10 = vld [vmem:[%s746_s1 + $0x68] sm:$0xff]  }
   0x4   :  { %491 = vmatprep.subr.bf16.mxu0 %v565_v2  ;;  %548 = vmatprep.subr.bf16.mxu1 %v565_v2  ;;  %v570_v7 = vld [vmem:[%s746_s1 + $0x18] sm:$0xff]   ;;  %v572_v9 = vld [vmem:[%s746_s1 + $0x20] sm:$0xff]   ;;  %v574_v13 = vld [vmem:[%s746_s1 + $0x28] sm:$0xff]  }
   0x5   :  { %v581_v11 = vld [vmem:[%s747_s0 + $0x4] ss:$12 sps:$4 sm:$0xff]   ;;  %v584_v12 = vld [vmem:[%s747_s0 + $0x4c] ss:$12 sps:$4 sm:$0xff]   ;;  %v582_v20 = vld [vmem:[%s747_s0 + $0x48] ss:$12 sps:$4 sm:$0xff]  }
   0x6   :  { %v575_v14 = vld [vmem:[%s746_s1 + $0x70] sm:$0xff]   ;;  %287 = vmatprep.mubr.bf16.mxu0 %v581_v11  ;;  %311 = vmatprep.mubr.bf16.mxu1 %v584_v12  ;;  %v577_v16 = vld [vmem:[%s746_s1 + $0x78] sm:$0xff]   ;;  %v585_v18 = vld [vmem:[%s746_s1 + $0x80] sm:$0xff]  }
   0x7   :  { %492 = vmatpush3.bf16.msra.mxu0 %v566_v3  ;;  %556 = vmatpush3.bf16.msra.mxu1 %v566_v3  ;;  %v576_v15 = vld [vmem:[%s746_s1 + $0x30] sm:$0xff]   ;;  %v578_v17 = vld [vmem:[%s746_s1 + $0x38] sm:$0xff]   ;;  %v579_v19 = vld [vmem:[%s747_s0] ss:$12 sps:$4 sm:$0xff]  }
   0x8   :  { %493 = vmatprep.subr.bf16.mxu0 %v567_v4  ;;  %549 = vmatprep.subr.bf16.mxu1 %v567_v4  ;;  %v587_v21 = vld [vmem:[%s747_s0 + $0x1c] ss:$12 sps:$4 sm:$0xff]   ;;  %v590_v24 = vld [vmem:[%s747_s0 + $0x18] ss:$12 sps:$4 sm:$0xff]   ;;  %v591_v25 = vld [vmem:[%s747_s0 + $0x20] ss:$12 sps:$4 sm:$0xff]  }
   0x9   :  { %v586_v22 = vld [vmem:[%s746_s1 + $0x88] sm:$0xff]   ;;  %v592_v26 = vld [vmem:[%s747_s0 + $0x34] ss:$12 sps:$4 sm:$0xff]   ;;  %v594_v27 = vld [vmem:[%s747_s0 + $0x38] ss:$12 sps:$4 sm:$0xff]  }
   0xa   :  { %v589_v23 = vld [vmem:[%s747_s0 + $0x8] ss:$12 sps:$4 sm:$0xff]   ;;  %v595_v28 = vld [vmem:[%s747_s0 + $0x30] ss:$12 sps:$4 sm:$0xff]   ;;  %v438_v42 = vld [vmem:[%s748_s2] ss:$0 sm:$0xff] }
   0xb   :  { %494 = vmatpush3.bf16.msra.mxu0 %v568_v5  ;;  %557 = vmatpush3.bf16.msra.mxu1 %v568_v5  ;;  %v596_v29 = vld [vmem:[%s747_s0 + $0x50] ss:$12 sps:$4 sm:$0xff]  }
   0xc   :  { %495 = vmatprep.subr.bf16.mxu0 %v569_v6  ;;  %550 = vmatprep.subr.bf16.mxu1 %v569_v6 }
   0xf   :  { %496 = vmatpush3.bf16.msra.mxu0 %v570_v7  ;;  %558 = vmatpush3.bf16.msra.mxu1 %v570_v7 }
  0x10   :  { %497 = vmatprep.subr.bf16.mxu0 %v571_v8  ;;  %551 = vmatprep.subr.bf16.mxu1 %v571_v8 }
  0x13   :  { %498 = vmatpush3.bf16.msra.mxu0 %v572_v9  ;;  %559 = vmatpush3.bf16.msra.mxu1 %v572_v9 }
  0x14   :  { %499 = vmatprep.subr.bf16.mxu0 %v573_v10  ;;  %552 = vmatprep.subr.bf16.mxu1 %v573_v10 }
  0x17   :  { %500 = vmatpush3.bf16.msra.mxu0 %v574_v13  ;;  %560 = vmatpush3.bf16.msra.mxu1 %v574_v13 }
  0x18   :  { %501 = vmatprep.subr.bf16.mxu0 %v575_v14  ;;  %553 = vmatprep.subr.bf16.mxu1 %v575_v14 }
  0x1b   :  { %502 = vmatpush3.bf16.msra.mxu0 %v576_v15  ;;  %561 = vmatpush3.bf16.msra.mxu1 %v576_v15 }
  0x1c   :  { %503 = vmatprep.subr.bf16.mxu0 %v577_v16  ;;  %554 = vmatprep.subr.bf16.mxu1 %v577_v16 }
  0x1f   :  { %504 = vmatpush3.bf16.msra.mxu0 %v578_v17  ;;  %562 = vmatpush3.bf16.msra.mxu1 %v578_v17 }
  0x20   :  { %535 = vmatprep.subr.bf16.mxu1 %v585_v18 }
  0x22   :  { %288 = vmatmul.mubr.bf16.vlgmr.msra.gmra.mrb[0].mxu0 %v579_v19  ;;  %312 = vmatmul.mubr.bf16.vlgmr.msra.gmra.mrb[0].mxu1 %v582_v20 }
  0x23   :  { %536 = vmatpush3.bf16.msra.mxu1 %v585_v18  ;;  %295 = vmatprep.mubr.bf16.mxu0 %v587_v21 }
  0x24   :  { %537 = vmatprep.subr.bf16.mxu1 %v586_v22  ;;  %539 = vmatprep.mubr.msk.bf16.mxu1 %vm242_vm0, %v589_v23 }
  0x27   :  { %538 = vmatpush3.bf16.msra.mxu1 %v586_v22 }
  0x2a   :  { %296 = vmatmul.mubr.bf16.gmra.mrb[4].mxu0 %v590_v24  ;;  %540 = vmatmul.mubr.msk.bf16.vlgmr.msra.gmra.mrb[4].mxu1 %vm242_vm0, %v591_v25 }
  0x2b   :  { %303 = vmatprep.mubr.bf16.mxu0 %v592_v26  ;;  %543 = vmatprep.mubr.msk.bf16.mxu1 %vm242_vm0, %v594_v27 }
  0x32   :  { %304 = vmatmul.mubr.bf16.gmra.mrb[8].mxu0 %v595_v28  ;;  %544 = vmatmul.mubr.msk.bf16.gmra.mrb[8].mxu1 %vm242_vm0, %v596_v29 }
  0xf5   :  { %v505_v30 = vpop.f32.mrb[0].mxu0  ;;  %v523_v31 = vpop.f32.mrb[0].mxu1 }
  0xf6   :  { %v506_v32 = vpop.f32.mrb[1].mxu0  ;;  %v524_v33 = vpop.f32.mrb[1].mxu1 }
  0xf7   :  { %v507_v34 = vadd.f32 %v506_v32, %v505_v30  ;;  %v508_v35 = vpop.f32.mrb[2].mxu0  ;;  %v525_v36 = vadd.f32 %v524_v33, %v523_v31  ;;  %v526_v37 = vpop.f32.mrb[2].mxu1 }
  0xf8   :  { %v509_v38 = vpop.f32.mrb[3].mxu0  ;;  %v527_v39 = vpop.f32.mrb[3].mxu1 }
  0xf9   :  { %v510_v40 = vadd.f32 %v509_v38, %v508_v35  ;;  %v528_v41 = vadd.f32 %v527_v39, %v526_v37  ;;  %v290_v45 = vadd.f32 %v507_v34, %v438_v42  ;;  %v314_v63 = vadd.f32 %v525_v36, %v438_v42 }
  0xfb   :  { %v293_v52 = vadd.f32 %v510_v40, %v438_v42  ;;  %v317_v8 = vadd.f32 %v528_v41, %v438_v42 }
  0xfd   :  { %v511_v43 = vpop.f32.mrb[4].mxu0  ;;  %v541_v44 = vpop.f32.mrb[4].mxu1 }
  0xfe   :  { %v512_v46 = vpop.f32.mrb[5].mxu0  ;;  %v354_v47 = vpop.f32.mrb[5].mxu1 }
  0xff   :  { %v513_v48 = vadd.f32 %v512_v46, %v511_v43  ;;  %v355_v49 = vadd.f32 %v354_v47, %v290_v45  ;;  %v514_v50 = vpop.f32.mrb[6].mxu0  ;;  %v542_v51 = vpop.f32.mrb[6].mxu1 }
 0x100   :  { %v515_v53 = vpop.f32.mrb[7].mxu0  ;;  %v357_v54 = vpop.f32.mrb[7].mxu1 }
 0x101   :  { %v298_v55 = vadd.f32 %v513_v48, %v438_v42  ;;  %v385_v56 = vmax.f32 %v355_v49, 0.0  ;;  %v516_v57 = vadd.f32 %v515_v53, %v514_v50  ;;  %v358_v58 = vadd.f32 %v357_v54, %v293_v52 }
 0x103   :  { %v363_v59 = vadd.f32 %v541_v44, %v298_v55  ;;  %v481_v60 = vpack.c.bf16 %v385_v56, %v385_v56  ;;  %v301_v61 = vadd.f32 %v516_v57, %v438_v42  ;;  %v386_v62 = vmax.f32 %v358_v58, 0.0 }
 0x105   :  { %v387_v0 = vmax.f32 %v363_v59, 0.0  ;;  %426 = vst.msk [vmem:[%s749_s3] sm:$0xf] %vm425_vm1, %v481_v60  ;;  %v366_v1 = vadd.f32 %v542_v51, %v301_v61  ;;  %v482_v2 = vpack.c.bf16 %v386_v62, %v386_v62  ;;  %v517_v3 = vpop.f32.mrb[8].mxu0  ;;  %v545_v4 = vpop.f32.mrb[8].mxu1 }
 0x106   :  { %v379_v5 = vadd.f32 %v545_v4, %v314_v63  ;;  %v518_v6 = vpop.f32.mrb[9].mxu0  ;;  %v370_v7 = vpop.f32.mrb[9].mxu1 }
 0x107   :  { %v483_v9 = vpack.c.bf16 %v387_v0, %v387_v0  ;;  %v388_v10 = vmax.f32 %v366_v1, 0.0  ;;  %427 = vst.msk [vmem:[%s749_s3 + $0x4] sm:$0xf] %vm425_vm1, %v482_v2  ;;  %v519_v11 = vadd.f32 %v518_v6, %v517_v3  ;;  %v520_v12 = vpop.f32.mrb[10].mxu0  ;;  %v546_v13 = vpop.f32.mrb[10].mxu1 }
 0x108   :  { %v391_v14 = vmax.f32 %v379_v5, 0.0  ;;  %v382_v15 = vadd.f32 %v546_v13, %v317_v8  ;;  %v521_v16 = vpop.f32.mrb[11].mxu0  ;;  %v373_v17 = vpop.f32.mrb[11].mxu1 }
 0x109   :  { %428 = vst.msk [vmem:[%s749_s3 + $0x8] sm:$0xf] %vm425_vm1, %v483_v9  ;;  %v484_v18 = vpack.c.bf16 %v388_v10, %v388_v10  ;;  %v306_v19 = vadd.f32 %v519_v11, %v438_v42  ;;  %v522_v20 = vadd.f32 %v521_v16, %v520_v12 }
 0x10a   :  { %v487_v21 = vpack.c.bf16 %v391_v14, %v391_v14  ;;  %v392_v22 = vmax.f32 %v382_v15, 0.0 }
 0x10b   :  { %429 = vst.msk [vmem:[%s749_s3 + $0xc] sm:$0xf] %vm425_vm1, %v484_v18  ;;  %v371_v23 = vadd.f32 %v370_v7, %v306_v19  ;;  %v309_v24 = vadd.f32 %v522_v20, %v438_v42 }
 0x10c   :  { %432 = vst.msk [vmem:[%s749_s3 + $0x18] sm:$0xf] %vm425_vm1, %v487_v21  ;;  %v488_v25 = vpack.c.bf16 %v392_v22, %v392_v22 }
 0x10d   :  { %v389_v26 = vmax.f32 %v371_v23, 0.0  ;;  %v374_v27 = vadd.f32 %v373_v17, %v309_v24 }
 0x10e   :  { %433 = vst.msk [vmem:[%s749_s3 + $0x1c] sm:$0xf] %vm425_vm1, %v488_v25 }
 0x10f   :  { %v485_v28 = vpack.c.bf16 %v389_v26, %v389_v26  ;;  %v390_v29 = vmax.f32 %v374_v27, 0.0 }
 0x111   :  { %430 = vst.msk [vmem:[%s749_s3 + $0x10] sm:$0xf] %vm425_vm1, %v485_v28  ;;  %v486_v30 = vpack.c.bf16 %v390_v29, %v390_v29 }
 0x113   :  { %431 = vst.msk [vmem:[%s749_s3 + $0x14] sm:$0xf] %vm425_vm1, %v486_v30 }

// kernel: policy_forward.7
= control target key start
LH: loop header
LB: loop body
LE: loop exit
PB: predicated region body
PF: predicated region fallthrough
CT: control target
= control target key end

     0   :  { %s5542_s0 = inlined_call_operand.vmem [shape: bf16[2,1024], index: 0, kind: input, shape index: {}]   ;;  %s5543_s1 = inlined_call_operand.vmem [shape: bf16[2,12], index: 1, kind: input, shape index: {}]   ;;  %s5544_s2 = inlined_call_operand.vmem [shape: bf16[1024,500], index: 2, kind: input, shape index: {}]   ;;  %s5545_s3 = inlined_call_operand.vmem [shape: f32[1,500], index: 3, kind: input, shape index: {}]   ;;  %s5546_s4 = inlined_call_operand.vmem [shape: bf16[500,100], index: 4, kind: input, shape index: {}]   ;;  %s5547_s5 = inlined_call_operand.vmem [shape: f32[1,100], index: 5, kind: input, shape index: {}]   ;;  %s5548_s6 = inlined_call_operand.vmem [shape: bf16[100,50], index: 6, kind: input, shape index: {}]   ;;  %s5549_s7 = inlined_call_operand.vmem [shape: f32[1,50], index: 7, kind: input, shape index: {}]   ;;  %s5550_s8 = inlined_call_operand.vmem [shape: bf16[500,100], index: 8, kind: input, shape index: {}]   ;;  %s5551_s9 = inlined_call_operand.vmem [shape: f32[1,100], index: 9, kind: input, shape index: {}]   ;;  %s5552_s10 = inlined_call_operand.vmem [shape: bf16[100,50], index: 10, kind: input, shape index: {}]   ;;  %s5553_s11 = inlined_call_operand.vmem [shape: f32[1,50], index: 11, kind: input, shape index: {}]   ;;  %s5554_s12 = inlined_call_operand.vmem [shape: bf16[50,2], index: 12, kind: input, shape index: {}]   ;;  %s5555_s13 = inlined_call_operand.vmem [shape: f32[1,2], index: 13, kind: input, shape index: {}]   ;;  %s5556_s14 = inlined_call_operand.vmem [shape: bf16[50,2], index: 14, kind: input, shape index: {}]   ;;  %s5557_s15 = inlined_call_operand.vmem [shape: f32[1,2], index: 15, kind: input, shape index: {}]   ;;  %s5558_s16 = inlined_call_operand.vmem [shape: bf16[12,4], index: 16, kind: input, shape index: {}]   ;;  %s5559_s17 = inlined_call_operand.hbm [shape: f32[2,2], index: 17, kind: output, shape index: {0}]   ;;  %s5560_s18 = inlined_call_operand.hbm [shape: f32[2,2], index: 18, kind: output, shape index: {1}]  }
   0x1   :  { %5562 = sst [smem:[#allocation8_spill]] %s5542_s0 }
   0x2   :  { %5563 = sst [smem:[#allocation9_spill]] %s5543_s1 }
   0x3   :  { %5564 = sst [smem:[#allocation10_spill]] %s5544_s2 }
   0x4   :  { %24 = vsyncpa [#allocation3], 0  ;;  %s5565_s29 = sld [smem:[#allocation10_spill]]  ;;  %v320_v36 = vlaneseq  ;;  %v4275_v37 = vmov 1966171168   ;;  %s5566_s23 = sld [smem:[#allocation8_spill]] }
   0x5   :  { %v343_v38 = vunpack.c.l.s4 %v4275_v37 }
   0x6   :  { %v4493_v42 = vshrl.u32 %v320_v36, 7 }
   0x7   :  { %v344_v43 = vunpack.c.0.s8 %v343_v38 }
   0x9   :  { %v4511_v49 = vsub.s32 %v344_v43, %v4493_v42 }
   0xa   :  { %v3755_v0 = vld [vmem:[%s5565_s29 + $0x4] ss:$16 sps:$4 sm:$0xff]   ;;  %v3757_v1 = vld [vmem:[%s5565_s29 + $0xc] ss:$16 sps:$4 sm:$0xff]   ;;  %v3759_v2 = vld [vmem:[%s5565_s29] ss:$16 sps:$4 sm:$0xff]  }
   0xb   :  { %1678 = vmatprep.subr.bf16.mxu0 %v3755_v0  ;;  %v3760_v3 = vld [vmem:[%s5565_s29 + $0x8] ss:$16 sps:$4 sm:$0xff]   ;;  %1842 = vmatprep.subr.bf16.mxu1 %v3757_v1  ;;  %v3761_v4 = vld [vmem:[%s5565_s29 + $0x24] ss:$16 sps:$4 sm:$0xff]   ;;  %v3763_v5 = vld [vmem:[%s5565_s29 + $0x2c] ss:$16 sps:$4 sm:$0xff]  }
   0xc   :  { %1679 = vmatpush1.bf16.msra.mxu0 %v3759_v2  ;;  %1843 = vmatpush1.bf16.msra.mxu1 %v3760_v3  ;;  %v3765_v6 = vld [vmem:[%s5565_s29 + $0x20] ss:$16 sps:$4 sm:$0xff]   ;;  %v3766_v7 = vld [vmem:[%s5565_s29 + $0x28] ss:$16 sps:$4 sm:$0xff]   ;;  %v3767_v8 = vld [vmem:[%s5565_s29 + $0x44] ss:$16 sps:$4 sm:$0xff]  }
   0xd   :  { %1680 = vmatprep.subr.bf16.mxu0 %v3761_v4  ;;  %1844 = vmatprep.subr.bf16.mxu1 %v3763_v5  ;;  %v3769_v9 = vld [vmem:[%s5565_s29 + $0x4c] ss:$16 sps:$4 sm:$0xff]   ;;  %v3771_v10 = vld [vmem:[%s5565_s29 + $0x40] ss:$16 sps:$4 sm:$0xff]   ;;  %v3772_v11 = vld [vmem:[%s5565_s29 + $0x48] ss:$16 sps:$4 sm:$0xff]  }
   0xe   :  { %v3773_v12 = vld [vmem:[%s5565_s29 + $0x64] ss:$16 sps:$4 sm:$0xff]   ;;  %v3775_v13 = vld [vmem:[%s5565_s29 + $0x6c] ss:$16 sps:$4 sm:$0xff]   ;;  %v3777_v14 = vld [vmem:[%s5565_s29 + $0x60] ss:$16 sps:$4 sm:$0xff]  }
   0xf   :  { %v3778_v15 = vld [vmem:[%s5565_s29 + $0x68] ss:$16 sps:$4 sm:$0xff]   ;;  %v3779_v16 = vld [vmem:[%s5565_s29 + $0x84] ss:$16 sps:$4 sm:$0xff]   ;;  %v3781_v17 = vld [vmem:[%s5565_s29 + $0x8c] ss:$16 sps:$4 sm:$0xff]  }
  0x10   :  { %1681 = vmatpush1.bf16.msra.mxu0 %v3765_v6  ;;  %1845 = vmatpush1.bf16.msra.mxu1 %v3766_v7  ;;  %v3783_v18 = vld [vmem:[%s5565_s29 + $0x80] ss:$16 sps:$4 sm:$0xff]   ;;  %v3784_v19 = vld [vmem:[%s5565_s29 + $0x88] ss:$16 sps:$4 sm:$0xff]   ;;  %v3785_v20 = vld [vmem:[%s5565_s29 + $0xa4] ss:$16 sps:$4 sm:$0xff]  }
  0x11   :  { %1682 = vmatprep.subr.bf16.mxu0 %v3767_v8  ;;  %1846 = vmatprep.subr.bf16.mxu1 %v3769_v9  ;;  %v3787_v21 = vld [vmem:[%s5565_s29 + $0xac] ss:$16 sps:$4 sm:$0xff]   ;;  %v3789_v22 = vld [vmem:[%s5565_s29 + $0xa0] ss:$16 sps:$4 sm:$0xff]   ;;  %v3790_v23 = vld [vmem:[%s5565_s29 + $0xa8] ss:$16 sps:$4 sm:$0xff]  }
  0x12   :  { %v3791_v24 = vld [vmem:[%s5565_s29 + $0xc4] ss:$16 sps:$4 sm:$0xff]   ;;  %v3793_v25 = vld [vmem:[%s5565_s29 + $0xcc] ss:$16 sps:$4 sm:$0xff]   ;;  %v3795_v26 = vld [vmem:[%s5565_s29 + $0xc0] ss:$16 sps:$4 sm:$0xff]  }
  0x13   :  { %v3796_v27 = vld [vmem:[%s5565_s29 + $0xc8] ss:$16 sps:$4 sm:$0xff]   ;;  %v3797_v28 = vld [vmem:[%s5565_s29 + $0xe4] ss:$16 sps:$4 sm:$0xff]   ;;  %v3799_v29 = vld [vmem:[%s5565_s29 + $0xec] ss:$16 sps:$4 sm:$0xff]  }
  0x14   :  { %1683 = vmatpush1.bf16.msra.mxu0 %v3771_v10  ;;  %1847 = vmatpush1.bf16.msra.mxu1 %v3772_v11  ;;  %v3801_v30 = vld [vmem:[%s5565_s29 + $0xe0] ss:$16 sps:$4 sm:$0xff]   ;;  %v3802_v31 = vld [vmem:[%s5565_s29 + $0xe8] ss:$16 sps:$4 sm:$0xff]   ;;  %v3803_v32 = vld [vmem:[%s5565_s29 + $0x104] ss:$16 sps:$4 sm:$0xff]  }
  0x15   :  { %1684 = vmatprep.subr.bf16.mxu0 %v3773_v12  ;;  %1848 = vmatprep.subr.bf16.mxu1 %v3775_v13  ;;  %v3805_v33 = vld [vmem:[%s5565_s29 + $0x10c] ss:$16 sps:$4 sm:$0xff]   ;;  %v3807_v34 = vld [vmem:[%s5565_s29 + $0x100] ss:$16 sps:$4 sm:$0xff]   ;;  %v3808_v35 = vld [vmem:[%s5565_s29 + $0x108] ss:$16 sps:$4 sm:$0xff]  }
  0x16   :  { %v3809_v39 = vld [vmem:[%s5565_s29 + $0x124] ss:$16 sps:$4 sm:$0xff]   ;;  %v3811_v40 = vld [vmem:[%s5565_s29 + $0x12c] ss:$16 sps:$4 sm:$0xff]   ;;  %v3813_v41 = vld [vmem:[%s5565_s29 + $0x120] ss:$16 sps:$4 sm:$0xff]  }
  0x17   :  { %v3814_v44 = vld [vmem:[%s5565_s29 + $0x128] ss:$16 sps:$4 sm:$0xff]   ;;  %v3815_v45 = vld [vmem:[%s5565_s29 + $0x144] ss:$16 sps:$4 sm:$0xff]   ;;  %v3817_v46 = vld [vmem:[%s5565_s29 + $0x14c] ss:$16 sps:$4 sm:$0xff]  }
  0x18   :  { %1685 = vmatpush1.bf16.msra.mxu0 %v3777_v14  ;;  %1849 = vmatpush1.bf16.msra.mxu1 %v3778_v15  ;;  %v3819_v47 = vld [vmem:[%s5565_s29 + $0x140] ss:$16 sps:$4 sm:$0xff]   ;;  %v3820_v48 = vld [vmem:[%s5565_s29 + $0x148] ss:$16 sps:$4 sm:$0xff]   ;;  %v3821_v50 = vld [vmem:[%s5565_s29 + $0x164] ss:$16 sps:$4 sm:$0xff]  }
  0x19   :  { %1686 = vmatprep.subr.bf16.mxu0 %v3779_v16  ;;  %1850 = vmatprep.subr.bf16.mxu1 %v3781_v17  ;;  %v3823_v51 = vld [vmem:[%s5565_s29 + $0x16c] ss:$16 sps:$4 sm:$0xff]   ;;  %v61_v52 = vld [vmem:[%s5566_s23] sm:$0xff]  ;;  %v3826_v55 = vld [vmem:[%s5565_s29 + $0x168] ss:$16 sps:$4 sm:$0xff]  }
  0x1a   :  { %v3825_v53 = vld [vmem:[%s5565_s29 + $0x160] ss:$16 sps:$4 sm:$0xff]   ;;  %v348_v54 = vrot.slane %v61_v52, %v4511_v49  ;;  %v3827_v56 = vld [vmem:[%s5565_s29 + $0x184] ss:$16 sps:$4 sm:$0xff]   ;;  %v3829_v57 = vld [vmem:[%s5565_s29 + $0x18c] ss:$16 sps:$4 sm:$0xff]   ;;  %v341_v9 = vcombine.high %v61_v52, %v61_v52 }
  0x1b   :  { %v3831_v59 = vld [vmem:[%s5565_s29 + $0x180] ss:$16 sps:$4 sm:$0xff]   ;;  %v3832_v61 = vld [vmem:[%s5565_s29 + $0x188] ss:$16 sps:$4 sm:$0xff]   ;;  %v3833_v62 = vld [vmem:[%s5565_s29 + $0x1a4] ss:$16 sps:$4 sm:$0xff]  }
  0x1c   :  { %1687 = vmatpush1.bf16.msra.mxu0 %v3783_v18  ;;  %1851 = vmatpush1.bf16.msra.mxu1 %v3784_v19  ;;  %v356_v58 = vcombine.high %v348_v54, %v348_v54  ;;  %v3835_v63 = vld [vmem:[%s5565_s29 + $0x1ac] ss:$16 sps:$4 sm:$0xff]   ;;  %v3837_v0 = vld [vmem:[%s5565_s29 + $0x1a0] ss:$16 sps:$4 sm:$0xff]   ;;  %v3838_v1 = vld [vmem:[%s5565_s29 + $0x1a8] ss:$16 sps:$4 sm:$0xff]   ;;  %v355_v13 = vrot.slane %v341_v9, %v4511_v49  ;;  %v4589_v15 = vrot.slane %v348_v54, %v4511_v49 }
  0x1d   :  { %1688 = vmatprep.subr.bf16.mxu0 %v3785_v20  ;;  %1852 = vmatprep.subr.bf16.mxu1 %v3787_v21  ;;  %v3839_v2 = vld [vmem:[%s5565_s29 + $0x1c4] ss:$16 sps:$4 sm:$0xff]   ;;  %v3841_v3 = vld [vmem:[%s5565_s29 + $0x1cc] ss:$16 sps:$4 sm:$0xff]   ;;  %v3843_v4 = vld [vmem:[%s5565_s29 + $0x1c0] ss:$16 sps:$4 sm:$0xff]  }
  0x1e   :  { %v378_v60 = vrot.slane %v356_v58, %v4511_v49  ;;  %v3844_v5 = vld [vmem:[%s5565_s29 + $0x1c8] ss:$16 sps:$4 sm:$0xff]   ;;  %v3845_v6 = vld [vmem:[%s5565_s29 + $0x1e4] ss:$16 sps:$4 sm:$0xff]   ;;  %v3847_v7 = vld [vmem:[%s5565_s29 + $0x1ec] ss:$16 sps:$4 sm:$0xff]   ;;  %v357_v16 = vcombine.high %v355_v13, %v355_v13  ;;  %v4604_v21 = vrot.slane %v355_v13, %v4511_v49 }
  0x1f   :  { %v3849_v8 = vld [vmem:[%s5565_s29 + $0x1e0] ss:$16 sps:$4 sm:$0xff]   ;;  %v3850_v10 = vld [vmem:[%s5565_s29 + $0x1e8] ss:$16 sps:$4 sm:$0xff]   ;;  %v3853_v11 = vld [vmem:[%s5565_s29 + $0x204] ss:$16 sps:$4 sm:$0xff]  }
  0x20   :  { %1689 = vmatpush1.bf16.msra.mxu0 %v3789_v22  ;;  %1853 = vmatpush1.bf16.msra.mxu1 %v3790_v23  ;;  %v3856_v12 = vld [vmem:[%s5565_s29 + $0x20c] ss:$16 sps:$4 sm:$0xff]   ;;  %v3851_v14 = vld [vmem:[%s5565_s29 + $0x200] ss:$16 sps:$4 sm:$0xff]   ;;  %v3854_v17 = vld [vmem:[%s5565_s29 + $0x208] ss:$16 sps:$4 sm:$0xff]   ;;  %v4601_v20 = vrot.slane %v357_v16, %v4511_v49  ;;  %v388_v22 = vcombine.high %v378_v60, %v378_v60 }
  0x21   :  { %1690 = vmatprep.subr.bf16.mxu0 %v3791_v24  ;;  %1854 = vmatprep.subr.bf16.mxu1 %v3793_v25  ;;  %v3859_v18 = vld [vmem:[%s5565_s29 + $0x224] ss:$16 sps:$4 sm:$0xff]   ;;  %v3862_v19 = vld [vmem:[%s5565_s29 + $0x22c] ss:$16 sps:$4 sm:$0xff]   ;;  %v3857_v23 = vld [vmem:[%s5565_s29 + $0x220] ss:$16 sps:$4 sm:$0xff]  }
  0x22   :  { %1710 = vmatprep.mubr.bf16.mxu0 %v378_v60  ;;  %1874 = vmatprep.mubr.bf16.mxu1 %v378_v60  ;;  %v3860_v24 = vld [vmem:[%s5565_s29 + $0x228] ss:$16 sps:$4 sm:$0xff]   ;;  %v3865_v25 = vld [vmem:[%s5565_s29 + $0x244] ss:$16 sps:$4 sm:$0xff]   ;;  %v3886_v38 = vld [vmem:[%s5565_s29 + $0x2ac] ss:$16 sps:$4 sm:$0xff]  }
  0x23   :  { %v3878_v36 = vld [vmem:[%s5565_s29 + $0x288] ss:$16 sps:$4 sm:$0xff]   ;;  %v3883_v37 = vld [vmem:[%s5565_s29 + $0x2a4] ss:$16 sps:$4 sm:$0xff]   ;;  %v3892_v43 = vld [vmem:[%s5565_s29 + $0x2cc] ss:$16 sps:$4 sm:$0xff]  }
  0x24   :  { %1691 = vmatpush1.bf16.msra.mxu0 %v3795_v26  ;;  %1855 = vmatpush1.bf16.msra.mxu1 %v3796_v27  ;;  %v3868_v26 = vld [vmem:[%s5565_s29 + $0x24c] ss:$16 sps:$4 sm:$0xff]   ;;  %v3863_v27 = vld [vmem:[%s5565_s29 + $0x240] ss:$16 sps:$4 sm:$0xff]   ;;  %v3896_v49 = vld [vmem:[%s5565_s29 + $0x2e8] ss:$16 sps:$4 sm:$0xff]  }
  0x25   :  { %1692 = vmatprep.subr.bf16.mxu0 %v3797_v28  ;;  %1856 = vmatprep.subr.bf16.mxu1 %v3799_v29  ;;  %v3866_v28 = vld [vmem:[%s5565_s29 + $0x248] ss:$16 sps:$4 sm:$0xff]   ;;  %v3871_v29 = vld [vmem:[%s5565_s29 + $0x264] ss:$16 sps:$4 sm:$0xff]   ;;  %v3899_v52 = vld [vmem:[%s5565_s29 + $0x300] ss:$16 sps:$4 sm:$0xff]  }
  0x26   :  { %v3907_v54 = vld [vmem:[%s5565_s29 + $0x324] ss:$16 sps:$4 sm:$0xff]   ;;  %v3911_v60 = vld [vmem:[%s5565_s29 + $0x340] ss:$16 sps:$4 sm:$0xff]   ;;  %v3932_v9 = vld [vmem:[%s5565_s29 + $0x3a8] ss:$16 sps:$4 sm:$0xff]  }
  0x27   :  { %v3913_v58 = vld [vmem:[%s5565_s29 + $0x344] ss:$16 sps:$4 sm:$0xff]   ;;  %v3938_v13 = vld [vmem:[%s5565_s29 + $0x3c8] ss:$16 sps:$4 sm:$0xff]   ;;  %v3946_v16 = vld [vmem:[%s5565_s29 + $0x3ec] ss:$16 sps:$4 sm:$0xff]  }
  0x28   :  { %1693 = vmatpush1.bf16.msra.mxu0 %v3801_v30  ;;  %1857 = vmatpush1.bf16.msra.mxu1 %v3802_v31  ;;  %v3874_v30 = vld [vmem:[%s5565_s29 + $0x26c] ss:$16 sps:$4 sm:$0xff]   ;;  %v3869_v31 = vld [vmem:[%s5565_s29 + $0x260] ss:$16 sps:$4 sm:$0xff]  }
  0x29   :  { %1694 = vmatprep.subr.bf16.mxu0 %v3803_v32  ;;  %1858 = vmatprep.subr.bf16.mxu1 %v3805_v33  ;;  %v3872_v32 = vld [vmem:[%s5565_s29 + $0x268] ss:$16 sps:$4 sm:$0xff]   ;;  %v3877_v33 = vld [vmem:[%s5565_s29 + $0x284] ss:$16 sps:$4 sm:$0xff]  }
  0x2c   :  { %1695 = vmatpush1.bf16.msra.mxu0 %v3807_v34  ;;  %1859 = vmatpush1.bf16.msra.mxu1 %v3808_v35  ;;  %v3880_v34 = vld [vmem:[%s5565_s29 + $0x28c] ss:$16 sps:$4 sm:$0xff]   ;;  %v3875_v35 = vld [vmem:[%s5565_s29 + $0x280] ss:$16 sps:$4 sm:$0xff]  }
  0x2d   :  { %1696 = vmatprep.subr.bf16.mxu0 %v3809_v39  ;;  %1860 = vmatprep.subr.bf16.mxu1 %v3811_v40  ;;  %v3881_v39 = vld [vmem:[%s5565_s29 + $0x2a0] ss:$16 sps:$4 sm:$0xff]   ;;  %v3884_v40 = vld [vmem:[%s5565_s29 + $0x2a8] ss:$16 sps:$4 sm:$0xff]  }
  0x30   :  { %1697 = vmatpush1.bf16.msra.mxu0 %v3813_v41  ;;  %1861 = vmatpush1.bf16.msra.mxu1 %v3814_v44  ;;  %v3889_v41 = vld [vmem:[%s5565_s29 + $0x2c4] ss:$16 sps:$4 sm:$0xff]   ;;  %v3887_v44 = vld [vmem:[%s5565_s29 + $0x2c0] ss:$16 sps:$4 sm:$0xff]  }
  0x31   :  { %1698 = vmatprep.subr.bf16.mxu0 %v3815_v45  ;;  %1862 = vmatprep.subr.bf16.mxu1 %v3817_v46  ;;  %v3890_v45 = vld [vmem:[%s5565_s29 + $0x2c8] ss:$16 sps:$4 sm:$0xff]   ;;  %v3895_v46 = vld [vmem:[%s5565_s29 + $0x2e4] ss:$16 sps:$4 sm:$0xff]  }
  0x34   :  { %1699 = vmatpush1.bf16.msra.mxu0 %v3819_v47  ;;  %1863 = vmatpush1.bf16.msra.mxu1 %v3820_v48  ;;  %v3898_v47 = vld [vmem:[%s5565_s29 + $0x2ec] ss:$16 sps:$4 sm:$0xff]   ;;  %v3893_v48 = vld [vmem:[%s5565_s29 + $0x2e0] ss:$16 sps:$4 sm:$0xff]  }
  0x35   :  { %1700 = vmatprep.subr.bf16.mxu0 %v3821_v50  ;;  %1864 = vmatprep.subr.bf16.mxu1 %v3823_v51  ;;  %v3901_v50 = vld [vmem:[%s5565_s29 + $0x304] ss:$16 sps:$4 sm:$0xff]   ;;  %v3904_v51 = vld [vmem:[%s5565_s29 + $0x30c] ss:$16 sps:$4 sm:$0xff]  }
  0x38   :  { %1701 = vmatpush1.bf16.msra.mxu0 %v3825_v53  ;;  %1865 = vmatpush1.bf16.msra.mxu1 %v3826_v55  ;;  %v3902_v53 = vld [vmem:[%s5565_s29 + $0x308] ss:$16 sps:$4 sm:$0xff]   ;;  %v3910_v55 = vld [vmem:[%s5565_s29 + $0x32c] ss:$16 sps:$4 sm:$0xff]  }
  0x39   :  { %1702 = vmatprep.subr.bf16.mxu0 %v3827_v56  ;;  %1866 = vmatprep.subr.bf16.mxu1 %v3829_v57  ;;  %v3905_v56 = vld [vmem:[%s5565_s29 + $0x320] ss:$16 sps:$4 sm:$0xff]   ;;  %v3908_v57 = vld [vmem:[%s5565_s29 + $0x328] ss:$16 sps:$4 sm:$0xff]  }
  0x3c   :  { %1703 = vmatpush1.bf16.msra.mxu0 %v3831_v59  ;;  %1867 = vmatpush1.bf16.msra.mxu1 %v3832_v61  ;;  %v3916_v59 = vld [vmem:[%s5565_s29 + $0x34c] ss:$16 sps:$4 sm:$0xff]   ;;  %v3914_v61 = vld [vmem:[%s5565_s29 + $0x348] ss:$16 sps:$4 sm:$0xff]  }
  0x3d   :  { %1704 = vmatprep.subr.bf16.mxu0 %v3833_v62  ;;  %1868 = vmatprep.subr.bf16.mxu1 %v3835_v63  ;;  %v3919_v62 = vld [vmem:[%s5565_s29 + $0x364] ss:$16 sps:$4 sm:$0xff]   ;;  %v3922_v63 = vld [vmem:[%s5565_s29 + $0x36c] ss:$16 sps:$4 sm:$0xff]  }
  0x40   :  { %1705 = vmatpush1.bf16.msra.mxu0 %v3837_v0  ;;  %1869 = vmatpush1.bf16.msra.mxu1 %v3838_v1  ;;  %v3917_v0 = vld [vmem:[%s5565_s29 + $0x360] ss:$16 sps:$4 sm:$0xff]   ;;  %v3920_v1 = vld [vmem:[%s5565_s29 + $0x368] ss:$16 sps:$4 sm:$0xff]  }
  0x41   :  { %1706 = vmatprep.subr.bf16.mxu0 %v3839_v2  ;;  %1870 = vmatprep.subr.bf16.mxu1 %v3841_v3  ;;  %v3925_v2 = vld [vmem:[%s5565_s29 + $0x384] ss:$16 sps:$4 sm:$0xff]   ;;  %v3928_v3 = vld [vmem:[%s5565_s29 + $0x38c] ss:$16 sps:$4 sm:$0xff]  }
  0x44   :  { %1707 = vmatpush1.bf16.msra.mxu0 %v3843_v4  ;;  %1871 = vmatpush1.bf16.msra.mxu1 %v3844_v5  ;;  %v3923_v4 = vld [vmem:[%s5565_s29 + $0x380] ss:$16 sps:$4 sm:$0xff]   ;;  %v3926_v5 = vld [vmem:[%s5565_s29 + $0x388] ss:$16 sps:$4 sm:$0xff]  }
  0x45   :  { %1708 = vmatprep.subr.bf16.mxu0 %v3845_v6  ;;  %1872 = vmatprep.subr.bf16.mxu1 %v3847_v7  ;;  %v3931_v6 = vld [vmem:[%s5565_s29 + $0x3a4] ss:$16 sps:$4 sm:$0xff]   ;;  %v3934_v7 = vld [vmem:[%s5565_s29 + $0x3ac] ss:$16 sps:$4 sm:$0xff]  }
  0x48   :  { %1709 = vmatpush1.bf16.msra.mxu0 %v3849_v8  ;;  %1873 = vmatpush1.bf16.msra.mxu1 %v3850_v10  ;;  %v3929_v8 = vld [vmem:[%s5565_s29 + $0x3a0] ss:$16 sps:$4 sm:$0xff]   ;;  %v3937_v10 = vld [vmem:[%s5565_s29 + $0x3c4] ss:$16 sps:$4 sm:$0xff]  }
  0x49   :  { %1719 = vmatprep.subr.bf16.mxu0 %v3853_v11  ;;  %1883 = vmatprep.subr.bf16.mxu1 %v3856_v12  ;;  %v3940_v11 = vld [vmem:[%s5565_s29 + $0x3cc] ss:$16 sps:$4 sm:$0xff]   ;;  %v3935_v12 = vld [vmem:[%s5565_s29 + $0x3c0] ss:$16 sps:$4 sm:$0xff]  }
  0x4b   :  { %1711 = vmatmul.mubr.bf16.vlgmr.msra.gmra.mrb[0].mxu0 %v4589_v15  ;;  %1875 = vmatmul.mubr.bf16.vlgmr.msra.gmra.mrb[0].mxu1 %v4589_v15 }
  0x4c   :  { %1720 = vmatpush1.bf16.msra.mxu0 %v3851_v14  ;;  %1884 = vmatpush1.bf16.msra.mxu1 %v3854_v17  ;;  %v3943_v14 = vld [vmem:[%s5565_s29 + $0x3e4] ss:$16 sps:$4 sm:$0xff]   ;;  %v3941_v17 = vld [vmem:[%s5565_s29 + $0x3e0] ss:$16 sps:$4 sm:$0xff]  }
  0x4d   :  { %1721 = vmatprep.subr.bf16.mxu0 %v3859_v18  ;;  %1885 = vmatprep.subr.bf16.mxu1 %v3862_v19  ;;  %v3944_v18 = vld [vmem:[%s5565_s29 + $0x3e8] ss:$16 sps:$4 sm:$0xff]   ;;  %v3949_v19 = vld [vmem:[%s5565_s29 + $0x404] ss:$16 sps:$4 sm:$0xff]  }
  0x4e   :  { %1751 = vmatprep.mubr.bf16.mxu0 %v388_v22  ;;  %1915 = vmatprep.mubr.bf16.mxu1 %v388_v22  ;;  %v3952_v22 = vld [vmem:[%s5565_s29 + $0x40c] ss:$16 sps:$4 sm:$0xff]  }
  0x50   :  { %1722 = vmatpush1.bf16.msra.mxu0 %v3857_v23  ;;  %1886 = vmatpush1.bf16.msra.mxu1 %v3860_v24  ;;  %v3947_v23 = vld [vmem:[%s5565_s29 + $0x400] ss:$16 sps:$4 sm:$0xff]   ;;  %v386_v24 = vcombine.high %v4589_v15, %v4589_v15 }
  0x51   :  { %1723 = vmatprep.subr.bf16.mxu0 %v3865_v25  ;;  %1887 = vmatprep.subr.bf16.mxu1 %v3868_v26  ;;  %v3950_v25 = vld [vmem:[%s5565_s29 + $0x408] ss:$16 sps:$4 sm:$0xff]   ;;  %v3955_v26 = vld [vmem:[%s5565_s29 + $0x424] ss:$16 sps:$4 sm:$0xff]   ;;  %v3953_v15 = vld [vmem:[%s5565_s29 + $0x420] ss:$16 sps:$4 sm:$0xff]  }
  0x54   :  { %1724 = vmatpush1.bf16.msra.mxu0 %v3863_v27  ;;  %1888 = vmatpush1.bf16.msra.mxu1 %v3866_v28  ;;  %v3958_v27 = vld [vmem:[%s5565_s29 + $0x42c] ss:$16 sps:$4 sm:$0xff]   ;;  %v3956_v28 = vld [vmem:[%s5565_s29 + $0x428] ss:$16 sps:$4 sm:$0xff]  }
  0x55   :  { %1725 = vmatprep.subr.bf16.mxu0 %v3871_v29  ;;  %1889 = vmatprep.subr.bf16.mxu1 %v3874_v30  ;;  %v3961_v29 = vld [vmem:[%s5565_s29 + $0x444] ss:$16 sps:$4 sm:$0xff]   ;;  %v3964_v30 = vld [vmem:[%s5565_s29 + $0x44c] ss:$16 sps:$4 sm:$0xff]  }
  0x58   :  { %1726 = vmatpush1.bf16.msra.mxu0 %v3869_v31  ;;  %1890 = vmatpush1.bf16.msra.mxu1 %v3872_v32  ;;  %v3959_v31 = vld [vmem:[%s5565_s29 + $0x440] ss:$16 sps:$4 sm:$0xff]   ;;  %v3962_v32 = vld [vmem:[%s5565_s29 + $0x448] ss:$16 sps:$4 sm:$0xff]  }
  0x59   :  { %1727 = vmatprep.subr.bf16.mxu0 %v3877_v33  ;;  %1891 = vmatprep.subr.bf16.mxu1 %v3880_v34  ;;  %v3967_v33 = vld [vmem:[%s5565_s29 + $0x464] ss:$16 sps:$4 sm:$0xff]   ;;  %v3970_v34 = vld [vmem:[%s5565_s29 + $0x46c] ss:$16 sps:$4 sm:$0xff]  }
  0x5c   :  { %1728 = vmatpush1.bf16.msra.mxu0 %v3875_v35  ;;  %1892 = vmatpush1.bf16.msra.mxu1 %v3878_v36  ;;  %v3965_v35 = vld [vmem:[%s5565_s29 + $0x460] ss:$16 sps:$4 sm:$0xff]   ;;  %v3968_v36 = vld [vmem:[%s5565_s29 + $0x468] ss:$16 sps:$4 sm:$0xff]  }
  0x5d   :  { %1729 = vmatprep.subr.bf16.mxu0 %v3883_v37  ;;  %1893 = vmatprep.subr.bf16.mxu1 %v3886_v38  ;;  %v3973_v37 = vld [vmem:[%s5565_s29 + $0x484] ss:$16 sps:$4 sm:$0xff]   ;;  %v3976_v38 = vld [vmem:[%s5565_s29 + $0x48c] ss:$16 sps:$4 sm:$0xff]  }
  0x60   :  { %1730 = vmatpush1.bf16.msra.mxu0 %v3881_v39  ;;  %1894 = vmatpush1.bf16.msra.mxu1 %v3884_v40  ;;  %v3971_v39 = vld [vmem:[%s5565_s29 + $0x480] ss:$16 sps:$4 sm:$0xff]   ;;  %v3974_v40 = vld [vmem:[%s5565_s29 + $0x488] ss:$16 sps:$4 sm:$0xff]  }
  0x61   :  { %1731 = vmatprep.subr.bf16.mxu0 %v3889_v41  ;;  %1895 = vmatprep.subr.bf16.mxu1 %v3892_v43  ;;  %v3979_v41 = vld [vmem:[%s5565_s29 + $0x4a4] ss:$16 sps:$4 sm:$0xff]   ;;  %v3982_v43 = vld [vmem:[%s5565_s29 + $0x4ac] ss:$16 sps:$4 sm:$0xff]  }
  0x64   :  { %1732 = vmatpush1.bf16.msra.mxu0 %v3887_v44  ;;  %1896 = vmatpush1.bf16.msra.mxu1 %v3890_v45  ;;  %v3977_v44 = vld [vmem:[%s5565_s29 + $0x4a0] ss:$16 sps:$4 sm:$0xff]   ;;  %v3980_v45 = vld [vmem:[%s5565_s29 + $0x4a8] ss:$16 sps:$4 sm:$0xff]  }
  0x65   :  { %1733 = vmatprep.subr.bf16.mxu0 %v3895_v46  ;;  %1897 = vmatprep.subr.bf16.mxu1 %v3898_v47  ;;  %v3985_v46 = vld [vmem:[%s5565_s29 + $0x4c4] ss:$16 sps:$4 sm:$0xff]   ;;  %v3988_v47 = vld [vmem:[%s5565_s29 + $0x4cc] ss:$16 sps:$4 sm:$0xff]  }
  0x68   :  { %1734 = vmatpush1.bf16.msra.mxu0 %v3893_v48  ;;  %1898 = vmatpush1.bf16.msra.mxu1 %v3896_v49  ;;  %v3983_v48 = vld [vmem:[%s5565_s29 + $0x4c0] ss:$16 sps:$4 sm:$0xff]   ;;  %v3986_v49 = vld [vmem:[%s5565_s29 + $0x4c8] ss:$16 sps:$4 sm:$0xff]  }
  0x69   :  { %1735 = vmatprep.subr.bf16.mxu0 %v3901_v50  ;;  %1899 = vmatprep.subr.bf16.mxu1 %v3904_v51  ;;  %v3991_v50 = vld [vmem:[%s5565_s29 + $0x4e4] ss:$16 sps:$4 sm:$0xff]   ;;  %v3994_v51 = vld [vmem:[%s5565_s29 + $0x4ec] ss:$16 sps:$4 sm:$0xff]  }
  0x6c   :  { %1736 = vmatpush1.bf16.msra.mxu0 %v3899_v52  ;;  %1900 = vmatpush1.bf16.msra.mxu1 %v3902_v53  ;;  %v3989_v52 = vld [vmem:[%s5565_s29 + $0x4e0] ss:$16 sps:$4 sm:$0xff]   ;;  %v3992_v53 = vld [vmem:[%s5565_s29 + $0x4e8] ss:$16 sps:$4 sm:$0xff]  }
  0x6d   :  { %1737 = vmatprep.subr.bf16.mxu0 %v3907_v54  ;;  %1901 = vmatprep.subr.bf16.mxu1 %v3910_v55  ;;  %v3997_v54 = vld [vmem:[%s5565_s29 + $0x504] ss:$16 sps:$4 sm:$0xff]   ;;  %v4000_v55 = vld [vmem:[%s5565_s29 + $0x50c] ss:$16 sps:$4 sm:$0xff]  }
  0x70   :  { %1738 = vmatpush1.bf16.msra.mxu0 %v3905_v56  ;;  %1902 = vmatpush1.bf16.msra.mxu1 %v3908_v57  ;;  %v3995_v56 = vld [vmem:[%s5565_s29 + $0x500] ss:$16 sps:$4 sm:$0xff]   ;;  %v3998_v57 = vld [vmem:[%s5565_s29 + $0x508] ss:$16 sps:$4 sm:$0xff]  }
  0x71   :  { %1739 = vmatprep.subr.bf16.mxu0 %v3913_v58  ;;  %1903 = vmatprep.subr.bf16.mxu1 %v3916_v59  ;;  %v4003_v58 = vld [vmem:[%s5565_s29 + $0x524] ss:$16 sps:$4 sm:$0xff]   ;;  %v4006_v59 = vld [vmem:[%s5565_s29 + $0x52c] ss:$16 sps:$4 sm:$0xff]  }
  0x74   :  { %1740 = vmatpush1.bf16.msra.mxu0 %v3911_v60  ;;  %1904 = vmatpush1.bf16.msra.mxu1 %v3914_v61  ;;  %v4001_v60 = vld [vmem:[%s5565_s29 + $0x520] ss:$16 sps:$4 sm:$0xff]   ;;  %v4004_v61 = vld [vmem:[%s5565_s29 + $0x528] ss:$16 sps:$4 sm:$0xff]  }
  0x75   :  { %1741 = vmatprep.subr.bf16.mxu0 %v3919_v62  ;;  %1905 = vmatprep.subr.bf16.mxu1 %v3922_v63  ;;  %v4009_v62 = vld [vmem:[%s5565_s29 + $0x544] ss:$16 sps:$4 sm:$0xff]   ;;  %v4012_v63 = vld [vmem:[%s5565_s29 + $0x54c] ss:$16 sps:$4 sm:$0xff]  }
  0x78   :  { %1742 = vmatpush1.bf16.msra.mxu0 %v3917_v0  ;;  %1906 = vmatpush1.bf16.msra.mxu1 %v3920_v1  ;;  %v4007_v0 = vld [vmem:[%s5565_s29 + $0x540] ss:$16 sps:$4 sm:$0xff]   ;;  %v4010_v1 = vld [vmem:[%s5565_s29 + $0x548] ss:$16 sps:$4 sm:$0xff]  }
  0x79   :  { %1743 = vmatprep.subr.bf16.mxu0 %v3925_v2  ;;  %1907 = vmatprep.subr.bf16.mxu1 %v3928_v3  ;;  %v4015_v2 = vld [vmem:[%s5565_s29 + $0x564] ss:$16 sps:$4 sm:$0xff]   ;;  %v4018_v3 = vld [vmem:[%s5565_s29 + $0x56c] ss:$16 sps:$4 sm:$0xff]  }
  0x7c   :  { %1744 = vmatpush1.bf16.msra.mxu0 %v3923_v4  ;;  %1908 = vmatpush1.bf16.msra.mxu1 %v3926_v5  ;;  %v4013_v4 = vld [vmem:[%s5565_s29 + $0x560] ss:$16 sps:$4 sm:$0xff]   ;;  %v4016_v5 = vld [vmem:[%s5565_s29 + $0x568] ss:$16 sps:$4 sm:$0xff]  }
  0x7d   :  { %1745 = vmatprep.subr.bf16.mxu0 %v3931_v6  ;;  %1909 = vmatprep.subr.bf16.mxu1 %v3934_v7  ;;  %v4021_v6 = vld [vmem:[%s5565_s29 + $0x584] ss:$16 sps:$4 sm:$0xff]   ;;  %v4024_v7 = vld [vmem:[%s5565_s29 + $0x58c] ss:$16 sps:$4 sm:$0xff]  }
  0x80   :  { %1746 = vmatpush1.bf16.msra.mxu0 %v3929_v8  ;;  %1910 = vmatpush1.bf16.msra.mxu1 %v3932_v9  ;;  %v4019_v8 = vld [vmem:[%s5565_s29 + $0x580] ss:$16 sps:$4 sm:$0xff]   ;;  %v4022_v9 = vld [vmem:[%s5565_s29 + $0x588] ss:$16 sps:$4 sm:$0xff]  }
  0x81   :  { %1747 = vmatprep.subr.bf16.mxu0 %v3937_v10  ;;  %1911 = vmatprep.subr.bf16.mxu1 %v3940_v11  ;;  %v4027_v10 = vld [vmem:[%s5565_s29 + $0x5a4] ss:$16 sps:$4 sm:$0xff]   ;;  %v4030_v11 = vld [vmem:[%s5565_s29 + $0x5ac] ss:$16 sps:$4 sm:$0xff]  }
  0x84   :  { %1748 = vmatpush1.bf16.msra.mxu0 %v3935_v12  ;;  %1912 = vmatpush1.bf16.msra.mxu1 %v3938_v13  ;;  %v4025_v12 = vld [vmem:[%s5565_s29 + $0x5a0] ss:$16 sps:$4 sm:$0xff]   ;;  %v4028_v13 = vld [vmem:[%s5565_s29 + $0x5a8] ss:$16 sps:$4 sm:$0xff]  }
  0x85   :  { %1749 = vmatprep.subr.bf16.mxu0 %v3943_v14  ;;  %1913 = vmatprep.subr.bf16.mxu1 %v3946_v16  ;;  %v4033_v14 = vld [vmem:[%s5565_s29 + $0x5c4] ss:$16 sps:$4 sm:$0xff]   ;;  %v4036_v16 = vld [vmem:[%s5565_s29 + $0x5cc] ss:$16 sps:$4 sm:$0xff]  }
  0x88   :  { %1750 = vmatpush1.bf16.msra.mxu0 %v3941_v17  ;;  %1914 = vmatpush1.bf16.msra.mxu1 %v3944_v18  ;;  %v4031_v17 = vld [vmem:[%s5565_s29 + $0x5c0] ss:$16 sps:$4 sm:$0xff]   ;;  %v4034_v18 = vld [vmem:[%s5565_s29 + $0x5c8] ss:$16 sps:$4 sm:$0xff]  }
  0x89   :  { %1760 = vmatprep.subr.bf16.mxu0 %v3949_v19  ;;  %1924 = vmatprep.subr.bf16.mxu1 %v3952_v22  ;;  %v4039_v19 = vld [vmem:[%s5565_s29 + $0x5e4] ss:$16 sps:$4 sm:$0xff]   ;;  %v4042_v22 = vld [vmem:[%s5565_s29 + $0x5ec] ss:$16 sps:$4 sm:$0xff]  }
  0x8b   :  { %1752 = vmatmul.mubr.bf16.vlgmr.msra.gmra.mrb[0].mxu0 %v386_v24  ;;  %1916 = vmatmul.mubr.bf16.vlgmr.msra.gmra.mrb[0].mxu1 %v386_v24  ;;  %v4040_v24 = vld [vmem:[%s5565_s29 + $0x5e8] ss:$16 sps:$4 sm:$0xff]  }
  0x8c   :  { %1761 = vmatpush1.bf16.msra.mxu0 %v3947_v23  ;;  %1925 = vmatpush1.bf16.msra.mxu1 %v3950_v25  ;;  %v4037_v23 = vld [vmem:[%s5565_s29 + $0x5e0] ss:$16 sps:$4 sm:$0xff]   ;;  %v4046_v25 = vld [vmem:[%s5565_s29 + $0x604] ss:$16 sps:$4 sm:$0xff]  }
  0x8d   :  { %1762 = vmatprep.subr.bf16.mxu0 %v3955_v26  ;;  %1926 = vmatprep.subr.bf16.mxu1 %v3958_v27  ;;  %v4049_v26 = vld [vmem:[%s5565_s29 + $0x60c] ss:$16 sps:$4 sm:$0xff]   ;;  %v4044_v27 = vld [vmem:[%s5565_s29 + $0x600] ss:$16 sps:$4 sm:$0xff]  }
  0x8e   :  { %1792 = vmatprep.mubr.bf16.mxu0 %v4601_v20  ;;  %1956 = vmatprep.mubr.bf16.mxu1 %v4601_v20 }
  0x90   :  { %1763 = vmatpush1.bf16.msra.mxu0 %v3953_v15  ;;  %1927 = vmatpush1.bf16.msra.mxu1 %v3956_v28  ;;  %v4047_v15 = vld [vmem:[%s5565_s29 + $0x608] ss:$16 sps:$4 sm:$0xff]   ;;  %v4052_v28 = vld [vmem:[%s5565_s29 + $0x624] ss:$16 sps:$4 sm:$0xff]  }
  0x91   :  { %1764 = vmatprep.subr.bf16.mxu0 %v3961_v29  ;;  %1928 = vmatprep.subr.bf16.mxu1 %v3964_v30  ;;  %v4055_v29 = vld [vmem:[%s5565_s29 + $0x62c] ss:$16 sps:$4 sm:$0xff]   ;;  %v4050_v30 = vld [vmem:[%s5565_s29 + $0x620] ss:$16 sps:$4 sm:$0xff]  }
  0x94   :  { %1765 = vmatpush1.bf16.msra.mxu0 %v3959_v31  ;;  %1929 = vmatpush1.bf16.msra.mxu1 %v3962_v32  ;;  %v4053_v31 = vld [vmem:[%s5565_s29 + $0x628] ss:$16 sps:$4 sm:$0xff]   ;;  %v389_v32 = vcombine.high %v4601_v20, %v4601_v20  ;;  %v4056_v20 = vld [vmem:[%s5565_s29 + $0x640] ss:$16 sps:$4 sm:$0xff]  }
  0x95   :  { %1766 = vmatprep.subr.bf16.mxu0 %v3967_v33  ;;  %1930 = vmatprep.subr.bf16.mxu1 %v3970_v34  ;;  %v4058_v33 = vld [vmem:[%s5565_s29 + $0x644] ss:$16 sps:$4 sm:$0xff]   ;;  %v4061_v34 = vld [vmem:[%s5565_s29 + $0x64c] ss:$16 sps:$4 sm:$0xff]  }
  0x98   :  { %1767 = vmatpush1.bf16.msra.mxu0 %v3965_v35  ;;  %1931 = vmatpush1.bf16.msra.mxu1 %v3968_v36  ;;  %v4059_v35 = vld [vmem:[%s5565_s29 + $0x648] ss:$16 sps:$4 sm:$0xff]   ;;  %v4064_v36 = vld [vmem:[%s5565_s29 + $0x664] ss:$16 sps:$4 sm:$0xff]  }
  0x99   :  { %1768 = vmatprep.subr.bf16.mxu0 %v3973_v37  ;;  %1932 = vmatprep.subr.bf16.mxu1 %v3976_v38  ;;  %v4067_v37 = vld [vmem:[%s5565_s29 + $0x66c] ss:$16 sps:$4 sm:$0xff]   ;;  %v4062_v38 = vld [vmem:[%s5565_s29 + $0x660] ss:$16 sps:$4 sm:$0xff]  }
  0x9c   :  { %1769 = vmatpush1.bf16.msra.mxu0 %v3971_v39  ;;  %1933 = vmatpush1.bf16.msra.mxu1 %v3974_v40  ;;  %v4065_v39 = vld [vmem:[%s5565_s29 + $0x668] ss:$16 sps:$4 sm:$0xff]   ;;  %v4070_v40 = vld [vmem:[%s5565_s29 + $0x684] ss:$16 sps:$4 sm:$0xff]  }
  0x9d   :  { %1770 = vmatprep.subr.bf16.mxu0 %v3979_v41  ;;  %1934 = vmatprep.subr.bf16.mxu1 %v3982_v43  ;;  %v4073_v41 = vld [vmem:[%s5565_s29 + $0x68c] ss:$16 sps:$4 sm:$0xff]   ;;  %v4068_v43 = vld [vmem:[%s5565_s29 + $0x680] ss:$16 sps:$4 sm:$0xff]  }
  0xa0   :  { %1771 = vmatpush1.bf16.msra.mxu0 %v3977_v44  ;;  %1935 = vmatpush1.bf16.msra.mxu1 %v3980_v45  ;;  %v4071_v44 = vld [vmem:[%s5565_s29 + $0x688] ss:$16 sps:$4 sm:$0xff]   ;;  %v4076_v45 = vld [vmem:[%s5565_s29 + $0x6a4] ss:$16 sps:$4 sm:$0xff]  }
  0xa1   :  { %1772 = vmatprep.subr.bf16.mxu0 %v3985_v46  ;;  %1936 = vmatprep.subr.bf16.mxu1 %v3988_v47  ;;  %v4079_v46 = vld [vmem:[%s5565_s29 + $0x6ac] ss:$16 sps:$4 sm:$0xff]   ;;  %v4074_v47 = vld [vmem:[%s5565_s29 + $0x6a0] ss:$16 sps:$4 sm:$0xff]  }
  0xa4   :  { %1773 = vmatpush1.bf16.msra.mxu0 %v3983_v48  ;;  %1937 = vmatpush1.bf16.msra.mxu1 %v3986_v49  ;;  %v4077_v48 = vld [vmem:[%s5565_s29 + $0x6a8] ss:$16 sps:$4 sm:$0xff]   ;;  %v4082_v49 = vld [vmem:[%s5565_s29 + $0x6c4] ss:$16 sps:$4 sm:$0xff]  }
  0xa5   :  { %1774 = vmatprep.subr.bf16.mxu0 %v3991_v50  ;;  %1938 = vmatprep.subr.bf16.mxu1 %v3994_v51  ;;  %v4085_v50 = vld [vmem:[%s5565_s29 + $0x6cc] ss:$16 sps:$4 sm:$0xff]   ;;  %v4080_v51 = vld [vmem:[%s5565_s29 + $0x6c0] ss:$16 sps:$4 sm:$0xff]  }
  0xa8   :  { %1775 = vmatpush1.bf16.msra.mxu0 %v3989_v52  ;;  %1939 = vmatpush1.bf16.msra.mxu1 %v3992_v53  ;;  %v4083_v52 = vld [vmem:[%s5565_s29 + $0x6c8] ss:$16 sps:$4 sm:$0xff]   ;;  %v4088_v53 = vld [vmem:[%s5565_s29 + $0x6e4] ss:$16 sps:$4 sm:$0xff]  }
  0xa9   :  { %1776 = vmatprep.subr.bf16.mxu0 %v3997_v54  ;;  %1940 = vmatprep.subr.bf16.mxu1 %v4000_v55  ;;  %v4091_v54 = vld [vmem:[%s5565_s29 + $0x6ec] ss:$16 sps:$4 sm:$0xff]   ;;  %v4086_v55 = vld [vmem:[%s5565_s29 + $0x6e0] ss:$16 sps:$4 sm:$0xff]  }
  0xac   :  { %1777 = vmatpush1.bf16.msra.mxu0 %v3995_v56  ;;  %1941 = vmatpush1.bf16.msra.mxu1 %v3998_v57  ;;  %v4089_v56 = vld [vmem:[%s5565_s29 + $0x6e8] ss:$16 sps:$4 sm:$0xff]   ;;  %v4094_v57 = vld [vmem:[%s5565_s29 + $0x704] ss:$16 sps:$4 sm:$0xff]  }
  0xad   :  { %1778 = vmatprep.subr.bf16.mxu0 %v4003_v58  ;;  %1942 = vmatprep.subr.bf16.mxu1 %v4006_v59  ;;  %v4097_v58 = vld [vmem:[%s5565_s29 + $0x70c] ss:$16 sps:$4 sm:$0xff]   ;;  %v4092_v59 = vld [vmem:[%s5565_s29 + $0x700] ss:$16 sps:$4 sm:$0xff]  }
  0xb0   :  { %1779 = vmatpush1.bf16.msra.mxu0 %v4001_v60  ;;  %1943 = vmatpush1.bf16.msra.mxu1 %v4004_v61  ;;  %v4095_v60 = vld [vmem:[%s5565_s29 + $0x708] ss:$16 sps:$4 sm:$0xff]   ;;  %v4100_v61 = vld [vmem:[%s5565_s29 + $0x724] ss:$16 sps:$4 sm:$0xff]  }
  0xb1   :  { %1780 = vmatprep.subr.bf16.mxu0 %v4009_v62  ;;  %1944 = vmatprep.subr.bf16.mxu1 %v4012_v63  ;;  %v4103_v62 = vld [vmem:[%s5565_s29 + $0x72c] ss:$16 sps:$4 sm:$0xff]   ;;  %v4098_v63 = vld [vmem:[%s5565_s29 + $0x720] ss:$16 sps:$4 sm:$0xff]  }
  0xb4   :  { %1781 = vmatpush1.bf16.msra.mxu0 %v4007_v0  ;;  %1945 = vmatpush1.bf16.msra.mxu1 %v4010_v1  ;;  %v4101_v0 = vld [vmem:[%s5565_s29 + $0x728] ss:$16 sps:$4 sm:$0xff]   ;;  %v4106_v1 = vld [vmem:[%s5565_s29 + $0x744] ss:$16 sps:$4 sm:$0xff]  }
  0xb5   :  { %1782 = vmatprep.subr.bf16.mxu0 %v4015_v2  ;;  %1946 = vmatprep.subr.bf16.mxu1 %v4018_v3  ;;  %v4109_v2 = vld [vmem:[%s5565_s29 + $0x74c] ss:$16 sps:$4 sm:$0xff]   ;;  %v4104_v3 = vld [vmem:[%s5565_s29 + $0x740] ss:$16 sps:$4 sm:$0xff]  }
  0xb8   :  { %1783 = vmatpush1.bf16.msra.mxu0 %v4013_v4  ;;  %1947 = vmatpush1.bf16.msra.mxu1 %v4016_v5  ;;  %v4107_v4 = vld [vmem:[%s5565_s29 + $0x748] ss:$16 sps:$4 sm:$0xff]   ;;  %v4112_v5 = vld [vmem:[%s5565_s29 + $0x764] ss:$16 sps:$4 sm:$0xff]  }
  0xb9   :  { %1784 = vmatprep.subr.bf16.mxu0 %v4021_v6  ;;  %1948 = vmatprep.subr.bf16.mxu1 %v4024_v7  ;;  %v4115_v6 = vld [vmem:[%s5565_s29 + $0x76c] ss:$16 sps:$4 sm:$0xff]  }
  0xbc   :  { %1785 = vmatpush1.bf16.msra.mxu0 %v4019_v8  ;;  %1949 = vmatpush1.bf16.msra.mxu1 %v4022_v9 }
  0xbd   :  { %1786 = vmatprep.subr.bf16.mxu0 %v4027_v10  ;;  %1950 = vmatprep.subr.bf16.mxu1 %v4030_v11 }
  0xc0   :  { %1787 = vmatpush1.bf16.msra.mxu0 %v4025_v12  ;;  %1951 = vmatpush1.bf16.msra.mxu1 %v4028_v13 }
  0xc1   :  { %1788 = vmatprep.subr.bf16.mxu0 %v4033_v14  ;;  %1952 = vmatprep.subr.bf16.mxu1 %v4036_v16 }
  0xc4   :  { %1789 = vmatpush1.bf16.msra.mxu0 %v4031_v17  ;;  %1953 = vmatpush1.bf16.msra.mxu1 %v4034_v18 }
  0xc5   :  { %1790 = vmatprep.subr.bf16.mxu0 %v4039_v19  ;;  %1954 = vmatprep.subr.bf16.mxu1 %v4042_v22 }
  0xc8   :  { %1791 = vmatpush1.bf16.msra.mxu0 %v4037_v23  ;;  %1955 = vmatpush1.bf16.msra.mxu1 %v4040_v24 }
  0xc9   :  { %1801 = vmatprep.subr.bf16.mxu0 %v4046_v25  ;;  %1965 = vmatprep.subr.bf16.mxu1 %v4049_v26 }
  0xcb   :  { %1793 = vmatmul.mubr.bf16.vlgmr.msra.gmra.mrb[0].mxu0 %v4604_v21  ;;  %1957 = vmatmul.mubr.bf16.vlgmr.msra.gmra.mrb[0].mxu1 %v4604_v21 }
  0xcc   :  { %1802 = vmatpush1.bf16.msra.mxu0 %v4044_v27  ;;  %1966 = vmatpush1.bf16.msra.mxu1 %v4047_v15 }
  0xcd   :  { %1803 = vmatprep.subr.bf16.mxu0 %v4052_v28  ;;  %1967 = vmatprep.subr.bf16.mxu1 %v4055_v29 }
  0xce   :  { %1833 = vmatprep.mubr.bf16.mxu0 %v389_v32  ;;  %1997 = vmatprep.mubr.bf16.mxu1 %v389_v32 }
  0xd0   :  { %1804 = vmatpush1.bf16.msra.mxu0 %v4050_v30  ;;  %1968 = vmatpush1.bf16.msra.mxu1 %v4053_v31 }
  0xd1   :  { %1805 = vmatprep.subr.bf16.mxu0 %v4058_v33  ;;  %1969 = vmatprep.subr.bf16.mxu1 %v4061_v34 }
  0xd4   :  { %1806 = vmatpush1.bf16.msra.mxu0 %v4056_v20  ;;  %1970 = vmatpush1.bf16.msra.mxu1 %v4059_v35 }
  0xd5   :  { %1807 = vmatprep.subr.bf16.mxu0 %v4064_v36  ;;  %1971 = vmatprep.subr.bf16.mxu1 %v4067_v37 }
  0xd8   :  { %1808 = vmatpush1.bf16.msra.mxu0 %v4062_v38  ;;  %1972 = vmatpush1.bf16.msra.mxu1 %v4065_v39 }
  0xd9   :  { %1809 = vmatprep.subr.bf16.mxu0 %v4070_v40  ;;  %1973 = vmatprep.subr.bf16.mxu1 %v4073_v41 }
  0xdc   :  { %1810 = vmatpush1.bf16.msra.mxu0 %v4068_v43  ;;  %1974 = vmatpush1.bf16.msra.mxu1 %v4071_v44 }
  0xdd   :  { %1811 = vmatprep.subr.bf16.mxu0 %v4076_v45  ;;  %1975 = vmatprep.subr.bf16.mxu1 %v4079_v46 }
  0xe0   :  { %1812 = vmatpush1.bf16.msra.mxu0 %v4074_v47  ;;  %1976 = vmatpush1.bf16.msra.mxu1 %v4077_v48 }
  0xe1   :  { %1813 = vmatprep.subr.bf16.mxu0 %v4082_v49  ;;  %1977 = vmatprep.subr.bf16.mxu1 %v4085_v50 }
  0xe4   :  { %1814 = vmatpush1.bf16.msra.mxu0 %v4080_v51  ;;  %1978 = vmatpush1.bf16.msra.mxu1 %v4083_v52 }
  0xe5   :  { %1815 = vmatprep.subr.bf16.mxu0 %v4088_v53  ;;  %1979 = vmatprep.subr.bf16.mxu1 %v4091_v54 }
  0xe8   :  { %1816 = vmatpush1.bf16.msra.mxu0 %v4086_v55  ;;  %1980 = vmatpush1.bf16.msra.mxu1 %v4089_v56 }
  0xe9   :  { %1817 = vmatprep.subr.bf16.mxu0 %v4094_v57  ;;  %1981 = vmatprep.subr.bf16.mxu1 %v4097_v58 }
  0xec   :  { %1818 = vmatpush1.bf16.msra.mxu0 %v4092_v59  ;;  %1982 = vmatpush1.bf16.msra.mxu1 %v4095_v60 }
  0xed   :  { %1819 = vmatprep.subr.bf16.mxu0 %v4100_v61  ;;  %1983 = vmatprep.subr.bf16.mxu1 %v4103_v62 }
  0xf0   :  { %1820 = vmatpush1.bf16.msra.mxu0 %v4098_v63  ;;  %1984 = vmatpush1.bf16.msra.mxu1 %v4101_v0 }
  0xf1   :  { %1821 = vmatprep.subr.bf16.mxu0 %v4106_v1  ;;  %1985 = vmatprep.subr.bf16.mxu1 %v4109_v2 }
  0xf2   :  { %25 = vsyncpa [#allocation5], 0  ;;  %v4110_v7 = vld [vmem:[%s5565_s29 + $0x760] ss:$16 sps:$4 sm:$0xff]   ;;  %v4113_v8 = vld [vmem:[%s5565_s29 + $0x768] ss:$16 sps:$4 sm:$0xff]   ;;  %v387_v29 = vcombine.high %v4604_v21, %v4604_v21 }
  0xf3   :  { %v4118_v9 = vld [vmem:[%s5565_s29 + $0x784] ss:$16 sps:$4 sm:$0xff]   ;;  %v4121_v10 = vld [vmem:[%s5565_s29 + $0x78c] ss:$16 sps:$4 sm:$0xff]   ;;  %v4116_v11 = vld [vmem:[%s5565_s29 + $0x780] ss:$16 sps:$4 sm:$0xff]  }
  0xf4   :  { %1822 = vmatpush1.bf16.msra.mxu0 %v4104_v3  ;;  %1986 = vmatpush1.bf16.msra.mxu1 %v4107_v4  ;;  %v4119_v12 = vld [vmem:[%s5565_s29 + $0x788] ss:$16 sps:$4 sm:$0xff]   ;;  %v4124_v13 = vld [vmem:[%s5565_s29 + $0x7a4] ss:$16 sps:$4 sm:$0xff]   ;;  %v4127_v14 = vld [vmem:[%s5565_s29 + $0x7ac] ss:$16 sps:$4 sm:$0xff]  }
  0xf5   :  { %1823 = vmatprep.subr.bf16.mxu0 %v4112_v5  ;;  %1987 = vmatprep.subr.bf16.mxu1 %v4115_v6  ;;  %v4122_v16 = vld [vmem:[%s5565_s29 + $0x7a0] ss:$16 sps:$4 sm:$0xff]   ;;  %v4125_v17 = vld [vmem:[%s5565_s29 + $0x7a8] ss:$16 sps:$4 sm:$0xff]   ;;  %v4130_v18 = vld [vmem:[%s5565_s29 + $0x7c4] ss:$16 sps:$4 sm:$0xff]  }
  0xf6   :  { %v4133_v19 = vld [vmem:[%s5565_s29 + $0x7cc] ss:$16 sps:$4 sm:$0xff]   ;;  %v4128_v22 = vld [vmem:[%s5565_s29 + $0x7c0] ss:$16 sps:$4 sm:$0xff]   ;;  %v4131_v23 = vld [vmem:[%s5565_s29 + $0x7c8] ss:$16 sps:$4 sm:$0xff]  }
  0xf7   :  { %v4136_v24 = vld [vmem:[%s5565_s29 + $0x7e4] ss:$16 sps:$4 sm:$0xff]   ;;  %v4139_v25 = vld [vmem:[%s5565_s29 + $0x7ec] ss:$16 sps:$4 sm:$0xff]   ;;  %v4134_v26 = vld [vmem:[%s5565_s29 + $0x7e0] ss:$16 sps:$4 sm:$0xff]  }
  0xf8   :  { %1824 = vmatpush1.bf16.msra.mxu0 %v4110_v7  ;;  %1988 = vmatpush1.bf16.msra.mxu1 %v4113_v8  ;;  %v4137_v27 = vld [vmem:[%s5565_s29 + $0x7e8] ss:$16 sps:$4 sm:$0xff]   ;;  %v4140_v15 = vld [vmem:[%s5546_s4 + $0xc0] sm:$0xff]   ;;  %v4148_v20 = vld [vmem:[%s5546_s4 + $0xd0] sm:$0xff]   ;;  %vm2277_vm0 = vcmask 1041408   ;;  %v4276_v60 = vmov 0.0  }
  0xf9   :  { %1825 = vmatprep.subr.bf16.mxu0 %v4118_v9  ;;  %1989 = vmatprep.subr.bf16.mxu1 %v4121_v10  ;;  %v4141_v28 = vld [vmem:[%s5546_s4 + $0x40] sm:$0xff]   ;;  %v4144_v32 = vld [vmem:[%s5546_s4 + $0xc8] sm:$0xff]   ;;  %v4149_v35 = vld [vmem:[%s5546_s4 + $0x50] sm:$0xff]   ;;  %v322_v61 = vsub.s32 0, %v4493_v42  ;;  %v330_v62 = vsub.s32 2, %v4493_v42  ;;  %v326_v0 = vsub.s32 1, %v4493_v42 }
  0xfa   :  { %v4142_v30 = vld [vmem:[%s5546_s4 + $0x80] sm:$0xff]   ;;  %v4145_v21 = vld [vmem:[%s5546_s4 + $0x48] sm:$0xff]   ;;  %v4150_v36 = vld [vmem:[%s5546_s4 + $0x90] sm:$0xff]   ;;  %v334_v1 = vsub.s32 3, %v4493_v42  ;;  %vm2273_vm1 = vcmask 949248   ;;  %vm4277_vm2 = vmmov 0  }
  0xfb   :  { %v4143_v31 = vld [vmem:[%s5546_s4] sm:$0xff]   ;;  %v4146_v33 = vld [vmem:[%s5546_s4 + $0x88] sm:$0xff]   ;;  %v4151_v37 = vld [vmem:[%s5546_s4 + $0x10] sm:$0xff]   ;;  %vm2422_vm3 = vcmask 818176   ;;  %vm2934_vm4 = vcmask 1045504   ;;  %s5567_s20 = sld [smem:[#allocation9_spill]] }
  0xfc   :  { %1826 = vmatpush1.bf16.msra.mxu0 %v4116_v11  ;;  %1990 = vmatpush1.bf16.msra.mxu1 %v4119_v12  ;;  %v4147_v34 = vld [vmem:[%s5546_s4 + $0x8] sm:$0xff]   ;;  %v4152_v38 = vld [vmem:[%s5546_s4 + $0xd8] sm:$0xff]   ;;  %v4156_v43 = vld [vmem:[%s5546_s4 + $0xe0] sm:$0xff]   ;;  %vm2930_vm5 = vcmask 97280   ;;  %vm3010_vm6 = vcmask 1040384   ;;  %vm3006_vm7 = vcmask 408576  }
  0xfd   :  { %1827 = vmatprep.subr.bf16.mxu0 %v4124_v13  ;;  %1991 = vmatprep.subr.bf16.mxu1 %v4127_v14  ;;  %v4153_v39 = vld [vmem:[%s5546_s4 + $0x58] sm:$0xff]   ;;  %v4157_v44 = vld [vmem:[%s5546_s4 + $0x60] sm:$0xff]   ;;  %v4160_v47 = vld [vmem:[%s5546_s4 + $0xe8] sm:$0xff]   ;;  %vm3148_vm8 = vcmask 9216  }
  0xfe   :  { %v4154_v40 = vld [vmem:[%s5546_s4 + $0x98] sm:$0xff]   ;;  %v4158_v45 = vld [vmem:[%s5546_s4 + $0xa0] sm:$0xff]   ;;  %v4161_v48 = vld [vmem:[%s5546_s4 + $0x68] sm:$0xff]  }
  0xff   :  { %v4155_v41 = vld [vmem:[%s5546_s4 + $0x18] sm:$0xff]   ;;  %v4159_v46 = vld [vmem:[%s5546_s4 + $0x20] sm:$0xff]   ;;  %v4162_v49 = vld [vmem:[%s5546_s4 + $0xa8] sm:$0xff]  }
 0x100   :  { %1828 = vmatpush1.bf16.msra.mxu0 %v4122_v16  ;;  %1992 = vmatpush1.bf16.msra.mxu1 %v4125_v17  ;;  %v4163_v50 = vld [vmem:[%s5546_s4 + $0x28] sm:$0xff]   ;;  %v4164_v51 = vld [vmem:[%s5546_s4 + $0xf0] sm:$0xff]   ;;  %v4168_v55 = vld [vmem:[%s5546_s4 + $0xf8] ss:$0 sps:$4 sm:$0x33]  }
 0x101   :  { %1829 = vmatprep.subr.bf16.mxu0 %v4130_v18  ;;  %1993 = vmatprep.subr.bf16.mxu1 %v4133_v19  ;;  %v4165_v52 = vld [vmem:[%s5546_s4 + $0x70] sm:$0xff]   ;;  %v4169_v56 = vld [vmem:[%s5546_s4 + $0x78] sm:$0xff]   ;;  %v4172_v59 = vld [vmem:[%s5550_s8 + $0x40] sm:$0xff]  }
 0x102   :  { %v4166_v53 = vld [vmem:[%s5546_s4 + $0xb0] sm:$0xff]   ;;  %v4170_v57 = vld [vmem:[%s5546_s4 + $0xb8] sm:$0xff]   ;;  %v318_v63 = vld [vmem:[%s5545_s3] sm:$0xf]  ;;  %s4278_s3 = smov 126  }
 0x103   :  { %v4167_v54 = vld [vmem:[%s5546_s4 + $0x30] sm:$0xff]   ;;  %v4171_v58 = vld [vmem:[%s5546_s4 + $0x38] sm:$0xff]   ;;  %v323_v2 = vrot.slane %v318_v63, %v322_v61  ;;  %v331_v3 = vrot.slane %v318_v63, %v330_v62  ;;  %v327_v4 = vrot.slane %v318_v63, %v326_v0  ;;  %v335_v5 = vrot.slane %v318_v63, %v334_v1  ;;  %v4196_v1 = vld [vmem:[%s5550_s8 + $0x80] sm:$0xff]  }
 0x104   :  { %1830 = vmatpush1.bf16.msra.mxu0 %v4128_v22  ;;  %1994 = vmatpush1.bf16.msra.mxu1 %v4131_v23 }
 0x105   :  { %1831 = vmatprep.subr.bf16.mxu0 %v4136_v24  ;;  %1995 = vmatprep.subr.bf16.mxu1 %v4139_v25 }
 0x108   :  { %1832 = vmatpush1.bf16.msra.mxu0 %v4134_v26  ;;  %1996 = vmatpush1.bf16.msra.mxu1 %v4137_v27  ;;  %v4173_v26 = vld [vmem:[%s5550_s8] sm:$0xff]  }
 0x109   :  { %3559 = vmatprep.subr.bf16.mxu1 %v4140_v15  ;;  %3537 = vmatprep.subr.bf16.mxu0 %v4141_v28  ;;  %v4174_v28 = vld [vmem:[%s5550_s8 + $0x48] sm:$0xff]  }
 0x10b   :  { %1834 = vmatmul.mubr.bf16.vlgmr.msra.gmra.mrb[0].mxu0 %v387_v29  ;;  %1998 = vmatmul.mubr.bf16.vlgmr.msra.gmra.mrb[0].mxu1 %v387_v29  ;;  %v4188_v29 = vld [vmem:[%s5548_s6] sm:$0xff]  }
 0x10c   :  { %3560 = vmatpush3.bf16.msra.mxu1 %v4142_v30  ;;  %3538 = vmatpush3.bf16.msra.mxu0 %v4143_v31  ;;  %v4175_v30 = vld [vmem:[%s5550_s8 + $0x8] sm:$0xff]   ;;  %v4176_v31 = vld [vmem:[%s5550_s8 + $0x50] sm:$0xff]  }
 0x10d   :  { %3561 = vmatprep.subr.bf16.mxu1 %v4144_v32  ;;  %3539 = vmatprep.subr.bf16.mxu0 %v4145_v21  ;;  %v4189_v32 = vld [vmem:[%s5548_s6 + $0x8] sm:$0xff]   ;;  %v4177_v21 = vld [vmem:[%s5550_s8 + $0x10] sm:$0xff]  }
 0x110   :  { %3562 = vmatpush3.bf16.msra.mxu1 %v4146_v33  ;;  %3540 = vmatpush3.bf16.msra.mxu0 %v4147_v34  ;;  %v4178_v33 = vld [vmem:[%s5550_s8 + $0x58] sm:$0xff]   ;;  %v4190_v34 = vld [vmem:[%s5548_s6 + $0x10] sm:$0xff]  }
 0x111   :  { %3563 = vmatprep.subr.bf16.mxu1 %v4148_v20  ;;  %3541 = vmatprep.subr.bf16.mxu0 %v4149_v35  ;;  %v4179_v20 = vld [vmem:[%s5550_s8 + $0x18] sm:$0xff]   ;;  %v4180_v35 = vld [vmem:[%s5550_s8 + $0x60] sm:$0xff]  }
 0x114   :  { %3564 = vmatpush3.bf16.msra.mxu1 %v4150_v36  ;;  %3542 = vmatpush3.bf16.msra.mxu0 %v4151_v37  ;;  %v4191_v36 = vld [vmem:[%s5548_s6 + $0x18] sm:$0xff]   ;;  %v4181_v37 = vld [vmem:[%s5550_s8 + $0x20] sm:$0xff]  }
 0x115   :  { %3565 = vmatprep.subr.bf16.mxu1 %v4152_v38  ;;  %3543 = vmatprep.subr.bf16.mxu0 %v4153_v39  ;;  %v4182_v38 = vld [vmem:[%s5550_s8 + $0x68] sm:$0xff]  }
 0x116   :  { %v4183_v39 = vld [vmem:[%s5550_s8 + $0x28] sm:$0xff]  }
 0x118   :  { %3566 = vmatpush3.bf16.msra.mxu1 %v4154_v40  ;;  %3544 = vmatpush3.bf16.msra.mxu0 %v4155_v41  ;;  %v4184_v40 = vld [vmem:[%s5550_s8 + $0x70] sm:$0xff]  }
 0x119   :  { %3567 = vmatprep.subr.bf16.mxu1 %v4156_v43  ;;  %3545 = vmatprep.subr.bf16.mxu0 %v4157_v44  ;;  %v4185_v41 = vld [vmem:[%s5550_s8 + $0x30] sm:$0xff]   ;;  %v4186_v43 = vld [vmem:[%s5550_s8 + $0x78] sm:$0xff]  }
 0x11a   :  { %v4187_v44 = vld [vmem:[%s5550_s8 + $0x38] sm:$0xff]  }
 0x11c   :  { %3568 = vmatpush3.bf16.msra.mxu1 %v4158_v45  ;;  %3546 = vmatpush3.bf16.msra.mxu0 %v4159_v46  ;;  %v4192_v45 = vld [vmem:[%s5548_s6 + $0x20] sm:$0xff]   ;;  %v4193_v46 = vld [vmem:[%s5548_s6 + $0x28] sm:$0xff]  }
 0x11d   :  { %3569 = vmatprep.subr.bf16.mxu1 %v4160_v47  ;;  %3547 = vmatprep.subr.bf16.mxu0 %v4161_v48  ;;  %v4194_v47 = vld [vmem:[%s5548_s6 + $0x30] ss:$0 sps:$4 sm:$0x33]  }
 0x11e   :  { %v2427_v48 = vsel %vm2277_vm0, %v4194_v47, 0 }
 0x120   :  { %3570 = vmatpush3.bf16.msra.mxu1 %v4162_v49  ;;  %3548 = vmatpush3.bf16.msra.mxu0 %v4163_v50  ;;  %v4195_v49 = vld [vmem:[%s5550_s8 + $0xc0] sm:$0xff]  }
 0x121   :  { %3571 = vmatprep.subr.bf16.mxu1 %v4164_v51  ;;  %3549 = vmatprep.subr.bf16.mxu0 %v4165_v52  ;;  %v3437_v52 = vld [vmem:[%s5547_s5] ss:$0 sm:$0xff] }
 0x124   :  { %3572 = vmatpush3.bf16.msra.mxu1 %v4166_v53  ;;  %3550 = vmatpush3.bf16.msra.mxu0 %v4167_v54 }
 0x125   :  { %3747 = vmatprep.subr.msk.bf16.mxu1 %vm2277_vm0, %v4168_v55  ;;  %3551 = vmatprep.subr.bf16.mxu0 %v4169_v56 }
 0x128   :  { %3574 = vmatpush3.bf16.msra.mxu1 %v4170_v57  ;;  %3552 = vmatpush3.bf16.msra.mxu0 %v4171_v58 }
 0x129   :  { %3589 = vmatprep.subr.bf16.mxu1 %v4172_v59  ;;  %3653 = vmatprep.subr.bf16.mxu0 %v4276_v60 }
 0x1de   :  { %v1835_v6 = vpop.f32.mrb[0].mxu0  ;;  %v1999_v7 = vpop.f32.mrb[0].mxu1 }
 0x1df   :  { %v3719_v8 = vadd.f32 %v1835_v6, %v323_v2  ;;  %v3721_v9 = vadd.f32 %v1999_v7, %v331_v3  ;;  %v1837_v10 = vpop.f32.mrb[1].mxu0  ;;  %v2001_v11 = vpop.f32.mrb[1].mxu1  ;;  %v4197_v3 = vld [vmem:[%s5550_s8 + $0xc8] sm:$0xff]   ;;  %v4200_v6 = vld [vmem:[%s5550_s8 + $0x90] sm:$0xff]   ;;  %v4201_v7 = vld [vmem:[%s5550_s8 + $0xd8] sm:$0xff]  }
 0x1e0   :  { %v3720_v12 = vadd.f32 %v1837_v10, %v327_v4  ;;  %v3722_v13 = vadd.f32 %v2001_v11, %v335_v5  ;;  %v1839_v14 = vpop.f32.mrb[2].mxu0  ;;  %v2003_v16 = vpop.f32.mrb[2].mxu1  ;;  %v4198_v4 = vld [vmem:[%s5550_s8 + $0x88] sm:$0xff]   ;;  %v4199_v5 = vld [vmem:[%s5550_s8 + $0xd0] sm:$0xff]   ;;  %v4204_v10 = vld [vmem:[%s5550_s8 + $0xa0] sm:$0xff]  }
 0x1e1   :  { %v2006_v17 = vmax.f32 %v3719_v8, 0.0  ;;  %v2008_v18 = vmax.f32 %v3721_v9, 0.0  ;;  %v1840_v19 = vpop.f32.mrb[3].mxu0  ;;  %v2004_v22 = vpop.f32.mrb[3].mxu1  ;;  %v4202_v8 = vld [vmem:[%s5550_s8 + $0x98] sm:$0xff]   ;;  %v4203_v9 = vld [vmem:[%s5550_s8 + $0xe0] sm:$0xff]  }
 0x1e2   :  { %v2007_v23 = vmax.f32 %v3720_v12, 0.0  ;;  %v2009_v42 = vmax.f32 %v3722_v13, 0.0  ;;  %v4205_v11 = vld [vmem:[%s5550_s8 + $0xe8] sm:$0xff]   ;;  %v4207_v13 = vld [vmem:[%s5550_s8 + $0xf0] sm:$0xff]  }
 0x1e3   :  { %v2010_v27 = vpack.c.bf16 %v2006_v17, %v2006_v17  ;;  %v5289_v15 = vpack.c.bf16 %v2008_v18, %v2008_v18  ;;  %v4206_v12 = vld [vmem:[%s5550_s8 + $0xa8] sm:$0xff]   ;;  %v4208_v17 = vld [vmem:[%s5550_s8 + $0xb0] sm:$0xff]   ;;  %v4209_v22 = vld [vmem:[%s5550_s8 + $0xf8] ss:$0 sps:$4 sm:$0x33]  }
 0x1e4   :  { %v2011_v24 = vpack.c.bf16 %v2007_v23, %v2007_v23  ;;  %v5284_v25 = vpack.c.bf16 %v2009_v42, %v2009_v42  ;;  %v4210_v42 = vld [vmem:[%s5550_s8 + $0xb8] sm:$0xff]  }
 0x1e6   :  { %2313 = vmatprep.mubr.bf16.mxu0 %v2011_v24  ;;  %3470 = vmatprep.mubr.msk.bf16.mxu1 %vm2273_vm1, %v5284_v25 }
 0x1e7   :  { %2314 = vmatmul.mubr.bf16.vlgmr.msra.gmra.mrb[4].mxu0 %v2010_v27  ;;  %2354 = vmatmul.mubr.bf16.vlgmr.msra.gmra.mrb[4].mxu1 %v5289_v15 }
 0x1e8   :  { %3590 = vmatpush3.bf16.msra.mxu1 %v4173_v26  ;;  %2765 = vmatprep.mubr.bf16.mxu1 %v2011_v24  ;;  %v4211_v24 = vld [vmem:[%s5552_s10] sm:$0xff]   ;;  %v4213_v26 = vld [vmem:[%s5552_s10 + $0x10] sm:$0xff]  }
 0x1e9   :  { %3591 = vmatprep.subr.bf16.mxu1 %v4174_v28  ;;  %3654 = vmatpush3.bf16.msra.mxu0 %v4188_v29  ;;  %v4216_v28 = vld [vmem:[%s5552_s10 + $0x28] sm:$0xff]   ;;  %v4217_v29 = vld [vmem:[%s5552_s10 + $0x30] ss:$0 sps:$4 sm:$0x33]  }
 0x1ea   :  { %3655 = vmatprep.subr.bf16.mxu0 %v4276_v60  ;;  %3667 = vmatprep.mubr.msk.bf16.mxu0 %vm4277_vm2, %v4276_v60 }
 0x1ec   :  { %3592 = vmatpush3.bf16.msra.mxu1 %v4175_v30  ;;  %v2878_v30 = vsel %vm2277_vm0, %v4217_v29, 0 }
 0x1ed   :  { %3593 = vmatprep.subr.bf16.mxu1 %v4176_v31  ;;  %3656 = vmatpush3.bf16.msra.mxu0 %v4189_v32  ;;  %v4221_v31 = vld [vmem:[%s5558_s16] sm:$0x3f]  }
 0x1ee   :  { %3657 = vmatprep.subr.bf16.mxu0 %v4276_v60  ;;  %v2936_v32 = vsel %vm2934_vm4, %v4221_v31, 0 }
 0x1f0   :  { %3594 = vmatpush3.bf16.msra.mxu1 %v4177_v21  ;;  %v2922_v21 = vld [vmem:[%s5567_s20] sm:$0x1] }
 0x1f1   :  { %3595 = vmatprep.subr.bf16.mxu1 %v4178_v33  ;;  %3658 = vmatpush3.bf16.msra.mxu0 %v4190_v34  ;;  %v4223_v33 = vld [vmem:[%s5556_s14] sm:$0xff]   ;;  %v4224_v34 = vld [vmem:[%s5556_s14 + $0x8] sm:$0xff]  }
 0x1f2   :  { %3659 = vmatprep.subr.bf16.mxu0 %v4276_v60 }
 0x1f4   :  { %3596 = vmatpush3.bf16.msra.mxu1 %v4179_v20 }
 0x1f5   :  { %3597 = vmatprep.subr.bf16.mxu1 %v4180_v35  ;;  %3660 = vmatpush3.bf16.msra.mxu0 %v4191_v36 }
 0x1f6   :  { %3661 = vmatprep.subr.bf16.mxu0 %v4276_v60 }
 0x1f8   :  { %3598 = vmatpush3.bf16.msra.mxu1 %v4181_v37 }
 0x1f9   :  { %3599 = vmatprep.subr.bf16.mxu1 %v4182_v38  ;;  %3662 = vmatpush3.bf16.msra.mxu0 %v4192_v45  ;;  %v3480_v38 = vld [vmem:[%s5551_s9] ss:$0 sm:$0xff] }
 0x1fa   :  { %3663 = vmatprep.subr.bf16.mxu0 %v4276_v60 }
 0x1fc   :  { %3600 = vmatpush3.bf16.msra.mxu1 %v4183_v39 }
 0x1fd   :  { %3601 = vmatprep.subr.bf16.mxu1 %v4184_v40  ;;  %3664 = vmatpush3.bf16.msra.mxu0 %v4193_v46 }
 0x1fe   :  { %3665 = vmatprep.subr.bf16.mxu0 %v4276_v60 }
 0x200   :  { %3602 = vmatpush3.bf16.msra.mxu1 %v4185_v41 }
 0x201   :  { %3603 = vmatprep.subr.bf16.mxu1 %v4186_v43  ;;  %3666 = vmatpush3.bf16.msra.mxu0 %v2427_v48  ;;  %v4218_v48 = vld [vmem:[%s5554_s12] sm:$0xff]  }
 0x202   :  { %3611 = vmatprep.subr.bf16.mxu0 %v4195_v49 }
 0x204   :  { %3604 = vmatpush3.bf16.msra.mxu1 %v4187_v44 }
 0x205   :  { %3671 = vmatprep.subr.bf16.mxu1 %v4276_v60 }
 0x207   :  { %2766 = vmatmul.mubr.bf16.vlgmr.msra.gmra.mrb[8].mxu1 %v2010_v27  ;;  %v4214_v27 = vld [vmem:[%s5552_s10 + $0x18] sm:$0xff]  }
 0x208   :  { %3685 = vmatprep.mubr.msk.bf16.mxu1 %vm4277_vm2, %v4276_v60  ;;  %3672 = vmatpush3.bf16.msra.mxu1 %v4211_v24 }
 0x209   :  { %3673 = vmatprep.subr.bf16.mxu1 %v4276_v60 }
 0x2ba   :  { %v3553_v50 = vpop.f32.mrb[4].mxu0  ;;  %v3575_v51 = vpop.f32.mrb[4].mxu1 }
 0x2bb   :  { %v3554_v53 = vpop.f32.mrb[5].mxu0  ;;  %v3576_v54 = vpop.f32.mrb[5].mxu1 }
 0x2bc   :  { %v3555_v55 = vadd.f32 %v3554_v53, %v3553_v50  ;;  %v3577_v56 = vadd.f32 %v3576_v54, %v3575_v51  ;;  %v3556_v57 = vpop.f32.mrb[6].mxu0  ;;  %v3578_v58 = vpop.f32.mrb[6].mxu1  ;;  %v4219_v50 = vld [vmem:[%s5554_s12 + $0x8] sm:$0xff]   ;;  %v3471_v51 = vld [vmem:[%s5549_s7] ss:$0 sm:$0xff] }
 0x2bd   :  { %v3557_v59 = vpop.f32.mrb[7].mxu0  ;;  %v3579_v61 = vpop.f32.mrb[7].mxu1  ;;  %v4222_v54 = vld [vmem:[%s5554_s12 + $0x18] ss:$0 sps:$4 sm:$0x11]   ;;  %v4225_v58 = vld [vmem:[%s5556_s14 + $0x10] sm:$0xff]  }
 0x2be   :  { %v2316_v62 = vadd.f32 %v3555_v55, %v3437_v52  ;;  %v4220_v52 = vld [vmem:[%s5554_s12 + $0x10] sm:$0xff]   ;;  %v4226_v59 = vld [vmem:[%s5556_s14 + $0x18] ss:$0 sps:$4 sm:$0x11]  }
 0x2bf   :  { %v3098_v61 = vsel %vm3010_vm6, %v4226_v59, 0 }
 0x2c0   :  { %v2356_v63 = vadd.f32 %v3577_v56, %v2316_v62  ;;  %v3012_v56 = vsel %vm3010_vm6, %v4222_v54, 0 }
 0x2c2   :  { %v2361_v0 = vmax.f32 %v2356_v63, 0.0 }
 0x2c4   :  { %v2362_v2 = vpack.c.bf16 %v2361_v0, %v2361_v0 }
 0x2c6   :  { %3668 = vmatmul.mubr.msk.bf16.vlgmr.msra.gmra.mrb[8].mxu0 %vm2422_vm3, %v2362_v2  ;;  %v3514_v2 = vld [vmem:[%s5553_s11] ss:$0 sm:$0xff]  ;;  %s4279_s11 = smov [#allocation2]  }
 0x2c7   :  { %3612 = vmatpush3.bf16.msra.mxu0 %v4196_v1  ;;  %3513 = vmatprep.mubr.msk.bf16.mxu0 %vm2273_vm1, %v5284_v25  ;;  %v4212_v25 = vld [vmem:[%s5552_s10 + $0x8] sm:$0xff]   ;;  %s3159_s20 = sshll.u32 %s4279_s11, 4  ;;  %s3160_s20 = int_to_ptr.vmem [resolvable:$true] %s3159_s20 }
 0x2c8   :  { %3613 = vmatprep.subr.bf16.mxu0 %v4197_v3  ;;  %3674 = vmatpush3.bf16.msra.mxu1 %v4212_v25  ;;  %p4232_p1 = scmp.lt.s32.totalorder %s3160_s20, %s3160_s20 }
 0x2c9   :  { %3675 = vmatprep.subr.bf16.mxu1 %v4276_v60 }
 0x2cb   :  { %3614 = vmatpush3.bf16.msra.mxu0 %v4198_v4 }
 0x2cc   :  { %3615 = vmatprep.subr.bf16.mxu0 %v4199_v5  ;;  %3676 = vmatpush3.bf16.msra.mxu1 %v4213_v26 }
 0x2cd   :  { %3677 = vmatprep.subr.bf16.mxu1 %v4276_v60 }
 0x2cf   :  { %3616 = vmatpush3.bf16.msra.mxu0 %v4200_v6 }
 0x2d0   :  { %3617 = vmatprep.subr.bf16.mxu0 %v4201_v7  ;;  %3678 = vmatpush3.bf16.msra.mxu1 %v4214_v27 }
 0x2d1   :  { %3679 = vmatprep.subr.bf16.mxu1 %v4276_v60 }
 0x2d3   :  { %3618 = vmatpush3.bf16.msra.mxu0 %v4202_v8 }
 0x2d4   :  { %3619 = vmatprep.subr.bf16.mxu0 %v4203_v9 }
 0x2d7   :  { %3620 = vmatpush3.bf16.msra.mxu0 %v4204_v10  ;;  %v3530_v10 = vld [vmem:[%s5555_s13] ss:$0 sm:$0xff] }
 0x2d8   :  { %3621 = vmatprep.subr.bf16.mxu0 %v4205_v11 }
 0x2da   :  { %v3605_v14 = vpop.f32.mrb[8].mxu1 }
 0x2db   :  { %v3606_v16 = vpop.f32.mrb[9].mxu1  ;;  %3622 = vmatpush3.bf16.msra.mxu0 %v4206_v12 }
 0x2dc   :  { %v3607_v18 = vadd.f32 %v3606_v16, %v3605_v14  ;;  %v3608_v19 = vpop.f32.mrb[10].mxu1  ;;  %3623 = vmatprep.subr.bf16.mxu0 %v4207_v13 }
 0x2dd   :  { %v3609_v23 = vpop.f32.mrb[11].mxu1 }
 0x2de   :  { %v2768_v41 = vadd.f32 %v3607_v18, %v3480_v38 }
 0x2df   :  { %3624 = vmatpush3.bf16.msra.mxu0 %v4208_v17 }
 0x2e0   :  { %3748 = vmatprep.subr.msk.bf16.mxu0 %vm2277_vm0, %v4209_v22 }
 0x2e3   :  { %3626 = vmatpush3.bf16.msra.mxu0 %v4210_v42 }
 0x2e4   :  { %3689 = vmatprep.subr.bf16.mxu0 %v4276_v60 }
 0x2e6   :  { %2806 = vmatmul.mubr.bf16.vlgmr.msra.gmra.mrb[12].mxu0 %v5289_v15  ;;  %v4215_v15 = vld [vmem:[%s5552_s10 + $0x20] sm:$0xff]   ;;  %s4227_s10 = scalar_lea.vmem %s3160_s20, 32 }
 0x2e7   :  { %3691 = vmatprep.mubr.msk.bf16.mxu0 %vm4277_vm2, %v4276_v60  ;;  %3680 = vmatpush3.bf16.msra.mxu1 %v4215_v15  ;;  %p4228_p0 = scmp.ne.s32.totalorder %s3160_s20, %s4227_s10  ;;  %p4233_p2 = scmp.lt.s32.totalorder %s4227_s10, %s4227_s10 }
 0x2e8   :  { %3681 = vmatprep.subr.bf16.mxu1 %v4276_v60  ;;  %3690 = vmatpush3.bf16.msra.mxu0 %v2936_v32 }
 0x2e9   :  { %3707 = vmatprep.subr.bf16.mxu0 %v4276_v60  ;;  %p4234_p3 = por %p4233_p2, %p4232_p1 }
 0x2eb   :  { %3682 = vmatpush3.bf16.msra.mxu1 %v4216_v28  ;;  %p4235_p4 = pnand %p4234_p3, %p4228_p0 }
 0x2ec   :  { %3683 = vmatprep.subr.bf16.mxu1 %v4276_v60 }
 0x2ee   :  { %3692 = vmatmul.mubr.msk.bf16.vlgmr.msra.gmra.mrb[16].mxu0 %vm2930_vm5, %v2922_v21 }
 0x2ef   :  { %3684 = vmatpush3.bf16.msra.mxu1 %v2878_v30  ;;  %3715 = vmatprep.mubr.msk.bf16.mxu0 %vm4277_vm2, %v4276_v60 }
 0x2f0   :  { %3695 = vmatprep.subr.bf16.mxu1 %v4276_v60  ;;  %3708 = vmatpush3.bf16.msra.mxu0 %v4223_v33 }
 0x2f1   :  { %3709 = vmatprep.subr.bf16.mxu0 %v4276_v60 }
 0x2f4   :  { %3710 = vmatpush3.bf16.msra.mxu0 %v4224_v34 }
 0x2f5   :  { %3711 = vmatprep.subr.bf16.mxu0 %v4276_v60 }
 0x2f8   :  { %3712 = vmatpush3.bf16.msra.mxu0 %v4225_v58 }
 0x2f9   :  { %3713 = vmatprep.subr.bf16.mxu0 %v4276_v60 }
 0x2fc   :  { %3714 = vmatpush3.bf16.msra.mxu0 %v3098_v61 }
 0x399   :  { %v2463_v20 = vpop.f32.mrb[8].mxu0 }
 0x39a   :  { %v3669_v35 = vpop.f32.mrb[9].mxu0  ;;  %v2464_v53 = vadd.f32 %v3471_v51, %v2463_v20 }
 0x39b   :  { %v2466_v36 = vpop.f32.mrb[10].mxu0 }
 0x39c   :  { %v3670_v37 = vpop.f32.mrb[11].mxu0  ;;  %v2469_v55 = vmax.f32 %v2464_v53, 0.0 }
 0x39e   :  { %v2470_v57 = vpack.c.bf16 %v2469_v55, %v2469_v55 }
 0x3b9   :  { %v3627_v39 = vpop.f32.mrb[12].mxu0 }
 0x3ba   :  { %v3628_v40 = vpop.f32.mrb[13].mxu0 }
 0x3bb   :  { %v3629_v43 = vadd.f32 %v3628_v40, %v3627_v39  ;;  %v3630_v44 = vpop.f32.mrb[14].mxu0 }
 0x3bc   :  { %v3631_v45 = vpop.f32.mrb[15].mxu0 }
 0x3bd   :  { %v2808_v46 = vadd.f32 %v3629_v43, %v2768_v41 }
 0x3bf   :  { %v2813_v47 = vmax.f32 %v2808_v46, 0.0 }
 0x3c1   :  { %v2814_v49 = vpack.c.bf16 %v2813_v47, %v2813_v47  ;;  %v2972_v62 = vpop.f32.mrb[16].mxu0 }
 0x3c2   :  { %v3693_v63 = vpop.f32.mrb[17].mxu0  ;;  %3091 = vrot.lane.b32.xlu0 %v2972_v62, %s4278_s3 }
 0x3c3   :  { %3686 = vmatmul.mubr.msk.bf16.vlgmr.msra.gmra.mrb[12].mxu1 %vm2422_vm3, %v2814_v49  ;;  %v2975_v0 = vpop.f32.mrb[18].mxu0 }
 0x3c4   :  { %3696 = vmatpush3.bf16.msra.mxu1 %v4218_v48  ;;  %3703 = vmatprep.mubr.msk.bf16.mxu1 %vm4277_vm2, %v4276_v60  ;;  %v3694_v1 = vpop.f32.mrb[19].mxu0 }
 0x3c5   :  { %3697 = vmatprep.subr.bf16.mxu1 %v4276_v60 }
 0x3c8   :  { %3698 = vmatpush3.bf16.msra.mxu1 %v4219_v50 }
 0x3c9   :  { %3699 = vmatprep.subr.bf16.mxu1 %v4276_v60 }
 0x3cc   :  { %3700 = vmatpush3.bf16.msra.mxu1 %v4220_v52 }
 0x3cd   :  { %3701 = vmatprep.subr.bf16.mxu1 %v4276_v60 }
 0x3d0   :  { %3702 = vmatpush3.bf16.msra.mxu1 %v3012_v56 }
 0x3d3   :  { %3704 = vmatmul.mubr.msk.bf16.vlgmr.msra.gmra.mrb[16].mxu1 %vm3006_vm7, %v2470_v57 }
 0x496   :  { %v2914_v3 = vpop.f32.mrb[12].mxu1 }
 0x497   :  { %v2915_v4 = vadd.f32 %v3514_v2, %v2914_v3  ;;  %v3687_v5 = vpop.f32.mrb[13].mxu1 }
 0x498   :  { %v2917_v60 = vpop.f32.mrb[14].mxu1 }
 0x499   :  { %v2920_v6 = vmax.f32 %v2915_v4, 0.0  ;;  %v3688_v7 = vpop.f32.mrb[15].mxu1 }
 0x49b   :  { %v2921_v8 = vpack.c.bf16 %v2920_v6, %v2920_v6 }
 0x49d   :  { %3716 = vmatmul.mubr.msk.bf16.vlgmr.msra.gmra.mrb[20].mxu0 %vm3006_vm7, %v2921_v8 }
 0x4a6   :  { %v3048_v9 = vpop.f32.mrb[16].mxu1 }
 0x4a7   :  { %v3049_v11 = vadd.f32 %v3048_v9, %v2972_v62  ;;  %v3705_v12 = vpop.f32.mrb[17].mxu1 }
 0x4a8   :  { %v3051_v13 = vpop.f32.mrb[18].mxu1 }
 0x4a9   :  { %v3706_v14 = vpop.f32.mrb[19].mxu1  ;;  %v3061_v16 = vadd.f32 %v3530_v10, %v3049_v11 }
 0x4ab   :  { %3149 = vst.msk [vmem:[#allocation2] sm:$0x3] %vm3148_vm8, %v3061_v16 }
 0x4ac   :  { %4238 = shalt.err (!%p4235_p4)
}
 0x4ad   :  { %s4239_s16 = scalar_lea.hbm %s5559_s17, 32 }
 0x4ae   :  { %p4240_p5 = scmp.ne.s32.totalorder %s5559_s17, %s4239_s16  ;;  %p4243_p6 = scmp.lt.u32.totalorder %s4239_s16, %s5559_s17 }
 0x4b0   :  { %p4245_p7 = pnand %p4243_p6, %p4240_p5 }
 0x4b2   :  { %4248 = shalt.err (!%p4245_p7)
}
 0x4b3   :  { %3162 = dma.vmem_to_hbm [thread:$0]  %s3160_s20, 32, %s5559_s17, [#allocation3]   ;;  %v3092_v17 = vpop.permute.xlu0 %3091  ;;  %v3536_v19 = vld [vmem:[%s5557_s15] ss:$0 sm:$0xff] }
 0x4b4   :  { %s4280_s27 = smov [#allocation4]  }
 0x4b5   :  { %s3169_s28 = sshll.u32 %s4280_s27, 4  ;;  %s3170_s28 = int_to_ptr.vmem [resolvable:$true] %s3169_s28 }
 0x4b6   :  { %s4249_s6 = scalar_lea.vmem %s3170_s28, 32  ;;  %p4254_p9 = scmp.lt.s32.totalorder %s3170_s28, %s3170_s28 }
 0x4b7   :  { %p4250_p8 = scmp.ne.s32.totalorder %s3170_s28, %s4249_s6  ;;  %p4255_p10 = scmp.lt.s32.totalorder %s4249_s6, %s4249_s6 }
 0x4b9   :  { %p4256_p11 = por %p4255_p10, %p4254_p9 }
 0x4bb   :  { %p4257_p12 = pnand %p4256_p11, %p4250_p8 }
 0x570   :  { %v3134_v18 = vpop.f32.mrb[20].mxu0 }
 0x571   :  { %v3135_v22 = vadd.f32 %v3134_v18, %v3092_v17  ;;  %v3717_v23 = vpop.f32.mrb[21].mxu0 }
 0x572   :  { %v3137_v42 = vpop.f32.mrb[22].mxu0 }
 0x573   :  { %v3147_v24 = vadd.f32 %v3536_v19, %v3135_v22  ;;  %v3718_v25 = vpop.f32.mrb[23].mxu0 }
 0x575   :  { %v3150_v26 = vmax.f32 %v3147_v24, -20.0 }
 0x577   :  { %v3151_v27 = vmin.f32 %v3150_v26, 2.0 }
 0x579   :  { %3152 = vst.msk [vmem:[#allocation4] sm:$0x3] %vm3148_vm8, %v3151_v27 }
 0x57a   :  { %4260 = shalt.err (!%p4257_p12)
}
 0x57b   :  { %s4261_s30 = scalar_lea.hbm %s5560_s18, 32 }
 0x57c   :  { %p4262_p13 = scmp.ne.s32.totalorder %s5560_s18, %s4261_s30  ;;  %p4265_p0 = scmp.lt.u32.totalorder %s4261_s30, %s5560_s18 }
 0x57e   :  { %p4267_p1 = pnand %p4265_p0, %p4262_p13 }
 0x580   :  { %4270 = shalt.err (!%p4267_p1)
}
 0x581   :  { %3172 = dma.vmem_to_hbm [thread:$0]  %s3170_s28, 32, %s5560_s18, [#allocation5]  }
 0x582   :  { %4271 = dma.done.wait [#allocation3], 32  }
 0x583   :  { %4272 = vsyncadd [#allocation3], 4294967264 }
 0x584   :  { %4273 = dma.done.wait [#allocation5], 32  }
 0x585   :  { %4274 = vsyncadd [#allocation5], 4294967264 }
 0x586   :  { %3179 = vsyncpa [#allocation3], 1 }
 0x587   :  { %3180 = vsyncpa [#allocation5], 1 }

</bundles_post_ra>
